<compile_context>
chip_gen: v5e
topology: v5e:2x2
jax: 0.10.0
libtpu: 0.0.40
codegen_flags: <defaults>
</compile_context>

<pallas_src>
import functools

import jax
import jax.numpy as jnp
from jax.experimental import pallas as pl
from jax.experimental.pallas import tpu as pltpu

EPS = 1e-5
VMEM_LIMIT = 32 * 1024 * 1024    # explicit scoped-VMEM cap, safe on v5e/v6e/v7x
_MAX_TM = 512                    # ~85% of HBM roofline vs ~29% at 128-row tiles


def _round_up(x, m):
    return (x + m - 1) // m * m


def _pick_tile(m):
    """Row-tile size: 512 where possible, else the whole (8-aligned) extent."""
    return _MAX_TM if m >= _MAX_TM else _round_up(m, 8)


def _pad_rows(a, mp):
    m = a.shape[0]
    return a if m == mp else jnp.pad(a, ((0, mp - m), (0, 0)))


def _cparams():
    return pltpu.CompilerParams(dimension_semantics=("parallel",),
                                vmem_limit_bytes=VMEM_LIMIT)


# ----------------------------- Pallas kernels ------------------------------

def _bn_matmul_stats_kernel(x_ref, scale_ref, bias_ref, w_ref,
                            y_ref, sum_ref, sq_ref, *, relu, m_true):
    """y = [relu](x*scale+bias) @ w, plus per-channel partial sum / sumsq."""
    xa = x_ref[...].astype(jnp.float32) * scale_ref[...] + bias_ref[...]
    if relu:
        xa = jnp.maximum(xa, 0.0)
    tm = xa.shape[0]
    if m_true % tm != 0:                      # mask zero-padded rows (last tile)
        row = pl.program_id(0) * tm + jax.lax.broadcasted_iota(
            jnp.int32, xa.shape, 0)
        xa = jnp.where(row < m_true, xa, 0.0)
    y = jnp.dot(xa.astype(w_ref.dtype), w_ref[...],
                preferred_element_type=jnp.float32)
    y_ref[...] = y
    sum_ref[...] = jnp.sum(y, axis=0, keepdims=True)[None]
    sq_ref[...] = jnp.sum(y * y, axis=0, keepdims=True)[None]


def _conv3x3_stats_kernel(x_ref, w_ref, y_ref, sum_ref, sq_ref,
                          *, stride, ho, wo):
    """One image: 9-tap 3x3 conv from the phase-decomposed padded input."""
    c = w_ref.shape[1]
    cout = w_ref.shape[2]
    acc = jnp.zeros((ho * wo, cout), jnp.float32)
    for dh in range(3):
        for dw in range(3):
            pidx = (dh % stride) * stride + (dw % stride)
            r0, c0 = dh // stride, dw // stride
            win = x_ref[pidx, 0, r0:r0 + ho, c0:c0 + wo, :]       # (ho, wo, c)
            acc = acc + jnp.dot(
                win.reshape(ho * wo, c).astype(w_ref.dtype),
                w_ref[dh * 3 + dw],
                preferred_element_type=jnp.float32)
    y_ref[...] = acc[None]
    sum_ref[...] = jnp.sum(acc, axis=0, keepdims=True)[None]
    sq_ref[...] = jnp.sum(acc * acc, axis=0, keepdims=True)[None]


def _affine_relu_kernel(y_ref, scale_ref, bias_ref, o_ref):
    o_ref[...] = jnp.maximum(
        y_ref[...] * scale_ref[...] + bias_ref[...], 0.0).astype(o_ref.dtype)


def _dual_affine_add_relu_kernel(y_ref, s_ref, b_ref, r_ref, rs_ref, rb_ref,
                                 o_ref):
    out = (y_ref[...] * s_ref[...] + b_ref[...]
           + r_ref[...] * rs_ref[...] + rb_ref[...])
    o_ref[...] = jnp.maximum(out, 0.0)


# ----------------------------- kernel wrappers ------------------------------

def bn_matmul_stats(x, scale, bias, w, *, relu):
    """Fused (affine+ReLU) -> matmul -> channel stats for a 1x1 conv.

    x: (M, K);  scale/bias: (1, K) f32;  w: (K, N) in the MXU dtype.
    Returns y (M, N) f32, mean (1, N), biased var (1, N).
    """
    M, K = x.shape
    N = w.shape[1]
    tm = _pick_tile(M)
    mp = pl.cdiv(M, tm) * tm
    grid_m = mp // tm
    y, s, sq = pl.pallas_call(
        functools.partial(_bn_matmul_stats_kernel, relu=relu, m_true=M),
        out_shape=(jax.ShapeDtypeStruct((mp, N), jnp.float32),
                   jax.ShapeDtypeStruct((grid_m, 1, N), jnp.float32),
                   jax.ShapeDtypeStruct((grid_m, 1, N), jnp.float32)),
        grid=(grid_m,),
        in_specs=[pl.BlockSpec((tm, K), lambda i: (i, 0)),
                  pl.BlockSpec((1, K), lambda i: (0, 0)),
                  pl.BlockSpec((1, K), lambda i: (0, 0)),
                  pl.BlockSpec((K, N), lambda i: (0, 0))],
        out_specs=(pl.BlockSpec((tm, N), lambda i: (i, 0)),
                   pl.BlockSpec((1, 1, N), lambda i: (i, 0, 0)),
                   pl.BlockSpec((1, 1, N), lambda i: (i, 0, 0))),
        compiler_params=_cparams(),
    )(_pad_rows(x, mp), scale, bias, w)
    if mp != M:
        y = y[:M]
    # NOTE: one-pass E[y^2]-E[y]^2 in f32 (clamped); acceptable for conv
    # outputs whose |mean| is not >> std.
    mean = jnp.sum(s, axis=0) / M
    var = jnp.maximum(jnp.sum(sq, axis=0) / M - mean * mean, 0.0)
    return y, mean, var


def conv3x3_bn_stats(x_nhwc, w9, stride):
    """3x3 / stride / pad=1 conv (+ channel stats) without an im2col blow-up.

    x_nhwc: (N, H, W, C) f32 activation; w9: (9, C, Cout) tap-major weights.
    Returns y (N*Ho*Wo, Cout) f32, mean, var, Ho, Wo.
    """
    n, h, w, c = x_nhwc.shape
    cout = w9.shape[2]
    s = stride
    ho = (h - 1) // s + 1
    wo = (w - 1) // s + 1
    hp = _round_up(ho * s + 2, s)
    wp = _round_up(wo * s + 2, s)
    xp = jnp.pad(x_nhwc, ((0, 0), (1, hp - h - 1), (1, wp - w - 1), (0, 0)))
    hs, ws = hp // s, wp // s
    # phase decomposition (1x data): phases[p*s+q, n, i, j] == xp[n, i*s+p, j*s+q]
    phases = jnp.transpose(xp.reshape(n, hs, s, ws, s, c),
                           (2, 4, 0, 1, 3, 5)).reshape(s * s, n, hs, ws, c)
    y, su, sq = pl.pallas_call(
        functools.partial(_conv3x3_stats_kernel, stride=s, ho=ho, wo=wo),
        out_shape=(jax.ShapeDtypeStruct((n, ho * wo, cout), jnp.float32),
                   jax.ShapeDtypeStruct((n, 1, cout), jnp.float32),
                   jax.ShapeDtypeStruct((n, 1, cout), jnp.float32)),
        grid=(n,),
        in_specs=[pl.BlockSpec((s * s, 1, hs, ws, c),
                               lambda i: (0, i, 0, 0, 0)),
                  pl.BlockSpec((9, c, cout), lambda i: (0, 0, 0))],
        out_specs=(pl.BlockSpec((1, ho * wo, cout), lambda i: (i, 0, 0)),
                   pl.BlockSpec((1, 1, cout), lambda i: (i, 0, 0)),
                   pl.BlockSpec((1, 1, cout), lambda i: (i, 0, 0))),
        compiler_params=_cparams(),
    )(phases, w9)
    m = n * ho * wo
    mean = jnp.sum(su, axis=0) / m
    var = jnp.maximum(jnp.sum(sq, axis=0) / m - mean * mean, 0.0)
    return y.reshape(m, cout), mean, var, ho, wo


def affine_relu(y, scale, bias):
    """out = relu(y*scale + bias) in f32 (BN1 epilogue, feeds conv2)."""
    M, C = y.shape
    tm = _pick_tile(M)
    mp = pl.cdiv(M, tm) * tm
    out = pl.pallas_call(
        _affine_relu_kernel,
        out_shape=jax.ShapeDtypeStruct((mp, C), jnp.float32),
        grid=(mp // tm,),
        in_specs=[pl.BlockSpec((tm, C), lambda i: (i, 0)),
                  pl.BlockSpec((1, C), lambda i: (0, 0)),
                  pl.BlockSpec((1, C), lambda i: (0, 0))],
        out_specs=pl.BlockSpec((tm, C), lambda i: (i, 0)),
        compiler_params=_cparams(),
    )(_pad_rows(y, mp), scale, bias)
    return out if mp == M else out[:M]


def dual_affine_add_relu(y, s, b, r, rs, rb):
    """relu(y*s + b + r*rs + rb): BN3 + shortcut-BN + residual + ReLU fused."""
    M, C = y.shape
    tm = _pick_tile(M)
    mp = pl.cdiv(M, tm) * tm
    out = pl.pallas_call(
        _dual_affine_add_relu_kernel,
        out_shape=jax.ShapeDtypeStruct((mp, C), jnp.float32),
        grid=(mp // tm,),
        in_specs=[pl.BlockSpec((tm, C), lambda i: (i, 0)),
                  pl.BlockSpec((1, C), lambda i: (0, 0)),
                  pl.BlockSpec((1, C), lambda i: (0, 0)),
                  pl.BlockSpec((tm, C), lambda i: (i, 0)),
                  pl.BlockSpec((1, C), lambda i: (0, 0)),
                  pl.BlockSpec((1, C), lambda i: (0, 0))],
        out_specs=pl.BlockSpec((tm, C), lambda i: (i, 0)),
        compiler_params=_cparams(),
    )(_pad_rows(y, mp), s, b, _pad_rows(r, mp), rs, rb)
    return out if mp == M else out[:M]


# ------------------------------- glue helpers ------------------------------

def bn_fold(mean, var, gamma, beta):
    """Fold training-mode BN (batch stats, biased variance) into scale/bias."""
    scale = gamma.reshape(1, -1) * jax.lax.rsqrt(var + EPS)
    bias = beta.reshape(1, -1) - mean * scale
    return scale, bias


@functools.partial(jax.jit, static_argnames=("stride", "mxu_dtype"))
def bottleneck_forward(x_nchw, p, stride, mxu_dtype=jnp.bfloat16):
    """Bottleneck forward. Input/output are NCHW; matmuls run in `mxu_dtype`."""
    n, cin, h, w = x_nchw.shape
    planes = p["w1"].shape[0]
    cout = 4 * planes

    x = jnp.transpose(x_nchw, (0, 2, 3, 1)).astype(jnp.float32)   # NHWC
    m0 = n * h * w
    ones = lambda c: jnp.ones((1, c), jnp.float32)
    zeros = lambda c: jnp.zeros((1, c), jnp.float32)

    # conv1 (1x1) + BN1 batch stats, one fused kernel.
    w1 = p["w1"][:, :, 0, 0].T.astype(mxu_dtype)                  # (cin, planes)
    y1, m1, v1 = bn_matmul_stats(x.reshape(m0, cin).astype(mxu_dtype),
                                 ones(cin), zeros(cin), w1, relu=False)
    s1, b1 = bn_fold(m1, v1, p["g1"], p["b1"])

    # BN1 affine + ReLU (kept standalone so spatial zero-padding stays exact).
    o1 = affine_relu(y1, s1, b1).reshape(n, h, w, planes)

    # conv2 (3x3, stride, pad=1) + BN2 stats: 9-tap in-kernel reduction.
    w2 = jnp.transpose(p["w2"], (2, 3, 1, 0)).reshape(9, planes, planes)
    y2, m2, v2, ho, wo = conv3x3_bn_stats(o1, w2.astype(mxu_dtype), stride)
    s2, b2 = bn_fold(m2, v2, p["g2"], p["b2"])
    m1rows = n * ho * wo

    # conv3 (1x1): BN2 affine+ReLU fused into its input, BN3 stats fused out.
    w3 = p["w3"][:, :, 0, 0].T.astype(mxu_dtype)                  # (planes, cout)
    y3, m3, v3 = bn_matmul_stats(y2, s2, b2, w3, relu=True)
    s3, b3 = bn_fold(m3, v3, p["g3"], p["b3"])

    # Shortcut.
    if stride != 1 or cin != cout:
        xs = x[:, ::stride, ::stride, :].reshape(m1rows, cin)
        wsc = p["wsc"][:, :, 0, 0].T.astype(mxu_dtype)
        ys, ms, vs = bn_matmul_stats(xs.astype(mxu_dtype),
                                     ones(cin), zeros(cin), wsc, relu=False)
        ssc, bsc = bn_fold(ms, vs, p["gsc"], p["bsc"])
        res = ys
    else:
        res = x.reshape(m0, cin)
        ssc, bsc = ones(cout), zeros(cout)

    # BN3 affine + shortcut BN affine + residual add + ReLU, one fused kernel.
    out = dual_affine_add_relu(y3, s3, b3, res, ssc, bsc)
    return jnp.transpose(out.reshape(n, ho, wo, cout), (0, 3, 1, 2))   # NCHW


# ---------------------------- pure-JAX reference ---------------------------

def ref_bottleneck(x, p, stride, conv_dtype=jnp.float32):
    """Reference. conv_dtype=bfloat16 mirrors the kernel's MXU input dtype."""
    def conv(x, w, s=1, pad=0):
        return jax.lax.conv_general_dilated(
            x.astype(conv_dtype), w.astype(conv_dtype),
            window_strides=(s, s), padding=[(pad, pad), (pad, pad)],
            dimension_numbers=("NCHW", "OIHW", "NCHW"),
            preferred_element_type=jnp.float32)

    def bn(y, g, b):
        mean = jnp.mean(y, axis=(0, 2, 3), keepdims=True)
        var = jnp.var(y, axis=(0, 2, 3), keepdims=True)
        return ((y - mean) / jnp.sqrt(var + EPS)
                * g.reshape(1, -1, 1, 1) + b.reshape(1, -1, 1, 1))

    out = jax.nn.relu(bn(conv(x, p["w1"]), p["g1"], p["b1"]))
    out = jax.nn.relu(bn(conv(out, p["w2"], stride, 1), p["g2"], p["b2"]))
    out = bn(conv(out, p["w3"]), p["g3"], p["b3"])
    cin, cout = x.shape[1], p["w3"].shape[0]
    if stride != 1 or cin != cout:
        sc = bn(conv(x, p["wsc"], stride), p["gsc"], p["bsc"])
    else:
        sc = x
    return jax.nn.relu(out + sc)


# ----------------------------------- main -----------------------------------

if __name__ == "__main__":
    key = jax.random.PRNGKey(0)

    def make_params(k, in_planes, planes):
        cout = 4 * planes
        ks = jax.random.split(k, 4)
        return {
            "w1": jax.random.normal(ks[0], (planes, in_planes, 1, 1), jnp.float32) * 0.2,
            "g1": jnp.ones((planes,), jnp.float32),
            "b1": jnp.zeros((planes,), jnp.float32),
            "w2": jax.random.normal(ks[1], (planes, planes, 3, 3), jnp.float32) * 0.2,
            "g2": jnp.ones((planes,), jnp.float32),
            "b2": jnp.zeros((planes,), jnp.float32),
            "w3": jax.random.normal(ks[2], (cout, planes, 1, 1), jnp.float32) * 0.2,
            "g3": jnp.ones((cout,), jnp.float32),
            "b3": jnp.zeros((cout,), jnp.float32),
            "wsc": jax.random.normal(ks[3], (cout, in_planes, 1, 1), jnp.float32) * 0.2,
            "gsc": jnp.ones((cout,), jnp.float32),
            "bsc": jnp.zeros((cout,), jnp.float32),
        }

    configs = [
        # (in_planes, planes, stride, N, H, W)
        (16, 8, 2, 2, 16, 16),   # projection shortcut, strided 3x3
        (32, 8, 1, 2, 8, 8),     # identity shortcut, stride-1 3x3
    ]

    for idx, (cin, planes, stride, N, H, W) in enumerate(configs):
        kp, kx = jax.random.split(jax.random.fold_in(key, idx))
        params = make_params(kp, cin, planes)
        x = jax.random.normal(kx, (N, cin, H, W), jnp.float32)

        # Exact check: f32 MXU path vs pure f32 reference.
        out_f32 = jax.block_until_ready(
            bottleneck_forward(x, params, stride=stride, mxu_dtype=jnp.float32))
        ref_f32 = ref_bottleneck(x, params, stride, conv_dtype=jnp.float32)
        assert out_f32.shape == ref_f32.shape, (out_f32.shape, ref_f32.shape)
        assert jnp.allclose(out_f32, ref_f32, atol=1e-3, rtol=1e-3), \
            float(jnp.max(jnp.abs(out_f32 - ref_f32)))

        # Fast path: bf16 MXU inputs vs a matched (bf16-input conv) reference.
        out_bf = jax.block_until_ready(
            bottleneck_forward(x, params, stride=stride, mxu_dtype=jnp.bfloat16))
        ref_bf = ref_bottleneck(x, params, stride, conv_dtype=jnp.bfloat16)
        assert jnp.allclose(out_bf, ref_bf, atol=5e-2, rtol=5e-2), \
            float(jnp.max(jnp.abs(out_bf - ref_bf)))

    print("KERNEL_OK")
</pallas_src>

<mosaic_0001>
module attributes {stable_mosaic.version = 11 : i64} {
  func.func @_bn_matmul_stats_kernel(%arg0: i32, %arg1: memref<512x16xf32, #tpu.memory_space<vmem>>, %arg2: memref<1x16xf32, #tpu.memory_space<vmem>>, %arg3: memref<1x16xf32, #tpu.memory_space<vmem>>, %arg4: memref<16x8xf32, #tpu.memory_space<vmem>>, %arg5: memref<512x8xf32, #tpu.memory_space<vmem>>, %arg6: memref<1x1x8xf32, #tpu.memory_space<vmem>>, %arg7: memref<1x1x8xf32, #tpu.memory_space<vmem>>) attributes {dimension_semantics = [#tpu.dimension_semantics<parallel>], iteration_bounds = array<i64: 1>, scalar_prefetch = 0 : i64, scratch_operands = 0 : i64, tpu.core_type = #tpu.core_type<tc>, window_params = [{transform_indices = @transform_0, window_bounds = array<i64: 512, 16>}, {pipeline_mode = #tpu.pipeline_mode<synchronous>, transform_indices = @transform_1, window_bounds = array<i64: 1, 16>}, {pipeline_mode = #tpu.pipeline_mode<synchronous>, transform_indices = @transform_2, window_bounds = array<i64: 1, 16>}, {pipeline_mode = #tpu.pipeline_mode<synchronous>, transform_indices = @transform_3, window_bounds = array<i64: 16, 8>}, {transform_indices = @transform_4, window_bounds = array<i64: 512, 8>}, {transform_indices = @transform_5, window_bounds = array<i64: 1, 1, 8>}, {transform_indices = @transform_6, window_bounds = array<i64: 1, 1, 8>}]} {
    %c0 = arith.constant 0 : index
    %c0_0 = arith.constant 0 : index
    %0 = vector.load %arg1[%c0, %c0_0] : memref<512x16xf32, #tpu.memory_space<vmem>>, vector<512x16xf32>
    %c0_1 = arith.constant 0 : index
    %c0_2 = arith.constant 0 : index
    %1 = vector.load %arg2[%c0_1, %c0_2] : memref<1x16xf32, #tpu.memory_space<vmem>>, vector<1x16xf32>
    %2 = vector.broadcast %1 : vector<1x16xf32> to vector<512x16xf32>
    %3 = arith.mulf %0, %2 : vector<512x16xf32>
    %c0_3 = arith.constant 0 : index
    %c0_4 = arith.constant 0 : index
    %4 = vector.load %arg3[%c0_3, %c0_4] : memref<1x16xf32, #tpu.memory_space<vmem>>, vector<1x16xf32>
    %5 = vector.broadcast %4 : vector<1x16xf32> to vector<512x16xf32>
    %6 = arith.addf %3, %5 : vector<512x16xf32>
    %c0_5 = arith.constant 0 : index
    %c0_6 = arith.constant 0 : index
    %7 = vector.load %arg4[%c0_5, %c0_6] : memref<16x8xf32, #tpu.memory_space<vmem>>, vector<16x8xf32>
    %cst = arith.constant dense<0.000000e+00> : vector<512x8xf32>
    %8 = tpu.matmul %6, %7, %cst {dimension_numbers = #tpu.dot_dimension_numbers<[1], [0], [0], [1], [0, 0, 1, 1], [], []>} : vector<512x16xf32>, vector<16x8xf32>, vector<512x8xf32> -> vector<512x8xf32>
    %c0_7 = arith.constant 0 : index
    %c0_8 = arith.constant 0 : index
    %9 = vector.load %arg5[%c0_7, %c0_8] : memref<512x8xf32, #tpu.memory_space<vmem>>, vector<512x8xf32>
    tpu.vector_store %arg5[%c0_7, %c0_8], %8 {strides = array<i32>} : memref<512x8xf32, #tpu.memory_space<vmem>>, vector<512x8xf32>,
    %cst_9 = arith.constant dense<0.000000e+00> : vector<8xf32>
    %10 = vector.multi_reduction <add>, %8, %cst_9 [0] : vector<512x8xf32> to vector<8xf32>
    %11 = vector.shape_cast %10 : vector<8xf32> to vector<1x8xf32>
    %12 = vector.shape_cast %11 : vector<1x8xf32> to vector<1x1x8xf32>
    %c0_10 = arith.constant 0 : index
    %c0_11 = arith.constant 0 : index
    %c0_12 = arith.constant 0 : index
    %13 = vector.load %arg6[%c0_10, %c0_11, %c0_12] : memref<1x1x8xf32, #tpu.memory_space<vmem>>, vector<1x1x8xf32>
    tpu.vector_store %arg6[%c0_10, %c0_11, %c0_12], %12 {strides = array<i32>} : memref<1x1x8xf32, #tpu.memory_space<vmem>>, vector<1x1x8xf32>,
    %14 = arith.mulf %8, %8 : vector<512x8xf32>
    %cst_13 = arith.constant dense<0.000000e+00> : vector<8xf32>
    %15 = vector.multi_reduction <add>, %14, %cst_13 [0] : vector<512x8xf32> to vector<8xf32>
    %16 = vector.shape_cast %15 : vector<8xf32> to vector<1x8xf32>
    %17 = vector.shape_cast %16 : vector<1x8xf32> to vector<1x1x8xf32>
    %c0_14 = arith.constant 0 : index
    %c0_15 = arith.constant 0 : index
    %c0_16 = arith.constant 0 : index
    %18 = vector.load %arg7[%c0_14, %c0_15, %c0_16] : memref<1x1x8xf32, #tpu.memory_space<vmem>>, vector<1x1x8xf32>
    tpu.vector_store %arg7[%c0_14, %c0_15, %c0_16], %17 {strides = array<i32>} : memref<1x1x8xf32, #tpu.memory_space<vmem>>, vector<1x1x8xf32>,
    return
  }
  func.func @transform_0(%arg0: i32) -> (i32, i32) {
    %c0_i32 = arith.constant 0 : i32
    %c0_i32_0 = arith.constant 0 : i32
    return %arg0, %c0_i32 : i32, i32
  }
  func.func @transform_1(%arg0: i32) -> (i32, i32) {
    %c0_i32 = arith.constant 0 : i32
    %c0_i32_0 = arith.constant 0 : i32
    %c0_i32_1 = arith.constant 0 : i32
    return %c0_i32, %c0_i32_0 : i32, i32
  }
  func.func @transform_2(%arg0: i32) -> (i32, i32) {
    %c0_i32 = arith.constant 0 : i32
    %c0_i32_0 = arith.constant 0 : i32
    %c0_i32_1 = arith.constant 0 : i32
    return %c0_i32, %c0_i32_0 : i32, i32
  }
  func.func @transform_3(%arg0: i32) -> (i32, i32) {
    %c0_i32 = arith.constant 0 : i32
    %c0_i32_0 = arith.constant 0 : i32
    %c0_i32_1 = arith.constant 0 : i32
    return %c0_i32, %c0_i32_0 : i32, i32
  }
  func.func @transform_4(%arg0: i32) -> (i32, i32) {
    %c0_i32 = arith.constant 0 : i32
    %c0_i32_0 = arith.constant 0 : i32
    return %arg0, %c0_i32 : i32, i32
  }
  func.func @transform_5(%arg0: i32) -> (i32, i32, i32) {
    %c0_i32 = arith.constant 0 : i32
    %c0_i32_0 = arith.constant 0 : i32
    %c0_i32_1 = arith.constant 0 : i32
    return %arg0, %c0_i32, %c0_i32_0 : i32, i32, i32
  }
  func.func @transform_6(%arg0: i32) -> (i32, i32, i32) {
    %c0_i32 = arith.constant 0 : i32
    %c0_i32_0 = arith.constant 0 : i32
    %c0_i32_1 = arith.constant 0 : i32
    return %arg0, %c0_i32, %c0_i32_0 : i32, i32, i32
  }
}

module attributes {stable_mosaic.version = 11 : i64} {
  func.func @_affine_relu_kernel(%arg0: i32, %arg1: memref<512x8xf32, #tpu.memory_space<vmem>>, %arg2: memref<1x8xf32, #tpu.memory_space<vmem>>, %arg3: memref<1x8xf32, #tpu.memory_space<vmem>>, %arg4: memref<512x8xf32, #tpu.memory_space<vmem>>) attributes {dimension_semantics = [#tpu.dimension_semantics<parallel>], iteration_bounds = array<i64: 1>, scalar_prefetch = 0 : i64, scratch_operands = 0 : i64, tpu.core_type = #tpu.core_type<tc>, window_params = [{transform_indices = @transform_0, window_bounds = array<i64: 512, 8>}, {pipeline_mode = #tpu.pipeline_mode<synchronous>, transform_indices = @transform_1, window_bounds = array<i64: 1, 8>}, {pipeline_mode = #tpu.pipeline_mode<synchronous>, transform_indices = @transform_2, window_bounds = array<i64: 1, 8>}, {transform_indices = @transform_3, window_bounds = array<i64: 512, 8>}]} {
    %c0 = arith.constant 0 : index
    %c0_0 = arith.constant 0 : index
    %0 = vector.load %arg1[%c0, %c0_0] : memref<512x8xf32, #tpu.memory_space<vmem>>, vector<512x8xf32>
    %c0_1 = arith.constant 0 : index
    %c0_2 = arith.constant 0 : index
    %1 = vector.load %arg2[%c0_1, %c0_2] : memref<1x8xf32, #tpu.memory_space<vmem>>, vector<1x8xf32>
    %2 = vector.broadcast %1 : vector<1x8xf32> to vector<512x8xf32>
    %3 = arith.mulf %0, %2 : vector<512x8xf32>
    %c0_3 = arith.constant 0 : index
    %c0_4 = arith.constant 0 : index
    %4 = vector.load %arg3[%c0_3, %c0_4] : memref<1x8xf32, #tpu.memory_space<vmem>>, vector<1x8xf32>
    %5 = vector.broadcast %4 : vector<1x8xf32> to vector<512x8xf32>
    %6 = arith.addf %3, %5 : vector<512x8xf32>
    %cst = arith.constant 0.000000e+00 : f32
    %7 = vector.broadcast %cst : f32 to vector<512x8xf32>
    %8 = arith.maximumf %6, %7 : vector<512x8xf32>
    %c0_5 = arith.constant 0 : index
    %c0_6 = arith.constant 0 : index
    %9 = vector.load %arg4[%c0_5, %c0_6] : memref<512x8xf32, #tpu.memory_space<vmem>>, vector<512x8xf32>
    tpu.vector_store %arg4[%c0_5, %c0_6], %8 {strides = array<i32>} : memref<512x8xf32, #tpu.memory_space<vmem>>, vector<512x8xf32>,
    return
  }
  func.func @transform_0(%arg0: i32) -> (i32, i32) {
    %c0_i32 = arith.constant 0 : i32
    %c0_i32_0 = arith.constant 0 : i32
    return %arg0, %c0_i32 : i32, i32
  }
  func.func @transform_1(%arg0: i32) -> (i32, i32) {
    %c0_i32 = arith.constant 0 : i32
    %c0_i32_0 = arith.constant 0 : i32
    %c0_i32_1 = arith.constant 0 : i32
    return %c0_i32, %c0_i32_0 : i32, i32
  }
  func.func @transform_2(%arg0: i32) -> (i32, i32) {
    %c0_i32 = arith.constant 0 : i32
    %c0_i32_0 = arith.constant 0 : i32
    %c0_i32_1 = arith.constant 0 : i32
    return %c0_i32, %c0_i32_0 : i32, i32
  }
  func.func @transform_3(%arg0: i32) -> (i32, i32) {
    %c0_i32 = arith.constant 0 : i32
    %c0_i32_0 = arith.constant 0 : i32
    return %arg0, %c0_i32 : i32, i32
  }
}

module attributes {stable_mosaic.version = 11 : i64} {
  func.func @_conv3x3_stats_kernel(%arg0: i32, %arg1: memref<4x1x9x9x8xf32, #tpu.memory_space<vmem>>, %arg2: memref<9x8x8xf32, #tpu.memory_space<vmem>>, %arg3: memref<1x64x8xf32, #tpu.memory_space<vmem>>, %arg4: memref<1x1x8xf32, #tpu.memory_space<vmem>>, %arg5: memref<1x1x8xf32, #tpu.memory_space<vmem>>) attributes {dimension_semantics = [#tpu.dimension_semantics<parallel>], iteration_bounds = array<i64: 2>, scalar_prefetch = 0 : i64, scratch_operands = 0 : i64, tpu.core_type = #tpu.core_type<tc>, window_params = [{transform_indices = @transform_0, window_bounds = array<i64: 4, 1, 9, 9, 8>}, {pipeline_mode = #tpu.pipeline_mode<synchronous>, transform_indices = @transform_1, window_bounds = array<i64: 9, 8, 8>}, {transform_indices = @transform_2, window_bounds = array<i64: 1, 64, 8>}, {transform_indices = @transform_3, window_bounds = array<i64: 1, 1, 8>}, {transform_indices = @transform_4, window_bounds = array<i64: 1, 1, 8>}]} {
    %cst = arith.constant 0.000000e+00 : f32
    %0 = vector.broadcast %cst : f32 to vector<64x8xf32>
    %c0 = arith.constant 0 : index
    %c0_0 = arith.constant 0 : index
    %c0_1 = arith.constant 0 : index
    %c0_2 = arith.constant 0 : index
    %c0_3 = arith.constant 0 : index
    %1 = vector.load %arg1[%c0, %c0_0, %c0_1, %c0_2, %c0_3] : memref<4x1x9x9x8xf32, #tpu.memory_space<vmem>>, vector<1x1x8x8x8xf32>
    %2 = vector.shape_cast %1 : vector<1x1x8x8x8xf32> to vector<8x8x8xf32>
    %3 = vector.shape_cast %2 : vector<8x8x8xf32> to vector<64x8xf32>
    %c0_4 = arith.constant 0 : index
    %c0_5 = arith.constant 0 : index
    %c0_6 = arith.constant 0 : index
    %4 = vector.load %arg2[%c0_4, %c0_5, %c0_6] : memref<9x8x8xf32, #tpu.memory_space<vmem>>, vector<1x8x8xf32>
    %5 = vector.shape_cast %4 : vector<1x8x8xf32> to vector<8x8xf32>
    %cst_7 = arith.constant dense<0.000000e+00> : vector<64x8xf32>
    %6 = tpu.matmul %3, %5, %cst_7 {dimension_numbers = #tpu.dot_dimension_numbers<[1], [0], [0], [1], [0, 0, 1, 1], [], []>} : vector<64x8xf32>, vector<8x8xf32>, vector<64x8xf32> -> vector<64x8xf32>
    %7 = arith.addf %0, %6 : vector<64x8xf32>
    %c1 = arith.constant 1 : index
    %c0_8 = arith.constant 0 : index
    %c0_9 = arith.constant 0 : index
    %c0_10 = arith.constant 0 : index
    %c0_11 = arith.constant 0 : index
    %8 = vector.load %arg1[%c1, %c0_8, %c0_9, %c0_10, %c0_11] : memref<4x1x9x9x8xf32, #tpu.memory_space<vmem>>, vector<1x1x8x8x8xf32>
    %9 = vector.shape_cast %8 : vector<1x1x8x8x8xf32> to vector<8x8x8xf32>
    %10 = vector.shape_cast %9 : vector<8x8x8xf32> to vector<64x8xf32>
    %c1_12 = arith.constant 1 : index
    %c0_13 = arith.constant 0 : index
    %c0_14 = arith.constant 0 : index
    %11 = vector.load %arg2[%c1_12, %c0_13, %c0_14] : memref<9x8x8xf32, #tpu.memory_space<vmem>>, vector<1x8x8xf32>
    %12 = vector.shape_cast %11 : vector<1x8x8xf32> to vector<8x8xf32>
    %cst_15 = arith.constant dense<0.000000e+00> : vector<64x8xf32>
    %13 = tpu.matmul %10, %12, %cst_15 {dimension_numbers = #tpu.dot_dimension_numbers<[1], [0], [0], [1], [0, 0, 1, 1], [], []>} : vector<64x8xf32>, vector<8x8xf32>, vector<64x8xf32> -> vector<64x8xf32>
    %14 = arith.addf %7, %13 : vector<64x8xf32>
    %c0_16 = arith.constant 0 : index
    %c0_17 = arith.constant 0 : index
    %c0_18 = arith.constant 0 : index
    %c1_19 = arith.constant 1 : index
    %c0_20 = arith.constant 0 : index
    %15 = vector.load %arg1[%c0_16, %c0_17, %c0_18, %c1_19, %c0_20] : memref<4x1x9x9x8xf32, #tpu.memory_space<vmem>>, vector<1x1x8x8x8xf32>
    %16 = vector.shape_cast %15 : vector<1x1x8x8x8xf32> to vector<8x8x8xf32>
    %17 = vector.shape_cast %16 : vector<8x8x8xf32> to vector<64x8xf32>
    %c2 = arith.constant 2 : index
    %c0_21 = arith.constant 0 : index
    %c0_22 = arith.constant 0 : index
    %18 = vector.load %arg2[%c2, %c0_21, %c0_22] : memref<9x8x8xf32, #tpu.memory_space<vmem>>, vector<1x8x8xf32>
    %19 = vector.shape_cast %18 : vector<1x8x8xf32> to vector<8x8xf32>
    %cst_23 = arith.constant dense<0.000000e+00> : vector<64x8xf32>
    %20 = tpu.matmul %17, %19, %cst_23 {dimension_numbers = #tpu.dot_dimension_numbers<[1], [0], [0], [1], [0, 0, 1, 1], [], []>} : vector<64x8xf32>, vector<8x8xf32>, vector<64x8xf32> -> vector<64x8xf32>
    %21 = arith.addf %14, %20 : vector<64x8xf32>
    %c2_24 = arith.constant 2 : index
    %c0_25 = arith.constant 0 : index
    %c0_26 = arith.constant 0 : index
    %c0_27 = arith.constant 0 : index
    %c0_28 = arith.constant 0 : index
    %22 = vector.load %arg1[%c2_24, %c0_25, %c0_26, %c0_27, %c0_28] : memref<4x1x9x9x8xf32, #tpu.memory_space<vmem>>, vector<1x1x8x8x8xf32>
    %23 = vector.shape_cast %22 : vector<1x1x8x8x8xf32> to vector<8x8x8xf32>
    %24 = vector.shape_cast %23 : vector<8x8x8xf32> to vector<64x8xf32>
    %c3 = arith.constant 3 : index
    %c0_29 = arith.constant 0 : index
    %c0_30 = arith.constant 0 : index
    %25 = vector.load %arg2[%c3, %c0_29, %c0_30] : memref<9x8x8xf32, #tpu.memory_space<vmem>>, vector<1x8x8xf32>
    %26 = vector.shape_cast %25 : vector<1x8x8xf32> to vector<8x8xf32>
    %cst_31 = arith.constant dense<0.000000e+00> : vector<64x8xf32>
    %27 = tpu.matmul %24, %26, %cst_31 {dimension_numbers = #tpu.dot_dimension_numbers<[1], [0], [0], [1], [0, 0, 1, 1], [], []>} : vector<64x8xf32>, vector<8x8xf32>, vector<64x8xf32> -> vector<64x8xf32>
    %28 = arith.addf %21, %27 : vector<64x8xf32>
    %c3_32 = arith.constant 3 : index
    %c0_33 = arith.constant 0 : index
    %c0_34 = arith.constant 0 : index
    %c0_35 = arith.constant 0 : index
    %c0_36 = arith.constant 0 : index
    %29 = vector.load %arg1[%c3_32, %c0_33, %c0_34, %c0_35, %c0_36] : memref<4x1x9x9x8xf32, #tpu.memory_space<vmem>>, vector<1x1x8x8x8xf32>
    %30 = vector.shape_cast %29 : vector<1x1x8x8x8xf32> to vector<8x8x8xf32>
    %31 = vector.shape_cast %30 : vector<8x8x8xf32> to vector<64x8xf32>
    %c4 = arith.constant 4 : index
    %c0_37 = arith.constant 0 : index
    %c0_38 = arith.constant 0 : index
    %32 = vector.load %arg2[%c4, %c0_37, %c0_38] : memref<9x8x8xf32, #tpu.memory_space<vmem>>, vector<1x8x8xf32>
    %33 = vector.shape_cast %32 : vector<1x8x8xf32> to vector<8x8xf32>
    %cst_39 = arith.constant dense<0.000000e+00> : vector<64x8xf32>
    %34 = tpu.matmul %31, %33, %cst_39 {dimension_numbers = #tpu.dot_dimension_numbers<[1], [0], [0], [1], [0, 0, 1, 1], [], []>} : vector<64x8xf32>, vector<8x8xf32>, vector<64x8xf32> -> vector<64x8xf32>
    %35 = arith.addf %28, %34 : vector<64x8xf32>
    %c2_40 = arith.constant 2 : index
    %c0_41 = arith.constant 0 : index
    %c0_42 = arith.constant 0 : index
    %c1_43 = arith.constant 1 : index
    %c0_44 = arith.constant 0 : index
    %36 = vector.load %arg1[%c2_40, %c0_41, %c0_42, %c1_43, %c0_44] : memref<4x1x9x9x8xf32, #tpu.memory_space<vmem>>, vector<1x1x8x8x8xf32>
    %37 = vector.shape_cast %36 : vector<1x1x8x8x8xf32> to vector<8x8x8xf32>
    %38 = vector.shape_cast %37 : vector<8x8x8xf32> to vector<64x8xf32>
    %c5 = arith.constant 5 : index
    %c0_45 = arith.constant 0 : index
    %c0_46 = arith.constant 0 : index
    %39 = vector.load %arg2[%c5, %c0_45, %c0_46] : memref<9x8x8xf32, #tpu.memory_space<vmem>>, vector<1x8x8xf32>
    %40 = vector.shape_cast %39 : vector<1x8x8xf32> to vector<8x8xf32>
    %cst_47 = arith.constant dense<0.000000e+00> : vector<64x8xf32>
    %41 = tpu.matmul %38, %40, %cst_47 {dimension_numbers = #tpu.dot_dimension_numbers<[1], [0], [0], [1], [0, 0, 1, 1], [], []>} : vector<64x8xf32>, vector<8x8xf32>, vector<64x8xf32> -> vector<64x8xf32>
    %42 = arith.addf %35, %41 : vector<64x8xf32>
    %c0_48 = arith.constant 0 : index
    %c0_49 = arith.constant 0 : index
    %c1_50 = arith.constant 1 : index
    %c0_51 = arith.constant 0 : index
    %c0_52 = arith.constant 0 : index
    %43 = vector.load %arg1[%c0_48, %c0_49, %c1_50, %c0_51, %c0_52] : memref<4x1x9x9x8xf32, #tpu.memory_space<vmem>>, vector<1x1x8x8x8xf32>
    %44 = vector.shape_cast %43 : vector<1x1x8x8x8xf32> to vector<8x8x8xf32>
    %45 = vector.shape_cast %44 : vector<8x8x8xf32> to vector<64x8xf32>
    %c6 = arith.constant 6 : index
    %c0_53 = arith.constant 0 : index
    %c0_54 = arith.constant 0 : index
    %46 = vector.load %arg2[%c6, %c0_53, %c0_54] : memref<9x8x8xf32, #tpu.memory_space<vmem>>, vector<1x8x8xf32>
    %47 = vector.shape_cast %46 : vector<1x8x8xf32> to vector<8x8xf32>
    %cst_55 = arith.constant dense<0.000000e+00> : vector<64x8xf32>
    %48 = tpu.matmul %45, %47, %cst_55 {dimension_numbers = #tpu.dot_dimension_numbers<[1], [0], [0], [1], [0, 0, 1, 1], [], []>} : vector<64x8xf32>, vector<8x8xf32>, vector<64x8xf32> -> vector<64x8xf32>
    %49 = arith.addf %42, %48 : vector<64x8xf32>
    %c1_56 = arith.constant 1 : index
    %c0_57 = arith.constant 0 : index
    %c1_58 = arith.constant 1 : index
    %c0_59 = arith.constant 0 : index
    %c0_60 = arith.constant 0 : index
    %50 = vector.load %arg1[%c1_56, %c0_57, %c1_58, %c0_59, %c0_60] : memref<4x1x9x9x8xf32, #tpu.memory_space<vmem>>, vector<1x1x8x8x8xf32>
    %51 = vector.shape_cast %50 : vector<1x1x8x8x8xf32> to vector<8x8x8xf32>
    %52 = vector.shape_cast %51 : vector<8x8x8xf32> to vector<64x8xf32>
    %c7 = arith.constant 7 : index
    %c0_61 = arith.constant 0 : index
    %c0_62 = arith.constant 0 : index
    %53 = vector.load %arg2[%c7, %c0_61, %c0_62] : memref<9x8x8xf32, #tpu.memory_space<vmem>>, vector<1x8x8xf32>
    %54 = vector.shape_cast %53 : vector<1x8x8xf32> to vector<8x8xf32>
    %cst_63 = arith.constant dense<0.000000e+00> : vector<64x8xf32>
    %55 = tpu.matmul %52, %54, %cst_63 {dimension_numbers = #tpu.dot_dimension_numbers<[1], [0], [0], [1], [0, 0, 1, 1], [], []>} : vector<64x8xf32>, vector<8x8xf32>, vector<64x8xf32> -> vector<64x8xf32>
    %56 = arith.addf %49, %55 : vector<64x8xf32>
    %c0_64 = arith.constant 0 : index
    %c0_65 = arith.constant 0 : index
    %c1_66 = arith.constant 1 : index
    %c1_67 = arith.constant 1 : index
    %c0_68 = arith.constant 0 : index
    %57 = vector.load %arg1[%c0_64, %c0_65, %c1_66, %c1_67, %c0_68] : memref<4x1x9x9x8xf32, #tpu.memory_space<vmem>>, vector<1x1x8x8x8xf32>
    %58 = vector.shape_cast %57 : vector<1x1x8x8x8xf32> to vector<8x8x8xf32>
    %59 = vector.shape_cast %58 : vector<8x8x8xf32> to vector<64x8xf32>
    %c8 = arith.constant 8 : index
    %c0_69 = arith.constant 0 : index
    %c0_70 = arith.constant 0 : index
    %60 = vector.load %arg2[%c8, %c0_69, %c0_70] : memref<9x8x8xf32, #tpu.memory_space<vmem>>, vector<1x8x8xf32>
    %61 = vector.shape_cast %60 : vector<1x8x8xf32> to vector<8x8xf32>
    %cst_71 = arith.constant dense<0.000000e+00> : vector<64x8xf32>
    %62 = tpu.matmul %59, %61, %cst_71 {dimension_numbers = #tpu.dot_dimension_numbers<[1], [0], [0], [1], [0, 0, 1, 1], [], []>} : vector<64x8xf32>, vector<8x8xf32>, vector<64x8xf32> -> vector<64x8xf32>
    %63 = arith.addf %56, %62 : vector<64x8xf32>
    %64 = vector.shape_cast %63 : vector<64x8xf32> to vector<1x64x8xf32>
    %c0_72 = arith.constant 0 : index
    %c0_73 = arith.constant 0 : index
    %c0_74 = arith.constant 0 : index
    %65 = vector.load %arg3[%c0_72, %c0_73, %c0_74] : memref<1x64x8xf32, #tpu.memory_space<vmem>>, vector<1x64x8xf32>
    tpu.vector_store %arg3[%c0_72, %c0_73, %c0_74], %64 {strides = array<i32>} : memref<1x64x8xf32, #tpu.memory_space<vmem>>, vector<1x64x8xf32>,
    %cst_75 = arith.constant dense<0.000000e+00> : vector<8xf32>
    %66 = vector.multi_reduction <add>, %63, %cst_75 [0] : vector<64x8xf32> to vector<8xf32>
    %67 = vector.shape_cast %66 : vector<8xf32> to vector<1x8xf32>
    %68 = vector.shape_cast %67 : vector<1x8xf32> to vector<1x1x8xf32>
    %c0_76 = arith.constant 0 : index
    %c0_77 = arith.constant 0 : index
    %c0_78 = arith.constant 0 : index
    %69 = vector.load %arg4[%c0_76, %c0_77, %c0_78] : memref<1x1x8xf32, #tpu.memory_space<vmem>>, vector<1x1x8xf32>
    tpu.vector_store %arg4[%c0_76, %c0_77, %c0_78], %68 {strides = array<i32>} : memref<1x1x8xf32, #tpu.memory_space<vmem>>, vector<1x1x8xf32>,
    %70 = arith.mulf %63, %63 : vector<64x8xf32>
    %cst_79 = arith.constant dense<0.000000e+00> : vector<8xf32>
    %71 = vector.multi_reduction <add>, %70, %cst_79 [0] : vector<64x8xf32> to vector<8xf32>
    %72 = vector.shape_cast %71 : vector<8xf32> to vector<1x8xf32>
    %73 = vector.shape_cast %72 : vector<1x8xf32> to vector<1x1x8xf32>
    %c0_80 = arith.constant 0 : index
    %c0_81 = arith.constant 0 : index
    %c0_82 = arith.constant 0 : index
    %74 = vector.load %arg5[%c0_80, %c0_81, %c0_82] : memref<1x1x8xf32, #tpu.memory_space<vmem>>, vector<1x1x8xf32>
    tpu.vector_store %arg5[%c0_80, %c0_81, %c0_82], %73 {strides = array<i32>} : memref<1x1x8xf32, #tpu.memory_space<vmem>>, vector<1x1x8xf32>,
    return
  }
  func.func @transform_0(%arg0: i32) -> (i32, i32, i32, i32, i32) {
    %c0_i32 = arith.constant 0 : i32
    %c0_i32_0 = arith.constant 0 : i32
    %c0_i32_1 = arith.constant 0 : i32
    %c0_i32_2 = arith.constant 0 : i32
    %c0_i32_3 = arith.constant 0 : i32
    return %c0_i32, %arg0, %c0_i32_0, %c0_i32_1, %c0_i32_2 : i32, i32, i32, i32, i32
  }
  func.func @transform_1(%arg0: i32) -> (i32, i32, i32) {
    %c0_i32 = arith.constant 0 : i32
    %c0_i32_0 = arith.constant 0 : i32
    %c0_i32_1 = arith.constant 0 : i32
    %c0_i32_2 = arith.constant 0 : i32
    return %c0_i32, %c0_i32_0, %c0_i32_1 : i32, i32, i32
  }
  func.func @transform_2(%arg0: i32) -> (i32, i32, i32) {
    %c0_i32 = arith.constant 0 : i32
    %c0_i32_0 = arith.constant 0 : i32
    %c0_i32_1 = arith.constant 0 : i32
    return %arg0, %c0_i32, %c0_i32_0 : i32, i32, i32
  }
  func.func @transform_3(%arg0: i32) -> (i32, i32, i32) {
    %c0_i32 = arith.constant 0 : i32
    %c0_i32_0 = arith.constant 0 : i32
    %c0_i32_1 = arith.constant 0 : i32
    return %arg0, %c0_i32, %c0_i32_0 : i32, i32, i32
  }
  func.func @transform_4(%arg0: i32) -> (i32, i32, i32) {
    %c0_i32 = arith.constant 0 : i32
    %c0_i32_0 = arith.constant 0 : i32
    %c0_i32_1 = arith.constant 0 : i32
    return %arg0, %c0_i32, %c0_i32_0 : i32, i32, i32
  }
}

module attributes {stable_mosaic.version = 11 : i64} {
  func.func @_bn_matmul_stats_kernel(%arg0: i32, %arg1: memref<128x8xf32, #tpu.memory_space<vmem>>, %arg2: memref<1x8xf32, #tpu.memory_space<vmem>>, %arg3: memref<1x8xf32, #tpu.memory_space<vmem>>, %arg4: memref<8x32xf32, #tpu.memory_space<vmem>>, %arg5: memref<128x32xf32, #tpu.memory_space<vmem>>, %arg6: memref<1x1x32xf32, #tpu.memory_space<vmem>>, %arg7: memref<1x1x32xf32, #tpu.memory_space<vmem>>) attributes {dimension_semantics = [#tpu.dimension_semantics<parallel>], iteration_bounds = array<i64: 1>, scalar_prefetch = 0 : i64, scratch_operands = 0 : i64, tpu.core_type = #tpu.core_type<tc>, window_params = [{transform_indices = @transform_0, window_bounds = array<i64: 128, 8>}, {pipeline_mode = #tpu.pipeline_mode<synchronous>, transform_indices = @transform_1, window_bounds = array<i64: 1, 8>}, {pipeline_mode = #tpu.pipeline_mode<synchronous>, transform_indices = @transform_2, window_bounds = array<i64: 1, 8>}, {pipeline_mode = #tpu.pipeline_mode<synchronous>, transform_indices = @transform_3, window_bounds = array<i64: 8, 32>}, {transform_indices = @transform_4, window_bounds = array<i64: 128, 32>}, {transform_indices = @transform_5, window_bounds = array<i64: 1, 1, 32>}, {transform_indices = @transform_6, window_bounds = array<i64: 1, 1, 32>}]} {
    %c0 = arith.constant 0 : index
    %c0_0 = arith.constant 0 : index
    %0 = vector.load %arg1[%c0, %c0_0] : memref<128x8xf32, #tpu.memory_space<vmem>>, vector<128x8xf32>
    %c0_1 = arith.constant 0 : index
    %c0_2 = arith.constant 0 : index
    %1 = vector.load %arg2[%c0_1, %c0_2] : memref<1x8xf32, #tpu.memory_space<vmem>>, vector<1x8xf32>
    %2 = vector.broadcast %1 : vector<1x8xf32> to vector<128x8xf32>
    %3 = arith.mulf %0, %2 : vector<128x8xf32>
    %c0_3 = arith.constant 0 : index
    %c0_4 = arith.constant 0 : index
    %4 = vector.load %arg3[%c0_3, %c0_4] : memref<1x8xf32, #tpu.memory_space<vmem>>, vector<1x8xf32>
    %5 = vector.broadcast %4 : vector<1x8xf32> to vector<128x8xf32>
    %6 = arith.addf %3, %5 : vector<128x8xf32>
    %cst = arith.constant 0.000000e+00 : f32
    %7 = vector.broadcast %cst : f32 to vector<128x8xf32>
    %8 = arith.maximumf %6, %7 : vector<128x8xf32>
    %c0_5 = arith.constant 0 : index
    %c0_6 = arith.constant 0 : index
    %9 = vector.load %arg4[%c0_5, %c0_6] : memref<8x32xf32, #tpu.memory_space<vmem>>, vector<8x32xf32>
    %cst_7 = arith.constant dense<0.000000e+00> : vector<128x32xf32>
    %10 = tpu.matmul %8, %9, %cst_7 {dimension_numbers = #tpu.dot_dimension_numbers<[1], [0], [0], [1], [0, 0, 1, 1], [], []>} : vector<128x8xf32>, vector<8x32xf32>, vector<128x32xf32> -> vector<128x32xf32>
    %c0_8 = arith.constant 0 : index
    %c0_9 = arith.constant 0 : index
    %11 = vector.load %arg5[%c0_8, %c0_9] : memref<128x32xf32, #tpu.memory_space<vmem>>, vector<128x32xf32>
    tpu.vector_store %arg5[%c0_8, %c0_9], %10 {strides = array<i32>} : memref<128x32xf32, #tpu.memory_space<vmem>>, vector<128x32xf32>,
    %cst_10 = arith.constant dense<0.000000e+00> : vector<32xf32>
    %12 = vector.multi_reduction <add>, %10, %cst_10 [0] : vector<128x32xf32> to vector<32xf32>
    %13 = vector.shape_cast %12 : vector<32xf32> to vector<1x32xf32>
    %14 = vector.shape_cast %13 : vector<1x32xf32> to vector<1x1x32xf32>
    %c0_11 = arith.constant 0 : index
    %c0_12 = arith.constant 0 : index
    %c0_13 = arith.constant 0 : index
    %15 = vector.load %arg6[%c0_11, %c0_12, %c0_13] : memref<1x1x32xf32, #tpu.memory_space<vmem>>, vector<1x1x32xf32>
    tpu.vector_store %arg6[%c0_11, %c0_12, %c0_13], %14 {strides = array<i32>} : memref<1x1x32xf32, #tpu.memory_space<vmem>>, vector<1x1x32xf32>,
    %16 = arith.mulf %10, %10 : vector<128x32xf32>
    %cst_14 = arith.constant dense<0.000000e+00> : vector<32xf32>
    %17 = vector.multi_reduction <add>, %16, %cst_14 [0] : vector<128x32xf32> to vector<32xf32>
    %18 = vector.shape_cast %17 : vector<32xf32> to vector<1x32xf32>
    %19 = vector.shape_cast %18 : vector<1x32xf32> to vector<1x1x32xf32>
    %c0_15 = arith.constant 0 : index
    %c0_16 = arith.constant 0 : index
    %c0_17 = arith.constant 0 : index
    %20 = vector.load %arg7[%c0_15, %c0_16, %c0_17] : memref<1x1x32xf32, #tpu.memory_space<vmem>>, vector<1x1x32xf32>
    tpu.vector_store %arg7[%c0_15, %c0_16, %c0_17], %19 {strides = array<i32>} : memref<1x1x32xf32, #tpu.memory_space<vmem>>, vector<1x1x32xf32>,
    return
  }
  func.func @transform_0(%arg0: i32) -> (i32, i32) {
    %c0_i32 = arith.constant 0 : i32
    %c0_i32_0 = arith.constant 0 : i32
    return %arg0, %c0_i32 : i32, i32
  }
  func.func @transform_1(%arg0: i32) -> (i32, i32) {
    %c0_i32 = arith.constant 0 : i32
    %c0_i32_0 = arith.constant 0 : i32
    %c0_i32_1 = arith.constant 0 : i32
    return %c0_i32, %c0_i32_0 : i32, i32
  }
  func.func @transform_2(%arg0: i32) -> (i32, i32) {
    %c0_i32 = arith.constant 0 : i32
    %c0_i32_0 = arith.constant 0 : i32
    %c0_i32_1 = arith.constant 0 : i32
    return %c0_i32, %c0_i32_0 : i32, i32
  }
  func.func @transform_3(%arg0: i32) -> (i32, i32) {
    %c0_i32 = arith.constant 0 : i32
    %c0_i32_0 = arith.constant 0 : i32
    %c0_i32_1 = arith.constant 0 : i32
    return %c0_i32, %c0_i32_0 : i32, i32
  }
  func.func @transform_4(%arg0: i32) -> (i32, i32) {
    %c0_i32 = arith.constant 0 : i32
    %c0_i32_0 = arith.constant 0 : i32
    return %arg0, %c0_i32 : i32, i32
  }
  func.func @transform_5(%arg0: i32) -> (i32, i32, i32) {
    %c0_i32 = arith.constant 0 : i32
    %c0_i32_0 = arith.constant 0 : i32
    %c0_i32_1 = arith.constant 0 : i32
    return %arg0, %c0_i32, %c0_i32_0 : i32, i32, i32
  }
  func.func @transform_6(%arg0: i32) -> (i32, i32, i32) {
    %c0_i32 = arith.constant 0 : i32
    %c0_i32_0 = arith.constant 0 : i32
    %c0_i32_1 = arith.constant 0 : i32
    return %arg0, %c0_i32, %c0_i32_0 : i32, i32, i32
  }
}

module attributes {stable_mosaic.version = 11 : i64} {
  func.func @_bn_matmul_stats_kernel(%arg0: i32, %arg1: memref<128x16xf32, #tpu.memory_space<vmem>>, %arg2: memref<1x16xf32, #tpu.memory_space<vmem>>, %arg3: memref<1x16xf32, #tpu.memory_space<vmem>>, %arg4: memref<16x32xf32, #tpu.memory_space<vmem>>, %arg5: memref<128x32xf32, #tpu.memory_space<vmem>>, %arg6: memref<1x1x32xf32, #tpu.memory_space<vmem>>, %arg7: memref<1x1x32xf32, #tpu.memory_space<vmem>>) attributes {dimension_semantics = [#tpu.dimension_semantics<parallel>], iteration_bounds = array<i64: 1>, scalar_prefetch = 0 : i64, scratch_operands = 0 : i64, tpu.core_type = #tpu.core_type<tc>, window_params = [{transform_indices = @transform_0, window_bounds = array<i64: 128, 16>}, {pipeline_mode = #tpu.pipeline_mode<synchronous>, transform_indices = @transform_1, window_bounds = array<i64: 1, 16>}, {pipeline_mode = #tpu.pipeline_mode<synchronous>, transform_indices = @transform_2, window_bounds = array<i64: 1, 16>}, {pipeline_mode = #tpu.pipeline_mode<synchronous>, transform_indices = @transform_3, window_bounds = array<i64: 16, 32>}, {transform_indices = @transform_4, window_bounds = array<i64: 128, 32>}, {transform_indices = @transform_5, window_bounds = array<i64: 1, 1, 32>}, {transform_indices = @transform_6, window_bounds = array<i64: 1, 1, 32>}]} {
    %c0 = arith.constant 0 : index
    %c0_0 = arith.constant 0 : index
    %0 = vector.load %arg1[%c0, %c0_0] : memref<128x16xf32, #tpu.memory_space<vmem>>, vector<128x16xf32>
    %c0_1 = arith.constant 0 : index
    %c0_2 = arith.constant 0 : index
    %1 = vector.load %arg2[%c0_1, %c0_2] : memref<1x16xf32, #tpu.memory_space<vmem>>, vector<1x16xf32>
    %2 = vector.broadcast %1 : vector<1x16xf32> to vector<128x16xf32>
    %3 = arith.mulf %0, %2 : vector<128x16xf32>
    %c0_3 = arith.constant 0 : index
    %c0_4 = arith.constant 0 : index
    %4 = vector.load %arg3[%c0_3, %c0_4] : memref<1x16xf32, #tpu.memory_space<vmem>>, vector<1x16xf32>
    %5 = vector.broadcast %4 : vector<1x16xf32> to vector<128x16xf32>
    %6 = arith.addf %3, %5 : vector<128x16xf32>
    %c0_5 = arith.constant 0 : index
    %c0_6 = arith.constant 0 : index
    %7 = vector.load %arg4[%c0_5, %c0_6] : memref<16x32xf32, #tpu.memory_space<vmem>>, vector<16x32xf32>
    %cst = arith.constant dense<0.000000e+00> : vector<128x32xf32>
    %8 = tpu.matmul %6, %7, %cst {dimension_numbers = #tpu.dot_dimension_numbers<[1], [0], [0], [1], [0, 0, 1, 1], [], []>} : vector<128x16xf32>, vector<16x32xf32>, vector<128x32xf32> -> vector<128x32xf32>
    %c0_7 = arith.constant 0 : index
    %c0_8 = arith.constant 0 : index
    %9 = vector.load %arg5[%c0_7, %c0_8] : memref<128x32xf32, #tpu.memory_space<vmem>>, vector<128x32xf32>
    tpu.vector_store %arg5[%c0_7, %c0_8], %8 {strides = array<i32>} : memref<128x32xf32, #tpu.memory_space<vmem>>, vector<128x32xf32>,
    %cst_9 = arith.constant dense<0.000000e+00> : vector<32xf32>
    %10 = vector.multi_reduction <add>, %8, %cst_9 [0] : vector<128x32xf32> to vector<32xf32>
    %11 = vector.shape_cast %10 : vector<32xf32> to vector<1x32xf32>
    %12 = vector.shape_cast %11 : vector<1x32xf32> to vector<1x1x32xf32>
    %c0_10 = arith.constant 0 : index
    %c0_11 = arith.constant 0 : index
    %c0_12 = arith.constant 0 : index
    %13 = vector.load %arg6[%c0_10, %c0_11, %c0_12] : memref<1x1x32xf32, #tpu.memory_space<vmem>>, vector<1x1x32xf32>
    tpu.vector_store %arg6[%c0_10, %c0_11, %c0_12], %12 {strides = array<i32>} : memref<1x1x32xf32, #tpu.memory_space<vmem>>, vector<1x1x32xf32>,
    %14 = arith.mulf %8, %8 : vector<128x32xf32>
    %cst_13 = arith.constant dense<0.000000e+00> : vector<32xf32>
    %15 = vector.multi_reduction <add>, %14, %cst_13 [0] : vector<128x32xf32> to vector<32xf32>
    %16 = vector.shape_cast %15 : vector<32xf32> to vector<1x32xf32>
    %17 = vector.shape_cast %16 : vector<1x32xf32> to vector<1x1x32xf32>
    %c0_14 = arith.constant 0 : index
    %c0_15 = arith.constant 0 : index
    %c0_16 = arith.constant 0 : index
    %18 = vector.load %arg7[%c0_14, %c0_15, %c0_16] : memref<1x1x32xf32, #tpu.memory_space<vmem>>, vector<1x1x32xf32>
    tpu.vector_store %arg7[%c0_14, %c0_15, %c0_16], %17 {strides = array<i32>} : memref<1x1x32xf32, #tpu.memory_space<vmem>>, vector<1x1x32xf32>,
    return
  }
  func.func @transform_0(%arg0: i32) -> (i32, i32) {
    %c0_i32 = arith.constant 0 : i32
    %c0_i32_0 = arith.constant 0 : i32
    return %arg0, %c0_i32 : i32, i32
  }
  func.func @transform_1(%arg0: i32) -> (i32, i32) {
    %c0_i32 = arith.constant 0 : i32
    %c0_i32_0 = arith.constant 0 : i32
    %c0_i32_1 = arith.constant 0 : i32
    return %c0_i32, %c0_i32_0 : i32, i32
  }
  func.func @transform_2(%arg0: i32) -> (i32, i32) {
    %c0_i32 = arith.constant 0 : i32
    %c0_i32_0 = arith.constant 0 : i32
    %c0_i32_1 = arith.constant 0 : i32
    return %c0_i32, %c0_i32_0 : i32, i32
  }
  func.func @transform_3(%arg0: i32) -> (i32, i32) {
    %c0_i32 = arith.constant 0 : i32
    %c0_i32_0 = arith.constant 0 : i32
    %c0_i32_1 = arith.constant 0 : i32
    return %c0_i32, %c0_i32_0 : i32, i32
  }
  func.func @transform_4(%arg0: i32) -> (i32, i32) {
    %c0_i32 = arith.constant 0 : i32
    %c0_i32_0 = arith.constant 0 : i32
    return %arg0, %c0_i32 : i32, i32
  }
  func.func @transform_5(%arg0: i32) -> (i32, i32, i32) {
    %c0_i32 = arith.constant 0 : i32
    %c0_i32_0 = arith.constant 0 : i32
    %c0_i32_1 = arith.constant 0 : i32
    return %arg0, %c0_i32, %c0_i32_0 : i32, i32, i32
  }
  func.func @transform_6(%arg0: i32) -> (i32, i32, i32) {
    %c0_i32 = arith.constant 0 : i32
    %c0_i32_0 = arith.constant 0 : i32
    %c0_i32_1 = arith.constant 0 : i32
    return %arg0, %c0_i32, %c0_i32_0 : i32, i32, i32
  }
}

module attributes {stable_mosaic.version = 11 : i64} {
  func.func @_dual_affine_add_relu_kernel(%arg0: i32, %arg1: memref<128x32xf32, #tpu.memory_space<vmem>>, %arg2: memref<1x32xf32, #tpu.memory_space<vmem>>, %arg3: memref<1x32xf32, #tpu.memory_space<vmem>>, %arg4: memref<128x32xf32, #tpu.memory_space<vmem>>, %arg5: memref<1x32xf32, #tpu.memory_space<vmem>>, %arg6: memref<1x32xf32, #tpu.memory_space<vmem>>, %arg7: memref<128x32xf32, #tpu.memory_space<vmem>>) attributes {dimension_semantics = [#tpu.dimension_semantics<parallel>], iteration_bounds = array<i64: 1>, scalar_prefetch = 0 : i64, scratch_operands = 0 : i64, tpu.core_type = #tpu.core_type<tc>, window_params = [{transform_indices = @transform_0, window_bounds = array<i64: 128, 32>}, {pipeline_mode = #tpu.pipeline_mode<synchronous>, transform_indices = @transform_1, window_bounds = array<i64: 1, 32>}, {pipeline_mode = #tpu.pipeline_mode<synchronous>, transform_indices = @transform_2, window_bounds = array<i64: 1, 32>}, {transform_indices = @transform_3, window_bounds = array<i64: 128, 32>}, {pipeline_mode = #tpu.pipeline_mode<synchronous>, transform_indices = @transform_4, window_bounds = array<i64: 1, 32>}, {pipeline_mode = #tpu.pipeline_mode<synchronous>, transform_indices = @transform_5, window_bounds = array<i64: 1, 32>}, {transform_indices = @transform_6, window_bounds = array<i64: 128, 32>}]} {
    %c0 = arith.constant 0 : index
    %c0_0 = arith.constant 0 : index
    %0 = vector.load %arg1[%c0, %c0_0] : memref<128x32xf32, #tpu.memory_space<vmem>>, vector<128x32xf32>
    %c0_1 = arith.constant 0 : index
    %c0_2 = arith.constant 0 : index
    %1 = vector.load %arg2[%c0_1, %c0_2] : memref<1x32xf32, #tpu.memory_space<vmem>>, vector<1x32xf32>
    %2 = vector.broadcast %1 : vector<1x32xf32> to vector<128x32xf32>
    %3 = arith.mulf %0, %2 : vector<128x32xf32>
    %c0_3 = arith.constant 0 : index
    %c0_4 = arith.constant 0 : index
    %4 = vector.load %arg3[%c0_3, %c0_4] : memref<1x32xf32, #tpu.memory_space<vmem>>, vector<1x32xf32>
    %5 = vector.broadcast %4 : vector<1x32xf32> to vector<128x32xf32>
    %6 = arith.addf %3, %5 : vector<128x32xf32>
    %c0_5 = arith.constant 0 : index
    %c0_6 = arith.constant 0 : index
    %7 = vector.load %arg4[%c0_5, %c0_6] : memref<128x32xf32, #tpu.memory_space<vmem>>, vector<128x32xf32>
    %c0_7 = arith.constant 0 : index
    %c0_8 = arith.constant 0 : index
    %8 = vector.load %arg5[%c0_7, %c0_8] : memref<1x32xf32, #tpu.memory_space<vmem>>, vector<1x32xf32>
    %9 = vector.broadcast %8 : vector<1x32xf32> to vector<128x32xf32>
    %10 = arith.mulf %7, %9 : vector<128x32xf32>
    %11 = arith.addf %6, %10 : vector<128x32xf32>
    %c0_9 = arith.constant 0 : index
    %c0_10 = arith.constant 0 : index
    %12 = vector.load %arg6[%c0_9, %c0_10] : memref<1x32xf32, #tpu.memory_space<vmem>>, vector<1x32xf32>
    %13 = vector.broadcast %12 : vector<1x32xf32> to vector<128x32xf32>
    %14 = arith.addf %11, %13 : vector<128x32xf32>
    %cst = arith.constant 0.000000e+00 : f32
    %15 = vector.broadcast %cst : f32 to vector<128x32xf32>
    %16 = arith.maximumf %14, %15 : vector<128x32xf32>
    %c0_11 = arith.constant 0 : index
    %c0_12 = arith.constant 0 : index
    %17 = vector.load %arg7[%c0_11, %c0_12] : memref<128x32xf32, #tpu.memory_space<vmem>>, vector<128x32xf32>
    tpu.vector_store %arg7[%c0_11, %c0_12], %16 {strides = array<i32>} : memref<128x32xf32, #tpu.memory_space<vmem>>, vector<128x32xf32>,
    return
  }
  func.func @transform_0(%arg0: i32) -> (i32, i32) {
    %c0_i32 = arith.constant 0 : i32
    %c0_i32_0 = arith.constant 0 : i32
    return %arg0, %c0_i32 : i32, i32
  }
  func.func @transform_1(%arg0: i32) -> (i32, i32) {
    %c0_i32 = arith.constant 0 : i32
    %c0_i32_0 = arith.constant 0 : i32
    %c0_i32_1 = arith.constant 0 : i32
    return %c0_i32, %c0_i32_0 : i32, i32
  }
  func.func @transform_2(%arg0: i32) -> (i32, i32) {
    %c0_i32 = arith.constant 0 : i32
    %c0_i32_0 = arith.constant 0 : i32
    %c0_i32_1 = arith.constant 0 : i32
    return %c0_i32, %c0_i32_0 : i32, i32
  }
  func.func @transform_3(%arg0: i32) -> (i32, i32) {
    %c0_i32 = arith.constant 0 : i32
    %c0_i32_0 = arith.constant 0 : i32
    return %arg0, %c0_i32 : i32, i32
  }
  func.func @transform_4(%arg0: i32) -> (i32, i32) {
    %c0_i32 = arith.constant 0 : i32
    %c0_i32_0 = arith.constant 0 : i32
    %c0_i32_1 = arith.constant 0 : i32
    return %c0_i32, %c0_i32_0 : i32, i32
  }
  func.func @transform_5(%arg0: i32) -> (i32, i32) {
    %c0_i32 = arith.constant 0 : i32
    %c0_i32_0 = arith.constant 0 : i32
    %c0_i32_1 = arith.constant 0 : i32
    return %c0_i32, %c0_i32_0 : i32, i32
  }
  func.func @transform_6(%arg0: i32) -> (i32, i32) {
    %c0_i32 = arith.constant 0 : i32
    %c0_i32_0 = arith.constant 0 : i32
    return %arg0, %c0_i32 : i32, i32
  }
}

</mosaic_0001>

<bundles_post_ra>
// kernel: bottleneck_forward.7
= control target key start
LH: loop header
LB: loop body
LE: loop exit
PB: predicated region body
PF: predicated region fallthrough
CT: control target
= control target key end

     0   :  { %vm278_vm0 = vcmask 64512   ;;  %s958_s0 = inlined_call_operand.vmem [shape: f32[512,8], index: 0, kind: input, shape index: {}]   ;;  %s959_s1 = inlined_call_operand.vmem [shape: f32[1,8], index: 1, kind: input, shape index: {}]   ;;  %s960_s2 = inlined_call_operand.vmem [shape: f32[1,8], index: 2, kind: input, shape index: {}]   ;;  %s961_s3 = inlined_call_operand.vmem [shape: f32[512,8], index: 3, kind: output, shape index: {}]  }
   0x1   :  { %v14_v0 = vld [vmem:[%s958_s0] sm:$0xff]  ;;  %v15_v3 = vld [vmem:[%s958_s0 + $0x8] sm:$0xff]  ;;  %v16_v6 = vld [vmem:[%s958_s0 + $0x10] sm:$0xff] }
   0x2   :  { %v375_v1 = vld [vmem:[%s959_s1] ss:$0 sm:$0xff]  ;;  %v17_v7 = vld [vmem:[%s958_s0 + $0x18] sm:$0xff]  ;;  %v19_v12 = vld [vmem:[%s958_s0 + $0x28] sm:$0xff] }
   0x3   :  { %v380_v2 = vld [vmem:[%s960_s2] ss:$0 sm:$0xff]  ;;  %v82_v4 = vmul.f32 %v375_v1, %v14_v0  ;;  %v83_v5 = vmul.f32 %v375_v1, %v15_v3  ;;  %v84_v9 = vmul.f32 %v375_v1, %v16_v6  ;;  %v85_v10 = vmul.f32 %v375_v1, %v17_v7  ;;  %v20_v13 = vld [vmem:[%s958_s0 + $0x30] sm:$0xff]  ;;  %v21_v14 = vld [vmem:[%s958_s0 + $0x38] sm:$0xff] }
   0x4   :  { %v18_v8 = vld [vmem:[%s958_s0 + $0x20] sm:$0xff]  ;;  %v87_v17 = vmul.f32 %v375_v1, %v19_v12  ;;  %v88_v18 = vmul.f32 %v375_v1, %v20_v13  ;;  %v89_v22 = vmul.f32 %v375_v1, %v21_v14  ;;  %v23_v24 = vld [vmem:[%s958_s0 + $0x48] sm:$0xff]  ;;  %v24_v29 = vld [vmem:[%s958_s0 + $0x50] sm:$0xff] }
   0x5   :  { %v86_v11 = vmul.f32 %v375_v1, %v18_v8  ;;  %v150_v15 = vadd.f32 %v380_v2, %v82_v4  ;;  %v151_v16 = vadd.f32 %v380_v2, %v83_v5  ;;  %v152_v19 = vadd.f32 %v380_v2, %v84_v9  ;;  %v22_v23 = vld [vmem:[%s958_s0 + $0x40] sm:$0xff]  ;;  %v25_v30 = vld [vmem:[%s958_s0 + $0x58] sm:$0xff]  ;;  %v27_v35 = vld [vmem:[%s958_s0 + $0x68] sm:$0xff] }
   0x6   :  { %v153_v20 = vadd.f32 %v380_v2, %v85_v10  ;;  %v155_v27 = vadd.f32 %v380_v2, %v87_v17  ;;  %v156_v28 = vadd.f32 %v380_v2, %v88_v18  ;;  %v26_v31 = vld [vmem:[%s958_s0 + $0x60] sm:$0xff]  ;;  %v157_v34 = vadd.f32 %v380_v2, %v89_v22  ;;  %v28_v36 = vld [vmem:[%s958_s0 + $0x70] sm:$0xff]  ;;  %v29_v41 = vld [vmem:[%s958_s0 + $0x78] sm:$0xff] }
   0x7   :  { %v154_v21 = vadd.f32 %v380_v2, %v86_v11  ;;  %v214_v25 = vmax.f32 %v150_v15, 0.0  ;;  %v215_v26 = vmax.f32 %v151_v16, 0.0  ;;  %v216_v32 = vmax.f32 %v152_v19, 0.0  ;;  %v30_v54 = vld [vmem:[%s958_s0 + $0x80] sm:$0xff]  ;;  %v31_v55 = vld [vmem:[%s958_s0 + $0x88] sm:$0xff]  ;;  %v32_v58 = vld [vmem:[%s958_s0 + $0x90] sm:$0xff] }
   0x8   :  { %v217_v33 = vmax.f32 %v153_v20, 0.0  ;;  %v219_v38 = vmax.f32 %v155_v27, 0.0  ;;  %v90_v39 = vmul.f32 %v375_v1, %v22_v23  ;;  %v91_v40 = vmul.f32 %v375_v1, %v23_v24  ;;  %v33_v59 = vld [vmem:[%s958_s0 + $0x98] sm:$0xff]  ;;  %v34_v62 = vld [vmem:[%s958_s0 + $0xa0] sm:$0xff]  ;;  %v35_v5 = vld [vmem:[%s958_s0 + $0xa8] sm:$0xff] }
   0x9   :  { %279 = vst.msk [vmem:[%s961_s3] sm:$0xff] %vm278_vm0, %v214_v25  ;;  %v218_v37 = vmax.f32 %v154_v21, 0.0  ;;  %v220_v42 = vmax.f32 %v156_v28, 0.0  ;;  %v92_v43 = vmul.f32 %v375_v1, %v24_v29  ;;  %v93_v44 = vmul.f32 %v375_v1, %v25_v30  ;;  %v36_v10 = vld [vmem:[%s958_s0 + $0xb0] sm:$0xff]  ;;  %v37_v14 = vld [vmem:[%s958_s0 + $0xb8] sm:$0xff]  ;;  %v38_v18 = vld [vmem:[%s958_s0 + $0xc0] sm:$0xff] }
   0xa   :  { %280 = vst.msk [vmem:[%s961_s3 + $0x8] sm:$0xff] %vm278_vm0, %v215_v26  ;;  %v94_v45 = vmul.f32 %v375_v1, %v26_v31  ;;  %v158_v46 = vadd.f32 %v380_v2, %v90_v39  ;;  %v159_v47 = vadd.f32 %v380_v2, %v91_v40  ;;  %v95_v48 = vmul.f32 %v375_v1, %v27_v35  ;;  %v39_v22 = vld [vmem:[%s958_s0 + $0xc8] sm:$0xff]  ;;  %v40_v26 = vld [vmem:[%s958_s0 + $0xd0] sm:$0xff]  ;;  %v41_v30 = vld [vmem:[%s958_s0 + $0xd8] sm:$0xff] }
   0xb   :  { %281 = vst.msk [vmem:[%s961_s3 + $0x10] sm:$0xff] %vm278_vm0, %v216_v32  ;;  %v96_v49 = vmul.f32 %v375_v1, %v28_v36  ;;  %v221_v50 = vmax.f32 %v157_v34, 0.0  ;;  %v160_v51 = vadd.f32 %v380_v2, %v92_v43  ;;  %v161_v52 = vadd.f32 %v380_v2, %v93_v44  ;;  %v42_v34 = vld [vmem:[%s958_s0 + $0xe0] sm:$0xff] }
   0xc   :  { %282 = vst.msk [vmem:[%s961_s3 + $0x18] sm:$0xff] %vm278_vm0, %v217_v33  ;;  %v97_v53 = vmul.f32 %v375_v1, %v29_v41  ;;  %v222_v56 = vmax.f32 %v158_v46, 0.0  ;;  %v162_v57 = vadd.f32 %v380_v2, %v94_v45  ;;  %v223_v60 = vmax.f32 %v159_v47, 0.0  ;;  %v45_v46 = vld [vmem:[%s958_s0 + $0xf8] sm:$0xff] }
   0xd   :  { %283 = vst.msk [vmem:[%s961_s3 + $0x20] sm:$0xff] %vm278_vm0, %v218_v37  ;;  %v163_v61 = vadd.f32 %v380_v2, %v95_v48  ;;  %v224_v63 = vmax.f32 %v160_v51, 0.0  ;;  %v164_v0 = vadd.f32 %v380_v2, %v96_v49  ;;  %v98_v3 = vmul.f32 %v375_v1, %v30_v54  ;;  %v47_v54 = vld [vmem:[%s958_s0 + $0x108] sm:$0xff] }
   0xe   :  { %284 = vst.msk [vmem:[%s961_s3 + $0x28] sm:$0xff] %vm278_vm0, %v219_v38  ;;  %v99_v4 = vmul.f32 %v375_v1, %v31_v55  ;;  %v225_v6 = vmax.f32 %v161_v52, 0.0  ;;  %v165_v7 = vadd.f32 %v380_v2, %v97_v53  ;;  %v100_v8 = vmul.f32 %v375_v1, %v32_v58  ;;  %v43_v38 = vld [vmem:[%s958_s0 + $0xe8] sm:$0xff]  ;;  %v48_v58 = vld [vmem:[%s958_s0 + $0x110] sm:$0xff] }
   0xf   :  { %285 = vst.msk [vmem:[%s961_s3 + $0x30] sm:$0xff] %vm278_vm0, %v220_v42  ;;  %v101_v9 = vmul.f32 %v375_v1, %v33_v59  ;;  %v226_v11 = vmax.f32 %v162_v57, 0.0  ;;  %v166_v12 = vadd.f32 %v380_v2, %v98_v3  ;;  %v102_v13 = vmul.f32 %v375_v1, %v34_v62  ;;  %v44_v42 = vld [vmem:[%s958_s0 + $0xf0] sm:$0xff]  ;;  %v49_v62 = vld [vmem:[%s958_s0 + $0x118] sm:$0xff] }
  0x10   :  { %286 = vst.msk [vmem:[%s961_s3 + $0x38] sm:$0xff] %vm278_vm0, %v221_v50  ;;  %v227_v15 = vmax.f32 %v163_v61, 0.0  ;;  %v167_v16 = vadd.f32 %v380_v2, %v99_v4  ;;  %v103_v17 = vmul.f32 %v375_v1, %v35_v5  ;;  %v228_v19 = vmax.f32 %v164_v0, 0.0  ;;  %v46_v50 = vld [vmem:[%s958_s0 + $0x100] sm:$0xff] }
  0x11   :  { %287 = vst.msk [vmem:[%s961_s3 + $0x40] sm:$0xff] %vm278_vm0, %v222_v56  ;;  %v168_v20 = vadd.f32 %v380_v2, %v100_v8  ;;  %v104_v21 = vmul.f32 %v375_v1, %v36_v10  ;;  %v229_v23 = vmax.f32 %v165_v7, 0.0  ;;  %v169_v24 = vadd.f32 %v380_v2, %v101_v9  ;;  %v50_v4 = vld [vmem:[%s958_s0 + $0x120] sm:$0xff]  ;;  %v51_v8 = vld [vmem:[%s958_s0 + $0x128] sm:$0xff] }
  0x12   :  { %288 = vst.msk [vmem:[%s961_s3 + $0x48] sm:$0xff] %vm278_vm0, %v223_v60  ;;  %v105_v25 = vmul.f32 %v375_v1, %v37_v14  ;;  %v230_v27 = vmax.f32 %v166_v12, 0.0  ;;  %v170_v28 = vadd.f32 %v380_v2, %v102_v13  ;;  %v106_v29 = vmul.f32 %v375_v1, %v38_v18  ;;  %v52_v12 = vld [vmem:[%s958_s0 + $0x130] sm:$0xff] }
  0x13   :  { %289 = vst.msk [vmem:[%s961_s3 + $0x50] sm:$0xff] %vm278_vm0, %v224_v63  ;;  %v231_v31 = vmax.f32 %v167_v16, 0.0  ;;  %v171_v32 = vadd.f32 %v380_v2, %v103_v17  ;;  %v107_v33 = vmul.f32 %v375_v1, %v39_v22  ;;  %v232_v35 = vmax.f32 %v168_v20, 0.0  ;;  %v53_v16 = vld [vmem:[%s958_s0 + $0x138] sm:$0xff]  ;;  %v54_v20 = vld [vmem:[%s958_s0 + $0x140] sm:$0xff] }
  0x14   :  { %290 = vst.msk [vmem:[%s961_s3 + $0x58] sm:$0xff] %vm278_vm0, %v225_v6  ;;  %v172_v36 = vadd.f32 %v380_v2, %v104_v21  ;;  %v108_v37 = vmul.f32 %v375_v1, %v40_v26  ;;  %v233_v39 = vmax.f32 %v169_v24, 0.0  ;;  %v173_v40 = vadd.f32 %v380_v2, %v105_v25  ;;  %v55_v24 = vld [vmem:[%s958_s0 + $0x148] sm:$0xff] }
  0x15   :  { %291 = vst.msk [vmem:[%s961_s3 + $0x60] sm:$0xff] %vm278_vm0, %v226_v11  ;;  %v109_v41 = vmul.f32 %v375_v1, %v41_v30  ;;  %v234_v43 = vmax.f32 %v170_v28, 0.0  ;;  %v174_v44 = vadd.f32 %v380_v2, %v106_v29  ;;  %v110_v45 = vmul.f32 %v375_v1, %v42_v34  ;;  %v56_v28 = vld [vmem:[%s958_s0 + $0x150] sm:$0xff] }
  0x16   :  { %292 = vst.msk [vmem:[%s961_s3 + $0x68] sm:$0xff] %vm278_vm0, %v227_v15  ;;  %v235_v47 = vmax.f32 %v171_v32, 0.0  ;;  %v175_v48 = vadd.f32 %v380_v2, %v107_v33  ;;  %v111_v49 = vmul.f32 %v375_v1, %v43_v38  ;;  %v236_v51 = vmax.f32 %v172_v36, 0.0  ;;  %v57_v32 = vld [vmem:[%s958_s0 + $0x158] sm:$0xff]  ;;  %v58_v36 = vld [vmem:[%s958_s0 + $0x160] sm:$0xff] }
  0x17   :  { %293 = vst.msk [vmem:[%s961_s3 + $0x70] sm:$0xff] %vm278_vm0, %v228_v19  ;;  %v176_v52 = vadd.f32 %v380_v2, %v108_v37  ;;  %v112_v53 = vmul.f32 %v375_v1, %v44_v42  ;;  %v237_v55 = vmax.f32 %v173_v40, 0.0  ;;  %v177_v56 = vadd.f32 %v380_v2, %v109_v41  ;;  %v59_v40 = vld [vmem:[%s958_s0 + $0x168] sm:$0xff] }
  0x18   :  { %294 = vst.msk [vmem:[%s961_s3 + $0x78] sm:$0xff] %vm278_vm0, %v229_v23  ;;  %v113_v57 = vmul.f32 %v375_v1, %v45_v46  ;;  %v238_v59 = vmax.f32 %v174_v44, 0.0  ;;  %v178_v60 = vadd.f32 %v380_v2, %v110_v45  ;;  %v114_v61 = vmul.f32 %v375_v1, %v46_v50  ;;  %v60_v44 = vld [vmem:[%s958_s0 + $0x170] sm:$0xff] }
  0x19   :  { %295 = vst.msk [vmem:[%s961_s3 + $0x80] sm:$0xff] %vm278_vm0, %v230_v27  ;;  %v239_v63 = vmax.f32 %v175_v48, 0.0  ;;  %v179_v0 = vadd.f32 %v380_v2, %v111_v49  ;;  %v115_v3 = vmul.f32 %v375_v1, %v47_v54  ;;  %v240_v5 = vmax.f32 %v176_v52, 0.0  ;;  %v61_v48 = vld [vmem:[%s958_s0 + $0x178] sm:$0xff]  ;;  %v62_v52 = vld [vmem:[%s958_s0 + $0x180] sm:$0xff] }
  0x1a   :  { %296 = vst.msk [vmem:[%s961_s3 + $0x88] sm:$0xff] %vm278_vm0, %v231_v31  ;;  %v180_v6 = vadd.f32 %v380_v2, %v112_v53  ;;  %v116_v7 = vmul.f32 %v375_v1, %v48_v58  ;;  %v241_v9 = vmax.f32 %v177_v56, 0.0  ;;  %v181_v10 = vadd.f32 %v380_v2, %v113_v57  ;;  %v63_v56 = vld [vmem:[%s958_s0 + $0x188] sm:$0xff] }
  0x1b   :  { %297 = vst.msk [vmem:[%s961_s3 + $0x90] sm:$0xff] %vm278_vm0, %v232_v35  ;;  %v117_v11 = vmul.f32 %v375_v1, %v49_v62  ;;  %v242_v13 = vmax.f32 %v178_v60, 0.0  ;;  %v182_v14 = vadd.f32 %v380_v2, %v114_v61  ;;  %v118_v15 = vmul.f32 %v375_v1, %v50_v4  ;;  %v64_v60 = vld [vmem:[%s958_s0 + $0x190] sm:$0xff] }
  0x1c   :  { %298 = vst.msk [vmem:[%s961_s3 + $0x98] sm:$0xff] %vm278_vm0, %v233_v39  ;;  %v243_v17 = vmax.f32 %v179_v0, 0.0  ;;  %v183_v18 = vadd.f32 %v380_v2, %v115_v3  ;;  %v119_v19 = vmul.f32 %v375_v1, %v51_v8  ;;  %v244_v21 = vmax.f32 %v180_v6, 0.0  ;;  %v65_v0 = vld [vmem:[%s958_s0 + $0x198] sm:$0xff] }
  0x1d   :  { %299 = vst.msk [vmem:[%s961_s3 + $0xa0] sm:$0xff] %vm278_vm0, %v234_v43  ;;  %v184_v22 = vadd.f32 %v380_v2, %v116_v7  ;;  %v120_v23 = vmul.f32 %v375_v1, %v52_v12  ;;  %v245_v25 = vmax.f32 %v181_v10, 0.0  ;;  %v185_v26 = vadd.f32 %v380_v2, %v117_v11  ;;  %v77_v3 = vld [vmem:[%s958_s0 + $0x1f8] sm:$0xff]  ;;  %v66_v7 = vld [vmem:[%s958_s0 + $0x1a0] sm:$0xff]  ;;  %v67_v11 = vld [vmem:[%s958_s0 + $0x1a8] sm:$0xff] }
  0x1e   :  { %300 = vst.msk [vmem:[%s961_s3 + $0xa8] sm:$0xff] %vm278_vm0, %v235_v47  ;;  %v121_v27 = vmul.f32 %v375_v1, %v53_v16  ;;  %v246_v29 = vmax.f32 %v182_v14, 0.0  ;;  %v186_v30 = vadd.f32 %v380_v2, %v118_v15  ;;  %v122_v31 = vmul.f32 %v375_v1, %v54_v20  ;;  %v68_v15 = vld [vmem:[%s958_s0 + $0x1b0] sm:$0xff]  ;;  %v69_v20 = vld [vmem:[%s958_s0 + $0x1b8] sm:$0xff] }
  0x1f   :  { %301 = vst.msk [vmem:[%s961_s3 + $0xb0] sm:$0xff] %vm278_vm0, %v236_v51  ;;  %v247_v33 = vmax.f32 %v183_v18, 0.0  ;;  %v187_v34 = vadd.f32 %v380_v2, %v119_v19  ;;  %v123_v35 = vmul.f32 %v375_v1, %v55_v24  ;;  %v248_v37 = vmax.f32 %v184_v22, 0.0  ;;  %v70_v24 = vld [vmem:[%s958_s0 + $0x1c0] sm:$0xff] }
  0x20   :  { %302 = vst.msk [vmem:[%s961_s3 + $0xb8] sm:$0xff] %vm278_vm0, %v237_v55  ;;  %v188_v38 = vadd.f32 %v380_v2, %v120_v23  ;;  %v124_v39 = vmul.f32 %v375_v1, %v56_v28  ;;  %v249_v41 = vmax.f32 %v185_v26, 0.0  ;;  %v189_v42 = vadd.f32 %v380_v2, %v121_v27 }
  0x21   :  { %303 = vst.msk [vmem:[%s961_s3 + $0xc0] sm:$0xff] %vm278_vm0, %v238_v59  ;;  %v125_v43 = vmul.f32 %v375_v1, %v57_v32  ;;  %v250_v45 = vmax.f32 %v186_v30, 0.0  ;;  %v190_v46 = vadd.f32 %v380_v2, %v122_v31  ;;  %v126_v47 = vmul.f32 %v375_v1, %v58_v36 }
  0x22   :  { %304 = vst.msk [vmem:[%s961_s3 + $0xc8] sm:$0xff] %vm278_vm0, %v239_v63  ;;  %v251_v49 = vmax.f32 %v187_v34, 0.0  ;;  %v191_v50 = vadd.f32 %v380_v2, %v123_v35  ;;  %v127_v51 = vmul.f32 %v375_v1, %v59_v40  ;;  %v252_v53 = vmax.f32 %v188_v38, 0.0 }
  0x23   :  { %305 = vst.msk [vmem:[%s961_s3 + $0xd0] sm:$0xff] %vm278_vm0, %v240_v5  ;;  %v192_v54 = vadd.f32 %v380_v2, %v124_v39  ;;  %v128_v55 = vmul.f32 %v375_v1, %v60_v44  ;;  %v253_v57 = vmax.f32 %v189_v42, 0.0  ;;  %v193_v58 = vadd.f32 %v380_v2, %v125_v43 }
  0x24   :  { %306 = vst.msk [vmem:[%s961_s3 + $0xd8] sm:$0xff] %vm278_vm0, %v241_v9  ;;  %v129_v59 = vmul.f32 %v375_v1, %v61_v48  ;;  %v254_v61 = vmax.f32 %v190_v46, 0.0  ;;  %v194_v62 = vadd.f32 %v380_v2, %v126_v47  ;;  %v130_v63 = vmul.f32 %v375_v1, %v62_v52 }
  0x25   :  { %307 = vst.msk [vmem:[%s961_s3 + $0xe0] sm:$0xff] %vm278_vm0, %v242_v13  ;;  %v255_v4 = vmax.f32 %v191_v50, 0.0  ;;  %v195_v5 = vadd.f32 %v380_v2, %v127_v51  ;;  %v131_v6 = vmul.f32 %v375_v1, %v63_v56  ;;  %v256_v8 = vmax.f32 %v192_v54, 0.0 }
  0x26   :  { %308 = vst.msk [vmem:[%s961_s3 + $0xe8] sm:$0xff] %vm278_vm0, %v243_v17  ;;  %v196_v9 = vadd.f32 %v380_v2, %v128_v55  ;;  %v132_v10 = vmul.f32 %v375_v1, %v64_v60  ;;  %v257_v12 = vmax.f32 %v193_v58, 0.0  ;;  %v197_v13 = vadd.f32 %v380_v2, %v129_v59 }
  0x27   :  { %309 = vst.msk [vmem:[%s961_s3 + $0xf0] sm:$0xff] %vm278_vm0, %v244_v21  ;;  %v133_v14 = vmul.f32 %v375_v1, %v65_v0  ;;  %v145_v16 = vmul.f32 %v375_v1, %v77_v3  ;;  %v258_v17 = vmax.f32 %v194_v62, 0.0  ;;  %v198_v18 = vadd.f32 %v380_v2, %v130_v63 }
  0x28   :  { %310 = vst.msk [vmem:[%s961_s3 + $0xf8] sm:$0xff] %vm278_vm0, %v245_v25  ;;  %v134_v19 = vmul.f32 %v375_v1, %v66_v7  ;;  %v259_v21 = vmax.f32 %v195_v5, 0.0  ;;  %v199_v22 = vadd.f32 %v380_v2, %v131_v6  ;;  %v135_v23 = vmul.f32 %v375_v1, %v67_v11 }
  0x29   :  { %311 = vst.msk [vmem:[%s961_s3 + $0x100] sm:$0xff] %vm278_vm0, %v246_v29  ;;  %v827_v25 = vadd.f32 %v380_v2, %v145_v16  ;;  %v260_v26 = vmax.f32 %v196_v9, 0.0  ;;  %v200_v27 = vadd.f32 %v380_v2, %v132_v10  ;;  %v136_v28 = vmul.f32 %v375_v1, %v68_v15  ;;  %v71_v29 = vld [vmem:[%s958_s0 + $0x1c8] sm:$0xff] }
  0x2a   :  { %312 = vst.msk [vmem:[%s961_s3 + $0x108] sm:$0xff] %vm278_vm0, %v247_v33  ;;  %v261_v30 = vmax.f32 %v197_v13, 0.0  ;;  %v201_v31 = vadd.f32 %v380_v2, %v133_v14  ;;  %v137_v32 = vmul.f32 %v375_v1, %v69_v20  ;;  %v72_v33 = vld [vmem:[%s958_s0 + $0x1d0] sm:$0xff]  ;;  %v262_v34 = vmax.f32 %v198_v18, 0.0 }
  0x2b   :  { %313 = vst.msk [vmem:[%s961_s3 + $0x110] sm:$0xff] %vm278_vm0, %v248_v37  ;;  %v202_v35 = vadd.f32 %v380_v2, %v134_v19  ;;  %v138_v36 = vmul.f32 %v375_v1, %v70_v24  ;;  %v73_v37 = vld [vmem:[%s958_s0 + $0x1d8] sm:$0xff]  ;;  %v263_v38 = vmax.f32 %v199_v22, 0.0  ;;  %v203_v39 = vadd.f32 %v380_v2, %v135_v23 }
  0x2c   :  { %314 = vst.msk [vmem:[%s961_s3 + $0x118] sm:$0xff] %vm278_vm0, %v249_v41  ;;  %v139_v40 = vmul.f32 %v375_v1, %v71_v29  ;;  %v74_v41 = vld [vmem:[%s958_s0 + $0x1e0] sm:$0xff]  ;;  %v264_v42 = vmax.f32 %v200_v27, 0.0  ;;  %v204_v43 = vadd.f32 %v380_v2, %v136_v28  ;;  %v140_v44 = vmul.f32 %v375_v1, %v72_v33 }
  0x2d   :  { %315 = vst.msk [vmem:[%s961_s3 + $0x120] sm:$0xff] %vm278_vm0, %v250_v45  ;;  %v75_v45 = vld [vmem:[%s958_s0 + $0x1e8] sm:$0xff]  ;;  %v265_v46 = vmax.f32 %v201_v31, 0.0  ;;  %v205_v47 = vadd.f32 %v380_v2, %v137_v32  ;;  %v141_v48 = vmul.f32 %v375_v1, %v73_v37  ;;  %v266_v50 = vmax.f32 %v202_v35, 0.0 }
  0x2e   :  { %316 = vst.msk [vmem:[%s961_s3 + $0x128] sm:$0xff] %vm278_vm0, %v251_v49  ;;  %v76_v49 = vld [vmem:[%s958_s0 + $0x1f0] sm:$0xff]  ;;  %v206_v51 = vadd.f32 %v380_v2, %v138_v36  ;;  %v142_v52 = vmul.f32 %v375_v1, %v74_v41  ;;  %v207_v54 = vadd.f32 %v380_v2, %v139_v40  ;;  %v143_v55 = vmul.f32 %v375_v1, %v75_v45 }
  0x2f   :  { %317 = vst.msk [vmem:[%s961_s3 + $0x130] sm:$0xff] %vm278_vm0, %v252_v53  ;;  %v267_v53 = vmax.f32 %v203_v39, 0.0  ;;  %v268_v56 = vmax.f32 %v204_v43, 0.0  ;;  %v144_v58 = vmul.f32 %v375_v1, %v76_v49  ;;  %v269_v59 = vmax.f32 %v205_v47, 0.0 }
  0x30   :  { %318 = vst.msk [vmem:[%s961_s3 + $0x138] sm:$0xff] %vm278_vm0, %v253_v57  ;;  %v208_v57 = vadd.f32 %v380_v2, %v140_v44  ;;  %v209_v60 = vadd.f32 %v380_v2, %v141_v48  ;;  %v210_v62 = vadd.f32 %v380_v2, %v142_v52  ;;  %v271_v1 = vmax.f32 %v207_v54, 0.0 }
  0x31   :  { %319 = vst.msk [vmem:[%s961_s3 + $0x140] sm:$0xff] %vm278_vm0, %v254_v61  ;;  %v270_v61 = vmax.f32 %v206_v51, 0.0  ;;  %v211_v63 = vadd.f32 %v380_v2, %v143_v55  ;;  %v212_v3 = vadd.f32 %v380_v2, %v144_v58  ;;  %v277_v7 = vmax.f32 %v827_v25, 0.0 }
  0x32   :  { %320 = vst.msk [vmem:[%s961_s3 + $0x148] sm:$0xff] %vm278_vm0, %v255_v4  ;;  %v272_v0 = vmax.f32 %v208_v57, 0.0  ;;  %v273_v4 = vmax.f32 %v209_v60, 0.0  ;;  %v274_v5 = vmax.f32 %v210_v62, 0.0 }
  0x33   :  { %321 = vst.msk [vmem:[%s961_s3 + $0x150] sm:$0xff] %vm278_vm0, %v256_v8  ;;  %v275_v6 = vmax.f32 %v211_v63, 0.0  ;;  %v276_v2 = vmax.f32 %v212_v3, 0.0 }
  0x34   :  { %322 = vst.msk [vmem:[%s961_s3 + $0x158] sm:$0xff] %vm278_vm0, %v257_v12 }
  0x35   :  { %323 = vst.msk [vmem:[%s961_s3 + $0x160] sm:$0xff] %vm278_vm0, %v258_v17 }
  0x36   :  { %324 = vst.msk [vmem:[%s961_s3 + $0x168] sm:$0xff] %vm278_vm0, %v259_v21 }
  0x37   :  { %325 = vst.msk [vmem:[%s961_s3 + $0x170] sm:$0xff] %vm278_vm0, %v260_v26 }
  0x38   :  { %326 = vst.msk [vmem:[%s961_s3 + $0x178] sm:$0xff] %vm278_vm0, %v261_v30 }
  0x39   :  { %327 = vst.msk [vmem:[%s961_s3 + $0x180] sm:$0xff] %vm278_vm0, %v262_v34 }
  0x3a   :  { %328 = vst.msk [vmem:[%s961_s3 + $0x188] sm:$0xff] %vm278_vm0, %v263_v38 }
  0x3b   :  { %329 = vst.msk [vmem:[%s961_s3 + $0x190] sm:$0xff] %vm278_vm0, %v264_v42 }
  0x3c   :  { %330 = vst.msk [vmem:[%s961_s3 + $0x198] sm:$0xff] %vm278_vm0, %v265_v46 }
  0x3d   :  { %331 = vst.msk [vmem:[%s961_s3 + $0x1a0] sm:$0xff] %vm278_vm0, %v266_v50 }
  0x3e   :  { %332 = vst.msk [vmem:[%s961_s3 + $0x1a8] sm:$0xff] %vm278_vm0, %v267_v53 }
  0x3f   :  { %333 = vst.msk [vmem:[%s961_s3 + $0x1b0] sm:$0xff] %vm278_vm0, %v268_v56 }
  0x40   :  { %334 = vst.msk [vmem:[%s961_s3 + $0x1b8] sm:$0xff] %vm278_vm0, %v269_v59 }
  0x41   :  { %335 = vst.msk [vmem:[%s961_s3 + $0x1c0] sm:$0xff] %vm278_vm0, %v270_v61 }
  0x42   :  { %336 = vst.msk [vmem:[%s961_s3 + $0x1c8] sm:$0xff] %vm278_vm0, %v271_v1 }
  0x43   :  { %337 = vst.msk [vmem:[%s961_s3 + $0x1d0] sm:$0xff] %vm278_vm0, %v272_v0 }
  0x44   :  { %338 = vst.msk [vmem:[%s961_s3 + $0x1d8] sm:$0xff] %vm278_vm0, %v273_v4 }
  0x45   :  { %339 = vst.msk [vmem:[%s961_s3 + $0x1e0] sm:$0xff] %vm278_vm0, %v274_v5 }
  0x46   :  { %340 = vst.msk [vmem:[%s961_s3 + $0x1e8] sm:$0xff] %vm278_vm0, %v275_v6 }
  0x47   :  { %341 = vst.msk [vmem:[%s961_s3 + $0x1f0] sm:$0xff] %vm278_vm0, %v276_v2 }
  0x48   :  { %342 = vst.msk [vmem:[%s961_s3 + $0x1f8] sm:$0xff] %vm278_vm0, %v277_v7 }

// kernel: bottleneck_forward.6
= control target key start
LH: loop header
LB: loop body
LE: loop exit
PB: predicated region body
PF: predicated region fallthrough
CT: control target
= control target key end

     0   :  { %vm222_vm0 = vcmask 130048   ;;  %vm624_vm1 = vcmask 64512   ;;  %vm822_vm2 = vcmask 57344   ;;  %s2231_s3 = inlined_call_operand.vmem [shape: f32[16,8], index: 3, kind: input, shape index: {}]   ;;  %s2232_s0 = inlined_call_operand.vmem [shape: f32[512,16], index: 0, kind: input, shape index: {}]   ;;  %s2233_s1 = inlined_call_operand.vmem [shape: f32[1,16], index: 1, kind: input, shape index: {}]   ;;  %s2234_s2 = inlined_call_operand.vmem [shape: f32[1,16], index: 2, kind: input, shape index: {}]   ;;  %s2235_s4 = inlined_call_operand.vmem [shape: f32[512,8], index: 4, kind: output, shape index: {0}]   ;;  %s2236_s5 = inlined_call_operand.vmem [shape: f32[1,1,8], index: 5, kind: output, shape index: {1}]   ;;  %s2237_s6 = inlined_call_operand.vmem [shape: f32[1,1,8], index: 6, kind: output, shape index: {2}]  }
   0x1   :  { %v221_v0 = vld [vmem:[%s2231_s3 + $0x8] sm:$0xff]  ;;  %v220_v1 = vld [vmem:[%s2231_s3] sm:$0xff]  ;;  %v22_v15 = vld [vmem:[%s2232_s0 + $0x10] sm:$0xff] }
   0x2   :  { %v20_v2 = vld [vmem:[%s2232_s0] sm:$0xff]  ;;  %429 = vmatpush.msra.mxu0 %v221_v0  ;;  %1098 = vmatpush.msra.mxu1 %v221_v0  ;;  %v21_v7 = vld [vmem:[%s2232_s0 + $0x8] sm:$0xff]  ;;  %v38_v18 = vld [vmem:[%s2232_s0 + $0x90] sm:$0xff] }
   0x3   :  { %v1153_v3 = vld [vmem:[%s2233_s1] ss:$0 sm:$0xff]  ;;  %1099 = vmatpush.msra.mxu2 %v221_v0  ;;  %1100 = vmatpush.msra.mxu3 %v221_v0  ;;  %v37_v12 = vld [vmem:[%s2232_s0 + $0x88] sm:$0xff]  ;;  %v23_v21 = vld [vmem:[%s2232_s0 + $0x18] sm:$0xff] }
   0x4   :  { %v1158_v4 = vld [vmem:[%s2234_s2] ss:$0 sm:$0xff]  ;;  %430 = vmatpush.msra.mxu0 %v220_v1  ;;  %v88_v5 = vmul.f32 %v1153_v3, %v20_v2  ;;  %1101 = vmatpush.msra.mxu1 %v220_v1  ;;  %v89_v11 = vmul.f32 %v1153_v3, %v21_v7  ;;  %v105_v14 = vmul.f32 %v1153_v3, %v37_v12  ;;  %v39_v24 = vld [vmem:[%s2232_s0 + $0x98] sm:$0xff]  ;;  %v25_v36 = vld [vmem:[%s2232_s0 + $0x28] sm:$0xff] }
   0x5   :  { %v36_v6 = vld [vmem:[%s2232_s0 + $0x80] sm:$0xff]  ;;  %1102 = vmatpush.msra.mxu2 %v220_v1  ;;  %1103 = vmatpush.msra.mxu3 %v220_v1  ;;  %v90_v17 = vmul.f32 %v1153_v3, %v22_v15  ;;  %v106_v20 = vmul.f32 %v1153_v3, %v38_v18  ;;  %v91_v23 = vmul.f32 %v1153_v3, %v23_v21  ;;  %v53_v37 = vld [vmem:[%s2232_s0 + $0x108] sm:$0xff]  ;;  %v26_v45 = vld [vmem:[%s2232_s0 + $0x30] sm:$0xff] }
   0x6   :  { %v104_v8 = vmul.f32 %v1153_v3, %v36_v6  ;;  %v156_v9 = vadd.f32 %v1158_v4, %v88_v5  ;;  %v157_v13 = vadd.f32 %v1158_v4, %v89_v11  ;;  %v173_v16 = vadd.f32 %v1158_v4, %v105_v14  ;;  %v24_v27 = vld [vmem:[%s2232_s0 + $0x20] sm:$0xff]  ;;  %v41_v42 = vld [vmem:[%s2232_s0 + $0xa8] sm:$0xff]  ;;  %v54_v46 = vld [vmem:[%s2232_s0 + $0x110] sm:$0xff] }
   0x7   :  { %v158_v19 = vadd.f32 %v1158_v4, %v90_v17  ;;  %v174_v22 = vadd.f32 %v1158_v4, %v106_v20  ;;  %v159_v25 = vadd.f32 %v1158_v4, %v91_v23  ;;  %v107_v26 = vmul.f32 %v1153_v3, %v39_v24  ;;  %v52_v28 = vld [vmem:[%s2232_s0 + $0x100] sm:$0xff]  ;;  %v42_v51 = vld [vmem:[%s2232_s0 + $0xb0] sm:$0xff]  ;;  %v27_v54 = vld [vmem:[%s2232_s0 + $0x38] sm:$0xff] }
   0x8   :  { %v172_v10 = vadd.f32 %v1158_v4, %v104_v8  ;;  %1034 = vmatmul.msk.f32.vlgmr.msra.gmra.mxu0 %vm222_vm0, %v156_v9  ;;  %v120_v30 = vmul.f32 %v1153_v3, %v52_v28  ;;  %v92_v31 = vmul.f32 %v1153_v3, %v24_v27  ;;  %v40_v33 = vld [vmem:[%s2232_s0 + $0xa0] sm:$0xff]  ;;  %v121_v39 = vmul.f32 %v1153_v3, %v53_v37  ;;  %v55_v55 = vld [vmem:[%s2232_s0 + $0x118] sm:$0xff]  ;;  %v57_v14 = vld [vmem:[%s2232_s0 + $0x128] sm:$0xff] }
   0x9   :  { %v175_v29 = vadd.f32 %v1158_v4, %v107_v26  ;;  %v108_v35 = vmul.f32 %v1153_v3, %v40_v33  ;;  %v93_v40 = vmul.f32 %v1153_v3, %v25_v36  ;;  %v109_v44 = vmul.f32 %v1153_v3, %v41_v42  ;;  %v43_v60 = vld [vmem:[%s2232_s0 + $0xb8] sm:$0xff]  ;;  %v28_v63 = vld [vmem:[%s2232_s0 + $0x40] sm:$0xff]  ;;  %v69_v15 = vld [vmem:[%s2232_s0 + $0x188] sm:$0xff] }
   0xa   :  { %1050 = vmatmul.msk.f32.vlgmr.msra.gmra.mxu1 %vm222_vm0, %v172_v10  ;;  %v188_v32 = vadd.f32 %v1158_v4, %v120_v30  ;;  %v160_v34 = vadd.f32 %v1158_v4, %v92_v31  ;;  %v189_v41 = vadd.f32 %v1158_v4, %v121_v39  ;;  %v122_v48 = vmul.f32 %v1153_v3, %v54_v46  ;;  %v56_v0 = vld [vmem:[%s2232_s0 + $0x120] sm:$0xff]  ;;  %v58_v26 = vld [vmem:[%s2232_s0 + $0x130] sm:$0xff]  ;;  %v31_v37 = vld [vmem:[%s2232_s0 + $0x58] sm:$0xff] }
   0xb   :  { %v176_v38 = vadd.f32 %v1158_v4, %v108_v35  ;;  %v161_v43 = vadd.f32 %v1158_v4, %v93_v40  ;;  %v177_v47 = vadd.f32 %v1158_v4, %v109_v44  ;;  %v94_v49 = vmul.f32 %v1153_v3, %v26_v45  ;;  %v68_v1 = vld [vmem:[%s2232_s0 + $0x180] sm:$0xff]  ;;  %v70_v27 = vld [vmem:[%s2232_s0 + $0x190] sm:$0xff]  ;;  %v71_v39 = vld [vmem:[%s2232_s0 + $0x198] sm:$0xff] }
   0xc   :  { %1066 = vmatmul.msk.f32.vlgmr.msra.gmra.mxu2 %vm222_vm0, %v188_v32  ;;  %v190_v50 = vadd.f32 %v1158_v4, %v122_v48  ;;  %v110_v53 = vmul.f32 %v1153_v3, %v42_v51  ;;  %v123_v57 = vmul.f32 %v1153_v3, %v55_v55  ;;  %v95_v58 = vmul.f32 %v1153_v3, %v27_v54  ;;  %v44_v10 = vld [vmem:[%s2232_s0 + $0xc0] sm:$0xff]  ;;  %v47_v46 = vld [vmem:[%s2232_s0 + $0xd8] sm:$0xff] }
   0xd   :  { %v162_v52 = vadd.f32 %v1158_v4, %v94_v49  ;;  %v111_v62 = vmul.f32 %v1153_v3, %v43_v60  ;;  %v124_v5 = vmul.f32 %v1153_v3, %v56_v0  ;;  %v136_v6 = vmul.f32 %v1153_v3, %v68_v1  ;;  %v32_v49 = vld [vmem:[%s2232_s0 + $0x60] sm:$0xff] }
   0xe   :  { %v178_v56 = vadd.f32 %v1158_v4, %v110_v53  ;;  %v191_v59 = vadd.f32 %v1158_v4, %v123_v57  ;;  %v163_v61 = vadd.f32 %v1158_v4, %v95_v58  ;;  %v96_v7 = vmul.f32 %v1153_v3, %v28_v63  ;;  %v72_v51 = vld [vmem:[%s2232_s0 + $0x1a0] sm:$0xff]  ;;  %v73_v63 = vld [vmem:[%s2232_s0 + $0x1a8] sm:$0xff] }
   0xf   :  { %v179_v2 = vadd.f32 %v1158_v4, %v111_v62  ;;  %v192_v8 = vadd.f32 %v1158_v4, %v124_v5  ;;  %v204_v9 = vadd.f32 %v1158_v4, %v136_v6  ;;  %v112_v12 = vmul.f32 %v1153_v3, %v44_v10  ;;  %v48_v58 = vld [vmem:[%s2232_s0 + $0xe0] sm:$0xff]  ;;  %v61_v62 = vld [vmem:[%s2232_s0 + $0x148] sm:$0xff] }
  0x10   :  { %1035 = vmatmul.msk.f32.gmra.mxu0 %vm222_vm0, %v157_v13  ;;  %v164_v11 = vadd.f32 %v1158_v4, %v96_v7  ;;  %v29_v13 = vld [vmem:[%s2232_s0 + $0x48] sm:$0xff]  ;;  %v125_v17 = vmul.f32 %v1153_v3, %v57_v14  ;;  %v137_v18 = vmul.f32 %v1153_v3, %v69_v15  ;;  %v138_v30 = vmul.f32 %v1153_v3, %v70_v27 }
  0x11   :  { %1082 = vmatmul.msk.f32.vlgmr.msra.gmra.mxu3 %vm222_vm0, %v204_v9  ;;  %v139_v42 = vmul.f32 %v1153_v3, %v71_v39  ;;  %v115_v48 = vmul.f32 %v1153_v3, %v47_v46  ;;  %v140_v54 = vmul.f32 %v1153_v3, %v72_v51  ;;  %v100_v55 = vmul.f32 %v1153_v3, %v32_v49 }
  0x12   :  { %1051 = vmatmul.msk.f32.gmra.mxu1 %vm222_vm0, %v173_v16  ;;  %v180_v16 = vadd.f32 %v1158_v4, %v112_v12  ;;  %v193_v20 = vadd.f32 %v1158_v4, %v125_v17  ;;  %v205_v21 = vadd.f32 %v1158_v4, %v137_v18  ;;  %v206_v33 = vadd.f32 %v1158_v4, %v138_v30  ;;  %v62_v12 = vld [vmem:[%s2232_s0 + $0x150] sm:$0xff] }
  0x13   :  { %v207_v45 = vadd.f32 %v1158_v4, %v139_v42  ;;  %v208_v57 = vadd.f32 %v1158_v4, %v140_v54  ;;  %v116_v60 = vmul.f32 %v1153_v3, %v48_v58  ;;  %v129_v1 = vmul.f32 %v1153_v3, %v61_v62  ;;  %v78_v54 = vld [vmem:[%s2232_s0 + $0x1d0] sm:$0xff] }
  0x14   :  { %1067 = vmatmul.msk.f32.gmra.mxu2 %vm222_vm0, %v189_v41  ;;  %v130_v15 = vmul.f32 %v1153_v3, %v62_v12 }
  0x15   :  { %v184_v0 = vadd.f32 %v1158_v4, %v116_v60  ;;  %v197_v6 = vadd.f32 %v1158_v4, %v129_v1 }
  0x16   :  { %v198_v18 = vadd.f32 %v1158_v4, %v130_v15 }
  0x18   :  { %1036 = vmatmul.msk.f32.gmra.mxu0 %vm222_vm0, %v158_v19  ;;  %v97_v19 = vmul.f32 %v1153_v3, %v29_v13  ;;  %v74_v13 = vld [vmem:[%s2232_s0 + $0x1b0] sm:$0xff] }
  0x19   :  { %1083 = vmatmul.msk.f32.gmra.mxu3 %vm222_vm0, %v205_v21 }
  0x1a   :  { %1052 = vmatmul.msk.f32.gmra.mxu1 %vm222_vm0, %v174_v22  ;;  %v45_v22 = vld [vmem:[%s2232_s0 + $0xc8] sm:$0xff]  ;;  %v165_v23 = vadd.f32 %v1158_v4, %v97_v19 }
  0x1b   :  { %v113_v24 = vmul.f32 %v1153_v3, %v45_v22 }
  0x1c   :  { %1068 = vmatmul.msk.f32.gmra.mxu2 %vm222_vm0, %v190_v50  ;;  %v60_v50 = vld [vmem:[%s2232_s0 + $0x140] sm:$0xff] }
  0x1d   :  { %v181_v28 = vadd.f32 %v1158_v4, %v113_v24  ;;  %v128_v53 = vmul.f32 %v1153_v3, %v60_v50  ;;  %v63_v24 = vld [vmem:[%s2232_s0 + $0x158] sm:$0xff] }
  0x1e   :  { %v131_v27 = vmul.f32 %v1153_v3, %v63_v24 }
  0x20   :  { %1037 = vmatmul.msk.f32.gmra.mxu0 %vm222_vm0, %v159_v25  ;;  %v30_v25 = vld [vmem:[%s2232_s0 + $0x50] sm:$0xff]  ;;  %v199_v30 = vadd.f32 %v1158_v4, %v131_v27 }
  0x21   :  { %v98_v31 = vmul.f32 %v1153_v3, %v30_v25  ;;  %1084 = vmatmul.msk.f32.gmra.mxu3 %vm222_vm0, %v206_v33  ;;  %v75_v25 = vld [vmem:[%s2232_s0 + $0x1b8] sm:$0xff] }
  0x22   :  { %1053 = vmatmul.msk.f32.gmra.mxu1 %vm222_vm0, %v175_v29  ;;  %v126_v29 = vmul.f32 %v1153_v3, %v58_v26 }
  0x23   :  { %v166_v35 = vadd.f32 %v1158_v4, %v98_v31 }
  0x24   :  { %1069 = vmatmul.msk.f32.gmra.mxu2 %vm222_vm0, %v191_v59  ;;  %v194_v32 = vadd.f32 %v1158_v4, %v126_v29  ;;  %v168_v59 = vadd.f32 %v1158_v4, %v100_v55 }
  0x28   :  { %1038 = vmatmul.msk.f32.gmra.mxu0 %vm222_vm0, %v160_v34  ;;  %v46_v34 = vld [vmem:[%s2232_s0 + $0xd0] sm:$0xff] }
  0x29   :  { %v114_v36 = vmul.f32 %v1153_v3, %v46_v34  ;;  %1085 = vmatmul.msk.f32.gmra.mxu3 %vm222_vm0, %v207_v45 }
  0x2a   :  { %1054 = vmatmul.msk.f32.gmra.mxu1 %vm222_vm0, %v176_v38  ;;  %v59_v38 = vld [vmem:[%s2232_s0 + $0x138] sm:$0xff] }
  0x2b   :  { %v182_v40 = vadd.f32 %v1158_v4, %v114_v36  ;;  %v127_v41 = vmul.f32 %v1153_v3, %v59_v38  ;;  %v76_v36 = vld [vmem:[%s2232_s0 + $0x1c0] sm:$0xff] }
  0x2c   :  { %1070 = vmatmul.msk.f32.gmra.mxu2 %vm222_vm0, %v192_v8  ;;  %v49_v8 = vld [vmem:[%s2232_s0 + $0xe8] sm:$0xff]  ;;  %v144_v39 = vmul.f32 %v1153_v3, %v76_v36 }
  0x2d   :  { %v195_v44 = vadd.f32 %v1158_v4, %v127_v41  ;;  %v117_v10 = vmul.f32 %v1153_v3, %v49_v8 }
  0x2e   :  { %v212_v41 = vadd.f32 %v1158_v4, %v144_v39 }
  0x2f   :  { %v185_v14 = vadd.f32 %v1158_v4, %v117_v10 }
  0x30   :  { %1039 = vmatmul.msk.f32.gmra.mxu0 %vm222_vm0, %v161_v43  ;;  %v99_v43 = vmul.f32 %v1153_v3, %v31_v37 }
  0x31   :  { %1086 = vmatmul.msk.f32.gmra.mxu3 %vm222_vm0, %v208_v57 }
  0x32   :  { %1055 = vmatmul.msk.f32.gmra.mxu1 %vm222_vm0, %v177_v47  ;;  %v167_v47 = vadd.f32 %v1158_v4, %v99_v43  ;;  %v65_v43 = vld [vmem:[%s2232_s0 + $0x168] sm:$0xff] }
  0x33   :  { %v133_v46 = vmul.f32 %v1153_v3, %v65_v43 }
  0x34   :  { %1071 = vmatmul.msk.f32.gmra.mxu2 %vm222_vm0, %v193_v20  ;;  %v50_v20 = vld [vmem:[%s2232_s0 + $0xf0] sm:$0xff] }
  0x35   :  { %v118_v22 = vmul.f32 %v1153_v3, %v50_v20 }
  0x37   :  { %v186_v26 = vadd.f32 %v1158_v4, %v118_v22 }
  0x38   :  { %1040 = vmatmul.msk.f32.gmra.mxu0 %vm222_vm0, %v162_v52  ;;  %v183_v52 = vadd.f32 %v1158_v4, %v115_v48  ;;  %v201_v48 = vadd.f32 %v1158_v4, %v133_v46 }
  0x3a   :  { %1056 = vmatmul.msk.f32.gmra.mxu1 %vm222_vm0, %v178_v56  ;;  %v196_v56 = vadd.f32 %v1158_v4, %v128_v53  ;;  %v66_v53 = vld [vmem:[%s2232_s0 + $0x170] sm:$0xff] }
  0x3b   :  { %v134_v58 = vmul.f32 %v1153_v3, %v66_v53 }
  0x3c   :  { %1072 = vmatmul.msk.f32.gmra.mxu2 %vm222_vm0, %v194_v32  ;;  %v51_v32 = vld [vmem:[%s2232_s0 + $0xf8] sm:$0xff] }
  0x3d   :  { %v119_v34 = vmul.f32 %v1153_v3, %v51_v32 }
  0x3f   :  { %v187_v37 = vadd.f32 %v1158_v4, %v119_v34 }
  0x40   :  { %1041 = vmatmul.msk.f32.gmra.mxu0 %vm222_vm0, %v163_v61  ;;  %v33_v61 = vld [vmem:[%s2232_s0 + $0x68] sm:$0xff] }
  0x41   :  { %v101_v5 = vmul.f32 %v1153_v3, %v33_v61 }
  0x42   :  { %1057 = vmatmul.msk.f32.gmra.mxu1 %vm222_vm0, %v179_v2  ;;  %v141_v2 = vmul.f32 %v1153_v3, %v73_v63  ;;  %v202_v63 = vadd.f32 %v1158_v4, %v134_v58 }
  0x43   :  { %v169_v9 = vadd.f32 %v1158_v4, %v101_v5  ;;  %v67_v5 = vld [vmem:[%s2232_s0 + $0x178] sm:$0xff] }
  0x44   :  { %1073 = vmatmul.msk.f32.gmra.mxu2 %vm222_vm0, %v195_v44  ;;  %v209_v7 = vadd.f32 %v1158_v4, %v141_v2  ;;  %v77_v44 = vld [vmem:[%s2232_s0 + $0x1c8] sm:$0xff]  ;;  %v135_v10 = vmul.f32 %v1153_v3, %v67_v5 }
  0x46   :  { %1087 = vmatmul.msk.f32.gmra.mxu3 %vm222_vm0, %v209_v7 }
  0x48   :  { %1042 = vmatmul.msk.f32.gmra.mxu0 %vm222_vm0, %v164_v11  ;;  %v34_v11 = vld [vmem:[%s2232_s0 + $0x70] sm:$0xff] }
  0x49   :  { %v102_v17 = vmul.f32 %v1153_v3, %v34_v11 }
  0x4a   :  { %1058 = vmatmul.msk.f32.gmra.mxu1 %vm222_vm0, %v180_v16  ;;  %v142_v16 = vmul.f32 %v1153_v3, %v74_v13 }
  0x4b   :  { %v170_v21 = vadd.f32 %v1158_v4, %v102_v17 }
  0x4c   :  { %1074 = vmatmul.msk.f32.gmra.mxu2 %vm222_vm0, %v196_v56  ;;  %v210_v19 = vadd.f32 %v1158_v4, %v142_v16 }
  0x4e   :  { %1088 = vmatmul.msk.f32.gmra.mxu3 %vm222_vm0, %v210_v19 }
  0x50   :  { %1043 = vmatmul.msk.f32.gmra.mxu0 %vm222_vm0, %v165_v23  ;;  %v35_v23 = vld [vmem:[%s2232_s0 + $0x78] sm:$0xff] }
  0x51   :  { %v103_v29 = vmul.f32 %v1153_v3, %v35_v23 }
  0x52   :  { %1059 = vmatmul.msk.f32.gmra.mxu1 %vm222_vm0, %v181_v28  ;;  %v143_v28 = vmul.f32 %v1153_v3, %v75_v25 }
  0x53   :  { %v171_v33 = vadd.f32 %v1158_v4, %v103_v29  ;;  %v81_v29 = vld [vmem:[%s2232_s0 + $0x1e8] sm:$0xff] }
  0x54   :  { %1075 = vmatmul.msk.f32.gmra.mxu2 %vm222_vm0, %v197_v6  ;;  %v211_v31 = vadd.f32 %v1158_v4, %v143_v28  ;;  %v79_v6 = vld [vmem:[%s2232_s0 + $0x1d8] sm:$0xff]  ;;  %v149_v34 = vmul.f32 %v1153_v3, %v81_v29 }
  0x55   :  { %v147_v11 = vmul.f32 %v1153_v3, %v79_v6 }
  0x56   :  { %1089 = vmatmul.msk.f32.gmra.mxu3 %vm222_vm0, %v211_v31 }
  0x57   :  { %v215_v15 = vadd.f32 %v1158_v4, %v147_v11 }
  0x58   :  { %1044 = vmatmul.msk.f32.gmra.mxu0 %vm222_vm0, %v166_v35  ;;  %v64_v35 = vld [vmem:[%s2232_s0 + $0x160] sm:$0xff] }
  0x59   :  { %v132_v38 = vmul.f32 %v1153_v3, %v64_v35 }
  0x5a   :  { %1060 = vmatmul.msk.f32.gmra.mxu1 %vm222_vm0, %v182_v40 }
  0x5b   :  { %v200_v40 = vadd.f32 %v1158_v4, %v132_v38 }
  0x5c   :  { %1076 = vmatmul.msk.f32.gmra.mxu2 %vm222_vm0, %v198_v18  ;;  %v80_v18 = vld [vmem:[%s2232_s0 + $0x1e0] sm:$0xff] }
  0x5d   :  { %v148_v22 = vmul.f32 %v1153_v3, %v80_v18 }
  0x5e   :  { %1090 = vmatmul.msk.f32.gmra.mxu3 %vm222_vm0, %v212_v41 }
  0x5f   :  { %v216_v25 = vadd.f32 %v1158_v4, %v148_v22 }
  0x60   :  { %1045 = vmatmul.msk.f32.gmra.mxu0 %vm222_vm0, %v167_v47  ;;  %v145_v47 = vmul.f32 %v1153_v3, %v77_v44 }
  0x62   :  { %1061 = vmatmul.msk.f32.gmra.mxu1 %vm222_vm0, %v183_v52  ;;  %v213_v49 = vadd.f32 %v1158_v4, %v145_v47  ;;  %v83_v47 = vld [vmem:[%s2232_s0 + $0x1f8] sm:$0xff] }
  0x64   :  { %1077 = vmatmul.msk.f32.gmra.mxu2 %vm222_vm0, %v199_v30 }
  0x66   :  { %1091 = vmatmul.msk.f32.gmra.mxu3 %vm222_vm0, %v213_v49  ;;  %v151_v49 = vmul.f32 %v1153_v3, %v83_v47 }
  0x68   :  { %1046 = vmatmul.msk.f32.gmra.mxu0 %vm222_vm0, %v168_v59  ;;  %v146_v59 = vmul.f32 %v1153_v3, %v78_v54 }
  0x6a   :  { %1062 = vmatmul.msk.f32.gmra.mxu1 %vm222_vm0, %v184_v0  ;;  %v214_v0 = vadd.f32 %v1158_v4, %v146_v59 }
  0x6c   :  { %1078 = vmatmul.msk.f32.gmra.mxu2 %vm222_vm0, %v200_v40  ;;  %v82_v40 = vld [vmem:[%s2232_s0 + $0x1f0] sm:$0xff] }
  0x6e   :  { %1092 = vmatmul.msk.f32.gmra.mxu3 %vm222_vm0, %v214_v0 }
  0x70   :  { %1047 = vmatmul.msk.f32.gmra.mxu0 %vm222_vm0, %v169_v9 }
  0x72   :  { %1063 = vmatmul.msk.f32.gmra.mxu1 %vm222_vm0, %v185_v14  ;;  %v203_v14 = vadd.f32 %v1158_v4, %v135_v10 }
  0x74   :  { %1079 = vmatmul.msk.f32.gmra.mxu2 %vm222_vm0, %v201_v48 }
  0x76   :  { %1093 = vmatmul.msk.f32.gmra.mxu3 %vm222_vm0, %v215_v15 }
  0x78   :  { %1048 = vmatmul.msk.f32.gmra.mxu0 %vm222_vm0, %v170_v21 }
  0x7a   :  { %1064 = vmatmul.msk.f32.gmra.mxu1 %vm222_vm0, %v186_v26 }
  0x7c   :  { %1080 = vmatmul.msk.f32.gmra.mxu2 %vm222_vm0, %v202_v63 }
  0x7e   :  { %1094 = vmatmul.msk.f32.gmra.mxu3 %vm222_vm0, %v216_v25 }
  0x80   :  { %1049 = vmatmul.msk.f32.gmra.mxu0 %vm222_vm0, %v171_v33 }
  0x82   :  { %1065 = vmatmul.msk.f32.gmra.mxu1 %vm222_vm0, %v187_v37  ;;  %v217_v37 = vadd.f32 %v1158_v4, %v149_v34 }
  0x84   :  { %1081 = vmatmul.msk.f32.gmra.mxu2 %vm222_vm0, %v203_v14 }
  0x85   :  { %v432_v42 = vpop.f32.mrf.mxu0 }
  0x86   :  { %625 = vst.msk [vmem:[%s2235_s4] sm:$0xff] %vm624_vm1, %v432_v42  ;;  %v824_v50 = vmul.f32 %v432_v42, %v432_v42  ;;  %v689_v51 = vsel %vm624_vm1, %v432_v42, 0.0  ;;  %1095 = vmatmul.msk.f32.gmra.mxu3 %vm222_vm0, %v217_v37  ;;  %v150_v42 = vmul.f32 %v1153_v3, %v82_v40 }
  0x87   :  { %v1491_v45 = vpop.f32.mrf.mxu1 }
  0x88   :  { %641 = vst.msk [vmem:[%s2235_s4 + $0x80] sm:$0xff] %vm624_vm1, %v1491_v45  ;;  %v888_v61 = vsel %vm624_vm1, %v824_v50, 0.0  ;;  %v218_v43 = vadd.f32 %v1158_v4, %v150_v42  ;;  %v219_v50 = vadd.f32 %v1158_v4, %v151_v49 }
  0x8d   :  { %v435_v52 = vpop.f32.mrf.mxu0 }
  0x8e   :  { %626 = vst.msk [vmem:[%s2235_s4 + $0x8] sm:$0xff] %vm624_vm1, %v435_v52  ;;  %v690_v55 = vsel %vm624_vm1, %v435_v52, 0.0  ;;  %v825_v56 = vmul.f32 %v435_v52, %v435_v52  ;;  %1096 = vmatmul.msk.f32.gmra.mxu3 %vm222_vm0, %v218_v43 }
  0x8f   :  { %v1516_v57 = vpop.f32.mrf.mxu1  ;;  %v691_v60 = vadd.f32 %v690_v55, %v689_v51  ;;  %v1575_v28 = vpop.f32.mrf.mxu2 }
  0x90   :  { %642 = vst.msk [vmem:[%s2235_s4 + $0x88] sm:$0xff] %vm624_vm1, %v1516_v57  ;;  %v889_v62 = vsel %vm624_vm1, %v825_v56, 0.0 }
  0x91   :  { %v890_v1 = vadd.f32 %v889_v62, %v888_v61  ;;  %657 = vst.msk [vmem:[%s2235_s4 + $0x100] sm:$0xff] %vm624_vm1, %v1575_v28 }
  0x94   :  { %v1682_v55 = vpop.f32.mrf.mxu3 }
  0x95   :  { %v438_v2 = vpop.f32.mrf.mxu0  ;;  %673 = vst.msk [vmem:[%s2235_s4 + $0x180] sm:$0xff] %vm624_vm1, %v1682_v55 }
  0x96   :  { %627 = vst.msk [vmem:[%s2235_s4 + $0x10] sm:$0xff] %vm624_vm1, %v438_v2  ;;  %v692_v7 = vsel %vm624_vm1, %v438_v2, 0.0  ;;  %v826_v8 = vmul.f32 %v438_v2, %v438_v2  ;;  %1097 = vmatmul.msk.f32.gmra.mxu3 %vm222_vm0, %v219_v50 }
  0x97   :  { %v1542_v9 = vpop.f32.mrf.mxu1  ;;  %v693_v12 = vadd.f32 %v692_v7, %v691_v60  ;;  %v1607_v39 = vpop.f32.mrf.mxu2 }
  0x98   :  { %643 = vst.msk [vmem:[%s2235_s4 + $0x90] sm:$0xff] %vm624_vm1, %v1542_v9  ;;  %v891_v13 = vsel %vm624_vm1, %v826_v8, 0.0 }
  0x99   :  { %v892_v16 = vadd.f32 %v891_v13, %v890_v1  ;;  %658 = vst.msk [vmem:[%s2235_s4 + $0x108] sm:$0xff] %vm624_vm1, %v1607_v39 }
  0x9c   :  { %v1707_v60 = vpop.f32.mrf.mxu3 }
  0x9d   :  { %v441_v17 = vpop.f32.mrf.mxu0  ;;  %674 = vst.msk [vmem:[%s2235_s4 + $0x188] sm:$0xff] %vm624_vm1, %v1707_v60 }
  0x9e   :  { %628 = vst.msk [vmem:[%s2235_s4 + $0x18] sm:$0xff] %vm624_vm1, %v441_v17  ;;  %v694_v19 = vsel %vm624_vm1, %v441_v17, 0.0  ;;  %v827_v20 = vmul.f32 %v441_v17, %v441_v17 }
  0x9f   :  { %v1564_v21 = vpop.f32.mrf.mxu1  ;;  %v695_v23 = vadd.f32 %v694_v19, %v693_v12  ;;  %v1632_v46 = vpop.f32.mrf.mxu2 }
  0xa0   :  { %644 = vst.msk [vmem:[%s2235_s4 + $0x98] sm:$0xff] %vm624_vm1, %v1564_v21  ;;  %v893_v24 = vsel %vm624_vm1, %v827_v20, 0.0 }
  0xa1   :  { %v894_v26 = vadd.f32 %v893_v24, %v892_v16  ;;  %659 = vst.msk [vmem:[%s2235_s4 + $0x110] sm:$0xff] %vm624_vm1, %v1632_v46 }
  0xa4   :  { %v1732_v0 = vpop.f32.mrf.mxu3 }
  0xa5   :  { %v444_v27 = vpop.f32.mrf.mxu0  ;;  %675 = vst.msk [vmem:[%s2235_s4 + $0x190] sm:$0xff] %vm624_vm1, %v1732_v0 }
  0xa6   :  { %629 = vst.msk [vmem:[%s2235_s4 + $0x20] sm:$0xff] %vm624_vm1, %v444_v27  ;;  %v696_v30 = vsel %vm624_vm1, %v444_v27, 0.0  ;;  %v828_v31 = vmul.f32 %v444_v27, %v444_v27 }
  0xa7   :  { %v1585_v32 = vpop.f32.mrf.mxu1  ;;  %v1587_v33 = vadd.f32 %v696_v30, %v695_v23  ;;  %v1656_v52 = vpop.f32.mrf.mxu2 }
  0xa8   :  { %645 = vst.msk [vmem:[%s2235_s4 + $0xa0] sm:$0xff] %vm624_vm1, %v1585_v32  ;;  %v895_v35 = vsel %vm624_vm1, %v828_v31, 0.0 }
  0xa9   :  { %v1601_v36 = vadd.f32 %v895_v35, %v894_v26  ;;  %660 = vst.msk [vmem:[%s2235_s4 + $0x118] sm:$0xff] %vm624_vm1, %v1656_v52 }
  0xac   :  { %v1757_v6 = vpop.f32.mrf.mxu3 }
  0xad   :  { %v1605_v38 = vpop.f32.mrf.mxu0  ;;  %676 = vst.msk [vmem:[%s2235_s4 + $0x198] sm:$0xff] %vm624_vm1, %v1757_v6 }
  0xae   :  { %630 = vst.msk [vmem:[%s2235_s4 + $0x28] sm:$0xff] %vm624_vm1, %v1605_v38  ;;  %v829_v10 = vmul.f32 %v1605_v38, %v1605_v38  ;;  %v698_v13 = vsel %vm624_vm1, %v1605_v38, 0.0 }
  0xaf   :  { %v1617_v41 = vpop.f32.mrf.mxu1  ;;  %v1674_v4 = vpop.f32.mrf.mxu2  ;;  %v699_v18 = vadd.f32 %v698_v13, %v1587_v33 }
  0xb0   :  { %646 = vst.msk [vmem:[%s2235_s4 + $0xa8] sm:$0xff] %vm624_vm1, %v1617_v41  ;;  %v897_v15 = vsel %vm624_vm1, %v829_v10, 0.0 }
  0xb1   :  { %661 = vst.msk [vmem:[%s2235_s4 + $0x120] sm:$0xff] %vm624_vm1, %v1674_v4  ;;  %v898_v23 = vadd.f32 %v897_v15, %v1601_v36 }
  0xb4   :  { %v1784_v12 = vpop.f32.mrf.mxu3 }
  0xb5   :  { %v450_v44 = vpop.f32.mrf.mxu0  ;;  %677 = vst.msk [vmem:[%s2235_s4 + $0x1a0] sm:$0xff] %vm624_vm1, %v1784_v12 }
  0xb6   :  { %631 = vst.msk [vmem:[%s2235_s4 + $0x30] sm:$0xff] %vm624_vm1, %v450_v44  ;;  %v830_v14 = vmul.f32 %v450_v44, %v450_v44  ;;  %v700_v16 = vsel %vm624_vm1, %v450_v44, 0.0 }
  0xb7   :  { %v1641_v48 = vpop.f32.mrf.mxu1  ;;  %v1699_v58 = vpop.f32.mrf.mxu2  ;;  %v701_v24 = vadd.f32 %v700_v16, %v699_v18 }
  0xb8   :  { %647 = vst.msk [vmem:[%s2235_s4 + $0xb0] sm:$0xff] %vm624_vm1, %v1641_v48  ;;  %v899_v19 = vsel %vm624_vm1, %v830_v14, 0.0 }
  0xb9   :  { %662 = vst.msk [vmem:[%s2235_s4 + $0x128] sm:$0xff] %vm624_vm1, %v1699_v58  ;;  %v900_v34 = vadd.f32 %v899_v19, %v898_v23 }
  0xbd   :  { %v453_v51 = vpop.f32.mrf.mxu0 }
  0xbe   :  { %632 = vst.msk [vmem:[%s2235_s4 + $0x38] sm:$0xff] %vm624_vm1, %v453_v51  ;;  %v831_v17 = vmul.f32 %v453_v51, %v453_v51  ;;  %v702_v20 = vsel %vm624_vm1, %v453_v51, 0.0 }
  0xbf   :  { %v1662_v53 = vpop.f32.mrf.mxu1  ;;  %v1724_v62 = vpop.f32.mrf.mxu2  ;;  %v703_v35 = vadd.f32 %v702_v20, %v701_v24 }
  0xc0   :  { %648 = vst.msk [vmem:[%s2235_s4 + $0xb8] sm:$0xff] %vm624_vm1, %v1662_v53  ;;  %v901_v27 = vsel %vm624_vm1, %v831_v17, 0.0 }
  0xc1   :  { %663 = vst.msk [vmem:[%s2235_s4 + $0x130] sm:$0xff] %vm624_vm1, %v1724_v62  ;;  %v902_v40 = vadd.f32 %v901_v27, %v900_v34 }
  0xc5   :  { %v456_v3 = vpop.f32.mrf.mxu0 }
  0xc6   :  { %633 = vst.msk [vmem:[%s2235_s4 + $0x40] sm:$0xff] %vm624_vm1, %v456_v3  ;;  %v832_v22 = vmul.f32 %v456_v3, %v456_v3  ;;  %v704_v29 = vsel %vm624_vm1, %v456_v3, 0.0 }
  0xc7   :  { %v1680_v54 = vpop.f32.mrf.mxu1  ;;  %v1749_v2 = vpop.f32.mrf.mxu2  ;;  %v705_v42 = vadd.f32 %v704_v29, %v703_v35 }
  0xc8   :  { %649 = vst.msk [vmem:[%s2235_s4 + $0xc0] sm:$0xff] %vm624_vm1, %v1680_v54  ;;  %v903_v36 = vsel %vm624_vm1, %v832_v22, 0.0 }
  0xc9   :  { %664 = vst.msk [vmem:[%s2235_s4 + $0x138] sm:$0xff] %vm624_vm1, %v1749_v2  ;;  %v1819_v33 = vpop.f32.mrf.mxu3  ;;  %v904_v49 = vadd.f32 %v903_v36, %v902_v40 }
  0xca   :  { %678 = vst.msk [vmem:[%s2235_s4 + $0x1a8] sm:$0xff] %vm624_vm1, %v1819_v33 }
  0xcd   :  { %v459_v56 = vpop.f32.mrf.mxu0 }
  0xce   :  { %634 = vst.msk [vmem:[%s2235_s4 + $0x48] sm:$0xff] %vm624_vm1, %v459_v56  ;;  %v833_v30 = vmul.f32 %v459_v56, %v459_v56  ;;  %v706_v37 = vsel %vm624_vm1, %v459_v56, 0.0 }
  0xcf   :  { %v1705_v59 = vpop.f32.mrf.mxu1  ;;  %v1774_v8 = vpop.f32.mrf.mxu2  ;;  %v707_v50 = vadd.f32 %v706_v37, %v705_v42  ;;  %v840_v42 = vmul.f32 %v1491_v45, %v1491_v45 }
  0xd0   :  { %650 = vst.msk [vmem:[%s2235_s4 + $0xc8] sm:$0xff] %vm624_vm1, %v1705_v59  ;;  %v905_v43 = vsel %vm624_vm1, %v833_v30, 0.0 }
  0xd1   :  { %665 = vst.msk [vmem:[%s2235_s4 + $0x140] sm:$0xff] %vm624_vm1, %v1774_v8  ;;  %v906_v10 = vadd.f32 %v905_v43, %v904_v49  ;;  %v1852_v19 = vpop.f32.mrf.mxu3 }
  0xd2   :  { %679 = vst.msk [vmem:[%s2235_s4 + $0x1b0] sm:$0xff] %vm624_vm1, %v1852_v19 }
  0xd5   :  { %v462_v61 = vpop.f32.mrf.mxu0 }
  0xd6   :  { %635 = vst.msk [vmem:[%s2235_s4 + $0x50] sm:$0xff] %vm624_vm1, %v462_v61  ;;  %v834_v38 = vmul.f32 %v462_v61, %v462_v61  ;;  %v708_v44 = vsel %vm624_vm1, %v462_v61, 0.0 }
  0xd7   :  { %v1730_v63 = vpop.f32.mrf.mxu1  ;;  %v1809_v26 = vpop.f32.mrf.mxu2  ;;  %v709_v13 = vadd.f32 %v708_v44, %v707_v50 }
  0xd8   :  { %651 = vst.msk [vmem:[%s2235_s4 + $0xd0] sm:$0xff] %vm624_vm1, %v1730_v63  ;;  %v907_v51 = vsel %vm624_vm1, %v834_v38, 0.0 }
  0xd9   :  { %666 = vst.msk [vmem:[%s2235_s4 + $0x148] sm:$0xff] %vm624_vm1, %v1809_v26  ;;  %v1885_v49 = vpop.f32.mrf.mxu3 }
  0xda   :  { %680 = vst.msk [vmem:[%s2235_s4 + $0x1b8] sm:$0xff] %vm624_vm1, %v1885_v49 }
  0xdd   :  { %v465_v1 = vpop.f32.mrf.mxu0 }
  0xde   :  { %636 = vst.msk [vmem:[%s2235_s4 + $0x58] sm:$0xff] %vm624_vm1, %v465_v1  ;;  %v835_v47 = vmul.f32 %v465_v1, %v465_v1  ;;  %v710_v3 = vsel %vm624_vm1, %v465_v1, 0.0  ;;  %v908_v1 = vadd.f32 %v907_v51, %v906_v10 }
  0xdf   :  { %v1755_v5 = vpop.f32.mrf.mxu1  ;;  %v1842_v15 = vpop.f32.mrf.mxu2  ;;  %v711_v20 = vadd.f32 %v710_v3, %v709_v13  ;;  %v720_v3 = vsel %vm624_vm1, %v1491_v45, 0.0  ;;  %v919_v45 = vsel %vm624_vm1, %v840_v42, 0.0 }
  0xe0   :  { %652 = vst.msk [vmem:[%s2235_s4 + $0xd8] sm:$0xff] %vm624_vm1, %v1755_v5  ;;  %v909_v16 = vsel %vm624_vm1, %v835_v47, 0.0 }
  0xe1   :  { %667 = vst.msk [vmem:[%s2235_s4 + $0x150] sm:$0xff] %vm624_vm1, %v1842_v15  ;;  %v910_v24 = vadd.f32 %v909_v16, %v908_v1  ;;  %v722_v16 = vsel %vm624_vm1, %v1516_v57, 0.0 }
  0xe5   :  { %v468_v7 = vpop.f32.mrf.mxu0 }
  0xe6   :  { %637 = vst.msk [vmem:[%s2235_s4 + $0x60] sm:$0xff] %vm624_vm1, %v468_v7  ;;  %v836_v56 = vmul.f32 %v468_v7, %v468_v7  ;;  %v712_v17 = vsel %vm624_vm1, %v468_v7, 0.0 }
  0xe7   :  { %v1782_v11 = vpop.f32.mrf.mxu1  ;;  %v713_v27 = vadd.f32 %v712_v17, %v711_v20  ;;  %v1874_v40 = vpop.f32.mrf.mxu2  ;;  %v842_v17 = vmul.f32 %v1542_v9, %v1542_v9 }
  0xe8   :  { %653 = vst.msk [vmem:[%s2235_s4 + $0xe0] sm:$0xff] %vm624_vm1, %v1782_v11  ;;  %v911_v7 = vsel %vm624_vm1, %v836_v56, 0.0  ;;  %v841_v56 = vmul.f32 %v1516_v57, %v1516_v57  ;;  %v726_v57 = vsel %vm624_vm1, %v1564_v21, 0.0 }
  0xe9   :  { %668 = vst.msk [vmem:[%s2235_s4 + $0x158] sm:$0xff] %vm624_vm1, %v1874_v40 }
  0xea   :  { %v921_v20 = vsel %vm624_vm1, %v841_v56, 0.0  ;;  %v847_v56 = vmul.f32 %v1662_v53, %v1662_v53 }
  0xed   :  { %v471_v25 = vpop.f32.mrf.mxu0 }
  0xee   :  { %638 = vst.msk [vmem:[%s2235_s4 + $0x68] sm:$0xff] %vm624_vm1, %v471_v25  ;;  %v837_v18 = vmul.f32 %v471_v25, %v471_v25  ;;  %v714_v22 = vsel %vm624_vm1, %v471_v25, 0.0  ;;  %v912_v25 = vadd.f32 %v911_v7, %v910_v24  ;;  %v724_v7 = vsel %vm624_vm1, %v1542_v9, 0.0  ;;  %v1929_v9 = vpop.f32.mrf.mxu3 }
  0xef   :  { %v1817_v31 = vpop.f32.mrf.mxu1  ;;  %v715_v34 = vadd.f32 %v714_v22, %v713_v27  ;;  %v843_v22 = vmul.f32 %v1564_v21, %v1564_v21  ;;  %v1917_v27 = vpop.f32.mrf.mxu2  ;;  %681 = vst.msk [vmem:[%s2235_s4 + $0x1c0] sm:$0xff] %vm624_vm1, %v1929_v9 }
  0xf0   :  { %654 = vst.msk [vmem:[%s2235_s4 + $0xe8] sm:$0xff] %vm624_vm1, %v1817_v31  ;;  %v913_v29 = vsel %vm624_vm1, %v837_v18, 0.0 }
  0xf1   :  { %v914_v36 = vadd.f32 %v913_v29, %v912_v25  ;;  %v923_v29 = vsel %vm624_vm1, %v842_v17, 0.0  ;;  %669 = vst.msk [vmem:[%s2235_s4 + $0x160] sm:$0xff] %vm624_vm1, %v1917_v27  ;;  %v925_v21 = vsel %vm624_vm1, %v843_v22, 0.0 }
  0xf5   :  { %v474_v14 = vpop.f32.mrf.mxu0 }
  0xf6   :  { %639 = vst.msk [vmem:[%s2235_s4 + $0x70] sm:$0xff] %vm624_vm1, %v474_v14  ;;  %v838_v23 = vmul.f32 %v474_v14, %v474_v14  ;;  %v716_v30 = vsel %vm624_vm1, %v474_v14, 0.0 }
  0xf7   :  { %v1850_v61 = vpop.f32.mrf.mxu1  ;;  %v717_v37 = vadd.f32 %v716_v30, %v715_v34  ;;  %v844_v30 = vmul.f32 %v1585_v32, %v1585_v32 }
  0xf8   :  { %655 = vst.msk [vmem:[%s2235_s4 + $0xf0] sm:$0xff] %vm624_vm1, %v1850_v61  ;;  %v915_v35 = vsel %vm624_vm1, %v838_v23, 0.0 }
  0xf9   :  { %v916_v50 = vadd.f32 %v915_v35, %v914_v36  ;;  %v728_v35 = vsel %vm624_vm1, %v1585_v32, 0.0  ;;  %v845_v36 = vmul.f32 %v1617_v41, %v1617_v41  ;;  %v927_v42 = vsel %vm624_vm1, %v844_v30, 0.0 }
  0xfa   :  { %v732_v32 = vsel %vm624_vm1, %v1641_v48, 0.0 }
  0xfd   :  { %v477_v38 = vpop.f32.mrf.mxu0 }
  0xfe   :  { %640 = vst.msk [vmem:[%s2235_s4 + $0x78] sm:$0xff] %vm624_vm1, %v477_v38  ;;  %v718_v43 = vsel %vm624_vm1, %v477_v38, 0.0  ;;  %v839_v44 = vmul.f32 %v477_v38, %v477_v38 }
  0xff   :  { %v1883_v47 = vpop.f32.mrf.mxu1  ;;  %v719_v51 = vadd.f32 %v718_v43, %v717_v37  ;;  %v730_v43 = vsel %vm624_vm1, %v1617_v41, 0.0  ;;  %v734_v41 = vsel %vm624_vm1, %v1662_v53, 0.0  ;;  %v933_v53 = vsel %vm624_vm1, %v847_v56, 0.0 }
 0x100   :  { %656 = vst.msk [vmem:[%s2235_s4 + $0xf8] sm:$0xff] %vm624_vm1, %v1883_v47  ;;  %v917_v10 = vsel %vm624_vm1, %v839_v44, 0.0  ;;  %v846_v44 = vmul.f32 %v1641_v48, %v1641_v48  ;;  %v1963_v48 = vpop.f32.mrf.mxu3  ;;  %v746_v56 = vsel %vm624_vm1, %v1817_v31, 0.0 }
 0x101   :  { %v721_v13 = vadd.f32 %v720_v3, %v719_v51  ;;  %v918_v14 = vadd.f32 %v917_v10, %v916_v50  ;;  %v929_v3 = vsel %vm624_vm1, %v845_v36, 0.0  ;;  %682 = vst.msk [vmem:[%s2235_s4 + $0x1c8] sm:$0xff] %vm624_vm1, %v1963_v48 }
 0x103   :  { %v723_v18 = vadd.f32 %v722_v16, %v721_v13  ;;  %v920_v1 = vadd.f32 %v919_v45, %v918_v14  ;;  %v1951_v14 = vpop.f32.mrf.mxu2  ;;  %v931_v45 = vsel %vm624_vm1, %v846_v44, 0.0  ;;  %v848_v16 = vmul.f32 %v1680_v54, %v1680_v54 }
 0x104   :  { %670 = vst.msk [vmem:[%s2235_s4 + $0x168] sm:$0xff] %vm624_vm1, %v1951_v14  ;;  %v744_v44 = vsel %vm624_vm1, %v1782_v11, 0.0 }
 0x105   :  { %v725_v23 = vadd.f32 %v724_v7, %v723_v18  ;;  %v922_v24 = vadd.f32 %v921_v20, %v920_v1  ;;  %v736_v1 = vsel %vm624_vm1, %v1680_v54, 0.0  ;;  %v849_v20 = vmul.f32 %v1705_v59, %v1705_v59 }
 0x106   :  { %v740_v54 = vsel %vm624_vm1, %v1730_v63, 0.0 }
 0x107   :  { %v727_v25 = vadd.f32 %v726_v57, %v725_v23  ;;  %v924_v34 = vadd.f32 %v923_v29, %v922_v24  ;;  %v935_v23 = vsel %vm624_vm1, %v848_v16, 0.0  ;;  %v738_v24 = vsel %vm624_vm1, %v1705_v59, 0.0 }
 0x108   :  { %v850_v29 = vmul.f32 %v1730_v63, %v1730_v63  ;;  %v742_v59 = vsel %vm624_vm1, %v1755_v5, 0.0  ;;  %v1997_v63 = vpop.f32.mrf.mxu3  ;;  %v748_v16 = vsel %vm624_vm1, %v1850_v61, 0.0 }
 0x109   :  { %v729_v37 = vadd.f32 %v728_v35, %v727_v25  ;;  %v926_v38 = vadd.f32 %v925_v21, %v924_v34  ;;  %v937_v25 = vsel %vm624_vm1, %v849_v20, 0.0  ;;  %v851_v34 = vmul.f32 %v1755_v5, %v1755_v5  ;;  %683 = vst.msk [vmem:[%s2235_s4 + $0x1d0] sm:$0xff] %vm624_vm1, %v1997_v63 }
 0x10b   :  { %v731_v50 = vadd.f32 %v730_v43, %v729_v37  ;;  %v928_v51 = vadd.f32 %v927_v42, %v926_v38  ;;  %v1985_v36 = vpop.f32.mrf.mxu2  ;;  %v939_v37 = vsel %vm624_vm1, %v850_v29, 0.0  ;;  %v852_v38 = vmul.f32 %v1782_v11, %v1782_v11 }
 0x10c   :  { %671 = vst.msk [vmem:[%s2235_s4 + $0x170] sm:$0xff] %vm624_vm1, %v1985_v36  ;;  %v941_v5 = vsel %vm624_vm1, %v851_v34, 0.0 }
 0x10d   :  { %v930_v10 = vadd.f32 %v929_v3, %v928_v51  ;;  %v733_v13 = vadd.f32 %v732_v32, %v731_v50  ;;  %v853_v50 = vmul.f32 %v1817_v31, %v1817_v31  ;;  %v943_v32 = vsel %vm624_vm1, %v852_v38, 0.0 }
 0x10e   :  { %v856_v31 = vmul.f32 %v1575_v28, %v1575_v28 }
 0x10f   :  { %v735_v17 = vadd.f32 %v734_v41, %v733_v13  ;;  %v932_v18 = vadd.f32 %v931_v45, %v930_v10  ;;  %v854_v10 = vmul.f32 %v1850_v61, %v1850_v61  ;;  %v855_v13 = vmul.f32 %v1883_v47, %v1883_v47 }
 0x110   :  { %v945_v11 = vsel %vm624_vm1, %v853_v50, 0.0  ;;  %v2032_v61 = vpop.f32.mrf.mxu3 }
 0x111   :  { %v737_v7 = vadd.f32 %v736_v1, %v735_v17  ;;  %v934_v22 = vadd.f32 %v933_v53, %v932_v18  ;;  %v750_v17 = vsel %vm624_vm1, %v1883_v47, 0.0  ;;  %v947_v20 = vsel %vm624_vm1, %v854_v10, 0.0  ;;  %684 = vst.msk [vmem:[%s2235_s4 + $0x1d8] sm:$0xff] %vm624_vm1, %v2032_v61 }
 0x112   :  { %v762_v10 = vsel %vm624_vm1, %v1699_v58, 0.0 }
 0x113   :  { %v739_v57 = vadd.f32 %v738_v24, %v737_v7  ;;  %v936_v30 = vadd.f32 %v935_v23, %v934_v22  ;;  %v2021_v1 = vpop.f32.mrf.mxu2  ;;  %v949_v7 = vsel %vm624_vm1, %v855_v13, 0.0  ;;  %v752_v23 = vsel %vm624_vm1, %v1575_v28, 0.0 }
 0x114   :  { %672 = vst.msk [vmem:[%s2235_s4 + $0x178] sm:$0xff] %vm624_vm1, %v2021_v1  ;;  %v857_v24 = vmul.f32 %v1607_v39, %v1607_v39  ;;  %v756_v28 = vsel %vm624_vm1, %v1632_v46, 0.0  ;;  %v862_v13 = vmul.f32 %v1724_v62, %v1724_v62 }
 0x115   :  { %v741_v21 = vadd.f32 %v740_v54, %v739_v57  ;;  %v938_v35 = vadd.f32 %v937_v25, %v936_v30  ;;  %v951_v30 = vsel %vm624_vm1, %v856_v31, 0.0  ;;  %v754_v25 = vsel %vm624_vm1, %v1607_v39, 0.0 }
 0x116   :  { %v858_v54 = vmul.f32 %v1632_v46, %v1632_v46  ;;  %v758_v39 = vsel %vm624_vm1, %v1656_v52, 0.0  ;;  %v864_v31 = vmul.f32 %v1774_v8, %v1774_v8 }
 0x117   :  { %v743_v42 = vadd.f32 %v742_v59, %v741_v21  ;;  %v940_v43 = vadd.f32 %v939_v37, %v938_v35  ;;  %v953_v35 = vsel %vm624_vm1, %v857_v24, 0.0  ;;  %v859_v37 = vmul.f32 %v1656_v52, %v1656_v52 }
 0x118   :  { %v861_v52 = vmul.f32 %v1699_v58, %v1699_v58  ;;  %v766_v58 = vsel %vm624_vm1, %v1749_v2, 0.0 }
 0x119   :  { %v942_v51 = vadd.f32 %v941_v5, %v940_v43  ;;  %v745_v3 = vadd.f32 %v744_v44, %v743_v42  ;;  %v955_v42 = vsel %vm624_vm1, %v858_v54, 0.0  ;;  %v860_v43 = vmul.f32 %v1674_v4, %v1674_v4  ;;  %v2058_v5 = vpop.f32.mrf.mxu3 }
 0x11a   :  { %685 = vst.msk [vmem:[%s2235_s4 + $0x1e0] sm:$0xff] %vm624_vm1, %v2058_v5  ;;  %v957_v46 = vsel %vm624_vm1, %v859_v37, 0.0 }
 0x11b   :  { %v944_v45 = vadd.f32 %v943_v32, %v942_v51  ;;  %v747_v41 = vadd.f32 %v746_v56, %v745_v3  ;;  %v760_v51 = vsel %vm624_vm1, %v1674_v4, 0.0  ;;  %v959_v56 = vsel %vm624_vm1, %v860_v43, 0.0 }
 0x11c   :  { %v764_v4 = vsel %vm624_vm1, %v1724_v62, 0.0  ;;  %v776_v43 = vsel %vm624_vm1, %v1917_v27, 0.0 }
 0x11d   :  { %v946_v18 = vadd.f32 %v945_v11, %v944_v45  ;;  %v749_v53 = vadd.f32 %v748_v16, %v747_v41  ;;  %v961_v11 = vsel %vm624_vm1, %v861_v52, 0.0  ;;  %v863_v16 = vmul.f32 %v1749_v2, %v1749_v2 }
 0x11e   :  { %v865_v2 = vmul.f32 %v1809_v26, %v1809_v26  ;;  %v870_v52 = vmul.f32 %v1985_v36, %v1985_v36 }
 0x11f   :  { %v948_v47 = vadd.f32 %v947_v20, %v946_v18  ;;  %v751_v22 = vadd.f32 %v750_v17, %v749_v53  ;;  %v963_v53 = vsel %vm624_vm1, %v862_v13, 0.0  ;;  %v965_v62 = vsel %vm624_vm1, %v863_v16, 0.0 }
 0x120   :  { %v782_v13 = vsel %vm624_vm1, %v2021_v1, 0.0 }
 0x121   :  { %v753_v29 = vadd.f32 %v752_v23, %v751_v22  ;;  %v950_v57 = vadd.f32 %v949_v7, %v948_v47  ;;  %v2085_v20 = vpop.f32.mrf.mxu3  ;;  %v768_v22 = vsel %vm624_vm1, %v1774_v8, 0.0  ;;  %v772_v8 = vsel %vm624_vm1, %v1842_v15, 0.0 }
 0x122   :  { %686 = vst.msk [vmem:[%s2235_s4 + $0x1e8] sm:$0xff] %vm624_vm1, %v2085_v20 }
 0x123   :  { %v755_v34 = vadd.f32 %v754_v25, %v753_v29  ;;  %v952_v21 = vadd.f32 %v951_v30, %v950_v57  ;;  %v967_v29 = vsel %vm624_vm1, %v864_v31, 0.0  ;;  %v770_v57 = vsel %vm624_vm1, %v1809_v26, 0.0 }
 0x124   :  { %v866_v30 = vmul.f32 %v1842_v15, %v1842_v15  ;;  %v774_v26 = vsel %vm624_vm1, %v1874_v40, 0.0 }
 0x125   :  { %v757_v59 = vadd.f32 %v756_v28, %v755_v34  ;;  %v954_v38 = vadd.f32 %v953_v35, %v952_v21  ;;  %v969_v34 = vsel %vm624_vm1, %v865_v2, 0.0  ;;  %v867_v21 = vmul.f32 %v1874_v40, %v1874_v40 }
 0x126   :  { %v971_v37 = vsel %vm624_vm1, %v866_v30, 0.0  ;;  %v869_v40 = vmul.f32 %v1951_v14, %v1951_v14  ;;  %v876_v30 = vmul.f32 %v1784_v12, %v1784_v12 }
 0x127   :  { %v759_v44 = vadd.f32 %v758_v39, %v757_v59  ;;  %v956_v50 = vadd.f32 %v955_v42, %v954_v38  ;;  %v868_v59 = vmul.f32 %v1917_v27, %v1917_v27  ;;  %v973_v15 = vsel %vm624_vm1, %v867_v21, 0.0 }
 0x128   :  { %v977_v27 = vsel %vm624_vm1, %v869_v40, 0.0 }
 0x129   :  { %v761_v3 = vadd.f32 %v760_v51, %v759_v44  ;;  %v958_v32 = vadd.f32 %v957_v46, %v956_v50  ;;  %v2112_v38 = vpop.f32.mrf.mxu3  ;;  %v975_v46 = vsel %vm624_vm1, %v868_v59, 0.0  ;;  %v778_v51 = vsel %vm624_vm1, %v1951_v14, 0.0 }
 0x12a   :  { %687 = vst.msk [vmem:[%s2235_s4 + $0x1f0] sm:$0xff] %vm624_vm1, %v2112_v38  ;;  %v872_v14 = vmul.f32 %v1682_v55, %v1682_v55 }
 0x12b   :  { %v763_v45 = vadd.f32 %v762_v10, %v761_v3  ;;  %v960_v41 = vadd.f32 %v959_v56, %v958_v32  ;;  %v871_v3 = vmul.f32 %v2021_v1, %v2021_v1  ;;  %v780_v10 = vsel %vm624_vm1, %v1985_v36, 0.0 }
 0x12c   :  { %v784_v36 = vsel %vm624_vm1, %v1682_v55, 0.0  ;;  %v873_v1 = vmul.f32 %v1707_v60, %v1707_v60  ;;  %v983_v31 = vsel %vm624_vm1, %v872_v14, 0.0  ;;  %v788_v55 = vsel %vm624_vm1, %v1732_v0, 0.0 }
 0x12d   :  { %v962_v17 = vadd.f32 %v961_v11, %v960_v41  ;;  %v765_v18 = vadd.f32 %v764_v4, %v763_v45  ;;  %v979_v11 = vsel %vm624_vm1, %v870_v52, 0.0  ;;  %v981_v4 = vsel %vm624_vm1, %v871_v3, 0.0 }
 0x12e   :  { %v985_v2 = vsel %vm624_vm1, %v873_v1, 0.0  ;;  %v881_v52 = vmul.f32 %v1963_v48, %v1963_v48 }
 0x12f   :  { %v767_v7 = vadd.f32 %v766_v58, %v765_v18  ;;  %v964_v47 = vadd.f32 %v963_v53, %v962_v17 }
 0x131   :  { %v769_v23 = vadd.f32 %v768_v22, %v767_v7  ;;  %v966_v24 = vadd.f32 %v965_v62, %v964_v47  ;;  %v2140_v16 = vpop.f32.mrf.mxu3  ;;  %v786_v7 = vsel %vm624_vm1, %v1707_v60, 0.0  ;;  %v874_v47 = vmul.f32 %v1732_v0, %v1732_v0 }
 0x132   :  { %688 = vst.msk [vmem:[%s2235_s4 + $0x1f8] sm:$0xff] %vm624_vm1, %v2140_v16  ;;  %v790_v60 = vsel %vm624_vm1, %v1757_v6, 0.0  ;;  %v792_v0 = vsel %vm624_vm1, %v1784_v12, 0.0  ;;  %v796_v12 = vsel %vm624_vm1, %v1852_v19, 0.0 }
 0x133   :  { %v771_v25 = vadd.f32 %v770_v57, %v769_v23  ;;  %v968_v54 = vadd.f32 %v967_v29, %v966_v24  ;;  %v875_v23 = vmul.f32 %v1757_v6, %v1757_v6  ;;  %v987_v57 = vsel %vm624_vm1, %v874_v47, 0.0 }
 0x134   :  { %v794_v6 = vsel %vm624_vm1, %v1819_v33, 0.0  ;;  %v886_v47 = vmul.f32 %v2112_v38, %v2112_v38 }
 0x135   :  { %v773_v35 = vadd.f32 %v772_v8, %v771_v25  ;;  %v970_v28 = vadd.f32 %v969_v34, %v968_v54  ;;  %v989_v34 = vsel %vm624_vm1, %v875_v23, 0.0  ;;  %v877_v8 = vmul.f32 %v1819_v33, %v1819_v33 }
 0x136   :  { %v798_v33 = vsel %vm624_vm1, %v1885_v49, 0.0  ;;  %v814_v23 = vsel %vm624_vm1, %v2140_v16, 0.0 }
 0x137   :  { %v775_v42 = vadd.f32 %v774_v26, %v773_v35  ;;  %v972_v39 = vadd.f32 %v971_v37, %v970_v28  ;;  %v991_v28 = vsel %vm624_vm1, %v876_v30, 0.0  ;;  %v878_v37 = vmul.f32 %v1852_v19, %v1852_v19 }
 0x138   :  { %v800_v19 = vsel %vm624_vm1, %v1929_v9, 0.0 }
 0x139   :  { %v974_v44 = vadd.f32 %v973_v15, %v972_v39  ;;  %v777_v50 = vadd.f32 %v776_v43, %v775_v42  ;;  %v993_v42 = vsel %vm624_vm1, %v877_v8, 0.0  ;;  %v879_v39 = vmul.f32 %v1885_v49, %v1885_v49 }
 0x13a   :  { %v995_v40 = vsel %vm624_vm1, %v878_v37, 0.0  ;;  %v802_v49 = vsel %vm624_vm1, %v1963_v48, 0.0  ;;  %v806_v48 = vsel %vm624_vm1, %v2032_v61, 0.0 }
 0x13b   :  { %v976_v32 = vadd.f32 %v975_v46, %v974_v44  ;;  %v779_v56 = vadd.f32 %v778_v51, %v777_v50  ;;  %v880_v44 = vmul.f32 %v1929_v9, %v1929_v9  ;;  %v997_v51 = vsel %vm624_vm1, %v879_v39, 0.0 }
 0x13c   :  { %v804_v9 = vsel %vm624_vm1, %v1997_v63, 0.0 }
 0x13d   :  { %v978_v45 = vadd.f32 %v977_v27, %v976_v32  ;;  %v781_v41 = vadd.f32 %v780_v10, %v779_v56  ;;  %v999_v56 = vsel %vm624_vm1, %v880_v44, 0.0  ;;  %v882_v27 = vmul.f32 %v1997_v63, %v1997_v63 }
 0x13e   :  { %v808_v63 = vsel %vm624_vm1, %v2058_v5, 0.0 }
 0x13f   :  { %v980_v17 = vadd.f32 %v979_v11, %v978_v45  ;;  %v783_v18 = vadd.f32 %v782_v13, %v781_v41  ;;  %v1001_v45 = vsel %vm624_vm1, %v881_v52, 0.0  ;;  %v883_v41 = vmul.f32 %v2032_v61, %v2032_v61 }
 0x140   :  { %v810_v61 = vsel %vm624_vm1, %v2085_v20, 0.0 }
 0x141   :  { %v785_v53 = vadd.f32 %v784_v36, %v783_v18  ;;  %v982_v58 = vadd.f32 %v981_v4, %v980_v17  ;;  %v1003_v4 = vsel %vm624_vm1, %v882_v27, 0.0  ;;  %v884_v17 = vmul.f32 %v2058_v5, %v2058_v5 }
 0x142   :  { %v1005_v1 = vsel %vm624_vm1, %v883_v41, 0.0 }
 0x143   :  { %v787_v62 = vadd.f32 %v786_v7, %v785_v53  ;;  %v984_v22 = vadd.f32 %v983_v31, %v982_v58  ;;  %v885_v53 = vmul.f32 %v2085_v20, %v2085_v20  ;;  %v1007_v7 = vsel %vm624_vm1, %v884_v17, 0.0 }
 0x144   :  { %v1011_v20 = vsel %vm624_vm1, %v886_v47, 0.0 }
 0x145   :  { %v789_v24 = vadd.f32 %v788_v55, %v787_v62  ;;  %v986_v29 = vadd.f32 %v985_v2, %v984_v22  ;;  %v887_v62 = vmul.f32 %v2140_v16, %v2140_v16  ;;  %v1009_v5 = vsel %vm624_vm1, %v885_v53, 0.0 }
 0x146   :  { %v812_v55 = vsel %vm624_vm1, %v2112_v38, 0.0 }
 0x147   :  { %v791_v25 = vadd.f32 %v790_v60, %v789_v24  ;;  %v988_v54 = vadd.f32 %v987_v57, %v986_v29  ;;  %v1013_v57 = vsel %vm624_vm1, %v887_v62, 0.0 }
 0x149   :  { %v793_v21 = vadd.f32 %v792_v0, %v791_v25  ;;  %v990_v35 = vadd.f32 %v989_v34, %v988_v54 }
 0x14b   :  { %v795_v26 = vadd.f32 %v794_v6, %v793_v21  ;;  %v992_v59 = vadd.f32 %v991_v28, %v990_v35 }
 0x14d   :  { %v994_v15 = vadd.f32 %v993_v42, %v992_v59  ;;  %v797_v43 = vadd.f32 %v796_v12, %v795_v26 }
 0x14f   :  { %v799_v50 = vadd.f32 %v798_v33, %v797_v43  ;;  %v996_v46 = vadd.f32 %v995_v40, %v994_v15 }
 0x151   :  { %v801_v3 = vadd.f32 %v800_v19, %v799_v50  ;;  %v998_v32 = vadd.f32 %v997_v51, %v996_v46 }
 0x153   :  { %v803_v10 = vadd.f32 %v802_v49, %v801_v3  ;;  %v1000_v13 = vadd.f32 %v999_v56, %v998_v32 }
 0x155   :  { %v805_v14 = vadd.f32 %v804_v9, %v803_v10  ;;  %v1002_v11 = vadd.f32 %v1001_v45, %v1000_v13 }
 0x157   :  { %v807_v18 = vadd.f32 %v806_v48, %v805_v14  ;;  %v1004_v36 = vadd.f32 %v1003_v4, %v1002_v11 }
 0x159   :  { %v1006_v58 = vadd.f32 %v1005_v1, %v1004_v36  ;;  %v809_v31 = vadd.f32 %v808_v63, %v807_v18 }
 0x15b   :  { %v1008_v22 = vadd.f32 %v1007_v7, %v1006_v58  ;;  %v811_v2 = vadd.f32 %v810_v61, %v809_v31 }
 0x15d   :  { %v1010_v24 = vadd.f32 %v1009_v5, %v1008_v22  ;;  %v813_v29 = vadd.f32 %v812_v55, %v811_v2 }
 0x15f   :  { %v1012_v60 = vadd.f32 %v1011_v20, %v1010_v24  ;;  %v815_v30 = vadd.f32 %v814_v23, %v813_v29 }
 0x161   :  { %v816_v25 = vrot.slane %v815_v30, 4  ;;  %v1014_v54 = vadd.f32 %v1013_v57, %v1012_v60 }
 0x163   :  { %v817_v34 = vadd.f32 %v816_v25, %v815_v30  ;;  %v1015_v0 = vrot.slane %v1014_v54, 4 }
 0x165   :  { %v818_v8 = vrot.slane %v817_v34, 2  ;;  %v1016_v21 = vadd.f32 %v1015_v0, %v1014_v54 }
 0x167   :  { %v819_v35 = vadd.f32 %v818_v8, %v817_v34  ;;  %v1017_v28 = vrot.slane %v1016_v21, 2 }
 0x169   :  { %v820_v38 = vrot.slane %v819_v35, 1  ;;  %v1018_v6 = vadd.f32 %v1017_v28, %v1016_v21 }
 0x16b   :  { %v821_v16 = vadd.f32 %v820_v38, %v819_v35  ;;  %v1019_v37 = vrot.slane %v1018_v6, 1 }
 0x16d   :  { %823 = vst.msk [vmem:[%s2236_s5] sm:$0x1] %vm822_vm2, %v821_v16  ;;  %v1020_v26 = vadd.f32 %v1019_v37, %v1018_v6 }
 0x16f   :  { %1021 = vst.msk [vmem:[%s2237_s6] sm:$0x1] %vm822_vm2, %v1020_v26 }

// kernel: bottleneck_forward.9
= control target key start
LH: loop header
LB: loop body
LE: loop exit
PB: predicated region body
PF: predicated region fallthrough
CT: control target
= control target key end

     0   :  { %vm93_vm0 = vcmask 64512   ;;  %vm207_vm1 = vcmask 261120   ;;  %vm261_vm2 = vcmask 253952   ;;  %s620_s3 = inlined_call_operand.vmem [shape: f32[8,32], index: 3, kind: input, shape index: {}]   ;;  %s621_s0 = inlined_call_operand.vmem [shape: f32[128,8], index: 0, kind: input, shape index: {}]   ;;  %s622_s1 = inlined_call_operand.vmem [shape: f32[1,8], index: 1, kind: input, shape index: {}]   ;;  %s623_s2 = inlined_call_operand.vmem [shape: f32[1,8], index: 2, kind: input, shape index: {}]   ;;  %s624_s4 = inlined_call_operand.vmem [shape: f32[128,32], index: 4, kind: output, shape index: {0}]   ;;  %s625_s5 = inlined_call_operand.vmem [shape: f32[1,1,32], index: 5, kind: output, shape index: {1}]   ;;  %s626_s6 = inlined_call_operand.vmem [shape: f32[1,1,32], index: 6, kind: output, shape index: {2}]  }
   0x1   :  { %v92_v0 = vld [vmem:[%s620_s3] sm:$0xff]  ;;  %v21_v4 = vld [vmem:[%s621_s0 + $0x8] sm:$0xff]  ;;  %v22_v27 = vld [vmem:[%s621_s0 + $0x10] sm:$0xff] }
   0x2   :  { %v20_v1 = vld [vmem:[%s621_s0] sm:$0xff]  ;;  %157 = vmatpush.msra.mxu0 %v92_v0  ;;  %345 = vmatpush.msra.mxu1 %v92_v0  ;;  %v25_v10 = vld [vmem:[%s621_s0 + $0x28] sm:$0xff]  ;;  %v26_v30 = vld [vmem:[%s621_s0 + $0x30] sm:$0xff] }
   0x3   :  { %v394_v2 = vld [vmem:[%s622_s1] ss:$0 sm:$0xff]  ;;  %346 = vmatpush.msra.mxu2 %v92_v0  ;;  %347 = vmatpush.msra.mxu3 %v92_v0  ;;  %v29_v11 = vld [vmem:[%s621_s0 + $0x48] sm:$0xff]  ;;  %v30_v32 = vld [vmem:[%s621_s0 + $0x50] sm:$0xff] }
   0x4   :  { %v399_v3 = vld [vmem:[%s623_s2] ss:$0 sm:$0xff]  ;;  %v40_v7 = vmul.f32 %v394_v2, %v20_v1  ;;  %v41_v12 = vmul.f32 %v394_v2, %v21_v4  ;;  %v45_v17 = vmul.f32 %v394_v2, %v25_v10  ;;  %v49_v18 = vmul.f32 %v394_v2, %v29_v11  ;;  %v33_v23 = vld [vmem:[%s621_s0 + $0x68] sm:$0xff]  ;;  %v34_v38 = vld [vmem:[%s621_s0 + $0x70] sm:$0xff] }
   0x5   :  { %v24_v5 = vld [vmem:[%s621_s0 + $0x20] sm:$0xff]  ;;  %v53_v31 = vmul.f32 %v394_v2, %v33_v23  ;;  %v42_v35 = vmul.f32 %v394_v2, %v22_v27  ;;  %v46_v37 = vmul.f32 %v394_v2, %v26_v30  ;;  %v50_v40 = vmul.f32 %v394_v2, %v30_v32  ;;  %v23_v45 = vld [vmem:[%s621_s0 + $0x18] sm:$0xff] }
   0x6   :  { %v28_v6 = vld [vmem:[%s621_s0 + $0x40] sm:$0xff]  ;;  %v44_v8 = vmul.f32 %v394_v2, %v24_v5  ;;  %v60_v14 = vadd.f32 %v399_v3, %v40_v7  ;;  %v61_v25 = vadd.f32 %v399_v3, %v41_v12  ;;  %v65_v26 = vadd.f32 %v399_v3, %v45_v17  ;;  %v27_v47 = vld [vmem:[%s621_s0 + $0x38] sm:$0xff] }
   0x7   :  { %v48_v9 = vmul.f32 %v394_v2, %v28_v6  ;;  %v32_v13 = vld [vmem:[%s621_s0 + $0x60] sm:$0xff]  ;;  %v69_v28 = vadd.f32 %v399_v3, %v49_v18  ;;  %v73_v33 = vadd.f32 %v399_v3, %v53_v31  ;;  %v54_v42 = vmul.f32 %v394_v2, %v34_v38  ;;  %v31_v48 = vld [vmem:[%s621_s0 + $0x58] sm:$0xff] }
   0x8   :  { %v64_v15 = vadd.f32 %v399_v3, %v44_v8  ;;  %v52_v19 = vmul.f32 %v394_v2, %v32_v13  ;;  %v76_v20 = vmax.f32 %v60_v14, 0.0  ;;  %v77_v34 = vmax.f32 %v61_v25, 0.0  ;;  %v35_v54 = vld [vmem:[%s621_s0 + $0x78] sm:$0xff] }
   0x9   :  { %v68_v16 = vadd.f32 %v399_v3, %v48_v9  ;;  %v81_v36 = vmax.f32 %v65_v26, 0.0  ;;  %v85_v39 = vmax.f32 %v69_v28, 0.0  ;;  %v89_v41 = vmax.f32 %v73_v33, 0.0 }
   0xa   :  { %v80_v21 = vmax.f32 %v64_v15, 0.0  ;;  %v72_v24 = vadd.f32 %v399_v3, %v52_v19  ;;  %329 = vmatmul.msk.f32.vlgmr.msra.gmra.mxu0 %vm93_vm0, %v76_v20  ;;  %v62_v43 = vadd.f32 %v399_v3, %v42_v35  ;;  %v66_v44 = vadd.f32 %v399_v3, %v46_v37 }
   0xb   :  { %v84_v22 = vmax.f32 %v68_v16, 0.0  ;;  %v70_v46 = vadd.f32 %v399_v3, %v50_v40  ;;  %v74_v49 = vadd.f32 %v399_v3, %v54_v42  ;;  %v43_v51 = vmul.f32 %v394_v2, %v23_v45 }
   0xc   :  { %333 = vmatmul.msk.f32.vlgmr.msra.gmra.mxu1 %vm93_vm0, %v80_v21  ;;  %v88_v29 = vmax.f32 %v72_v24, 0.0  ;;  %v78_v50 = vmax.f32 %v62_v43, 0.0  ;;  %v82_v52 = vmax.f32 %v66_v44, 0.0  ;;  %v47_v53 = vmul.f32 %v394_v2, %v27_v47 }
   0xd   :  { %337 = vmatmul.msk.f32.vlgmr.msra.gmra.mxu2 %vm93_vm0, %v84_v22  ;;  %v86_v55 = vmax.f32 %v70_v46, 0.0  ;;  %v51_v56 = vmul.f32 %v394_v2, %v31_v48  ;;  %v90_v57 = vmax.f32 %v74_v49, 0.0  ;;  %v55_v58 = vmul.f32 %v394_v2, %v35_v54 }
   0xe   :  { %341 = vmatmul.msk.f32.vlgmr.msra.gmra.mxu3 %vm93_vm0, %v88_v29  ;;  %v63_v59 = vadd.f32 %v399_v3, %v43_v51  ;;  %v67_v60 = vadd.f32 %v399_v3, %v47_v53 }
   0xf   :  { %v71_v61 = vadd.f32 %v399_v3, %v51_v56  ;;  %v75_v62 = vadd.f32 %v399_v3, %v55_v58 }
  0x10   :  { %v79_v63 = vmax.f32 %v63_v59, 0.0  ;;  %v83_v0 = vmax.f32 %v67_v60, 0.0 }
  0x11   :  { %v87_v1 = vmax.f32 %v71_v61, 0.0  ;;  %v91_v2 = vmax.f32 %v75_v62, 0.0 }
  0x12   :  { %330 = vmatmul.msk.f32.gmra.mxu0 %vm93_vm0, %v77_v34 }
  0x14   :  { %334 = vmatmul.msk.f32.gmra.mxu1 %vm93_vm0, %v81_v36 }
  0x15   :  { %338 = vmatmul.msk.f32.gmra.mxu2 %vm93_vm0, %v85_v39 }
  0x16   :  { %342 = vmatmul.msk.f32.gmra.mxu3 %vm93_vm0, %v89_v41 }
  0x1a   :  { %331 = vmatmul.msk.f32.gmra.mxu0 %vm93_vm0, %v78_v50 }
  0x1c   :  { %335 = vmatmul.msk.f32.gmra.mxu1 %vm93_vm0, %v82_v52 }
  0x1d   :  { %339 = vmatmul.msk.f32.gmra.mxu2 %vm93_vm0, %v86_v55 }
  0x1e   :  { %343 = vmatmul.msk.f32.gmra.mxu3 %vm93_vm0, %v90_v57 }
  0x22   :  { %332 = vmatmul.msk.f32.gmra.mxu0 %vm93_vm0, %v79_v63 }
  0x24   :  { %336 = vmatmul.msk.f32.gmra.mxu1 %vm93_vm0, %v83_v0 }
  0x25   :  { %340 = vmatmul.msk.f32.gmra.mxu2 %vm93_vm0, %v87_v1 }
  0x26   :  { %344 = vmatmul.msk.f32.gmra.mxu3 %vm93_vm0, %v91_v2 }
  0x87   :  { %v159_v4 = vpop.f32.mrf.mxu0 }
  0x88   :  { %208 = vst.msk [vmem:[%s624_s4] sm:$0xff] %vm207_vm1, %v159_v4  ;;  %v263_v14 = vmul.f32 %v159_v4, %v159_v4  ;;  %v224_v17 = vsel %vm207_vm1, %v159_v4, 0.0 }
  0x89   :  { %v171_v5 = vpop.f32.mrf.mxu1 }
  0x8a   :  { %212 = vst.msk [vmem:[%s624_s4 + $0x20] sm:$0xff] %vm207_vm1, %v171_v5  ;;  %v279_v21 = vsel %vm207_vm1, %v263_v14, 0.0  ;;  %v267_v28 = vmul.f32 %v171_v5, %v171_v5  ;;  %v231_v34 = vsel %vm207_vm1, %v171_v5, 0.0 }
  0x8c   :  { %v286_v39 = vsel %vm207_vm1, %v267_v28, 0.0 }
  0x8f   :  { %v162_v6 = vpop.f32.mrf.mxu0 }
  0x90   :  { %v502_v3 = vpop.f32.mrf.mxu2  ;;  %209 = vst.msk [vmem:[%s624_s4 + $0x8] sm:$0xff] %vm207_vm1, %v162_v6  ;;  %v264_v12 = vmul.f32 %v162_v6, %v162_v6  ;;  %v225_v15 = vsel %vm207_vm1, %v162_v6, 0.0 }
  0x91   :  { %v174_v7 = vpop.f32.mrf.mxu1  ;;  %216 = vst.msk [vmem:[%s624_s4 + $0x40] sm:$0xff] %vm207_vm1, %v502_v3  ;;  %v513_v8 = vpop.f32.mrf.mxu3  ;;  %v226_v20 = vadd.f32 %v225_v15, %v224_v17  ;;  %v271_v51 = vmul.f32 %v502_v3, %v502_v3  ;;  %v239_v57 = vsel %vm207_vm1, %v502_v3, 0.0 }
  0x92   :  { %213 = vst.msk [vmem:[%s624_s4 + $0x28] sm:$0xff] %vm207_vm1, %v174_v7  ;;  %v280_v18 = vsel %vm207_vm1, %v264_v12, 0.0  ;;  %v268_v35 = vmul.f32 %v174_v7, %v174_v7  ;;  %v233_v40 = vsel %vm207_vm1, %v174_v7, 0.0  ;;  %v247_v15 = vsel %vm207_vm1, %v513_v8, 0.0 }
  0x93   :  { %220 = vst.msk [vmem:[%s624_s4 + $0x60] sm:$0xff] %vm207_vm1, %v513_v8  ;;  %v281_v24 = vadd.f32 %v280_v18, %v279_v21  ;;  %v294_v61 = vsel %vm207_vm1, %v271_v51, 0.0 }
  0x94   :  { %v288_v45 = vsel %vm207_vm1, %v268_v35, 0.0 }
  0x97   :  { %v165_v10 = vpop.f32.mrf.mxu0 }
  0x98   :  { %v524_v9 = vpop.f32.mrf.mxu2  ;;  %210 = vst.msk [vmem:[%s624_s4 + $0x10] sm:$0xff] %vm207_vm1, %v165_v10  ;;  %v265_v16 = vmul.f32 %v165_v10, %v165_v10  ;;  %v227_v19 = vsel %vm207_vm1, %v165_v10, 0.0  ;;  %v275_v10 = vmul.f32 %v513_v8, %v513_v8 }
  0x99   :  { %v177_v11 = vpop.f32.mrf.mxu1  ;;  %217 = vst.msk [vmem:[%s624_s4 + $0x48] sm:$0xff] %vm207_vm1, %v524_v9  ;;  %v535_v13 = vpop.f32.mrf.mxu3  ;;  %v228_v25 = vadd.f32 %v227_v19, %v226_v20  ;;  %v272_v58 = vmul.f32 %v524_v9, %v524_v9  ;;  %v241_v62 = vsel %vm207_vm1, %v524_v9, 0.0 }
  0x9a   :  { %214 = vst.msk [vmem:[%s624_s4 + $0x30] sm:$0xff] %vm207_vm1, %v177_v11  ;;  %v282_v22 = vsel %vm207_vm1, %v265_v16, 0.0  ;;  %v269_v41 = vmul.f32 %v177_v11, %v177_v11  ;;  %v235_v46 = vsel %vm207_vm1, %v177_v11, 0.0  ;;  %v276_v16 = vmul.f32 %v535_v13, %v535_v13 }
  0x9b   :  { %221 = vst.msk [vmem:[%s624_s4 + $0x68] sm:$0xff] %vm207_vm1, %v535_v13  ;;  %v283_v32 = vadd.f32 %v282_v22, %v281_v24  ;;  %v296_v4 = vsel %vm207_vm1, %v272_v58, 0.0  ;;  %v302_v19 = vsel %vm207_vm1, %v275_v10, 0.0  ;;  %v249_v20 = vsel %vm207_vm1, %v535_v13, 0.0 }
  0x9c   :  { %v290_v52 = vsel %vm207_vm1, %v269_v41, 0.0 }
  0x9f   :  { %v168_v26 = vpop.f32.mrf.mxu0 }
  0xa0   :  { %v189_v23 = vpop.f32.mrf.mxu2  ;;  %211 = vst.msk [vmem:[%s624_s4 + $0x18] sm:$0xff] %vm207_vm1, %v168_v26  ;;  %v229_v29 = vsel %vm207_vm1, %v168_v26, 0.0  ;;  %v266_v30 = vmul.f32 %v168_v26, %v168_v26 }
  0xa1   :  { %v180_v27 = vpop.f32.mrf.mxu1  ;;  %218 = vst.msk [vmem:[%s624_s4 + $0x50] sm:$0xff] %vm207_vm1, %v189_v23  ;;  %v201_v31 = vpop.f32.mrf.mxu3  ;;  %v230_v33 = vadd.f32 %v229_v29, %v228_v25  ;;  %v273_v63 = vmul.f32 %v189_v23, %v189_v23  ;;  %v243_v5 = vsel %vm207_vm1, %v189_v23, 0.0  ;;  %v304_v25 = vsel %vm207_vm1, %v276_v16, 0.0 }
  0xa2   :  { %215 = vst.msk [vmem:[%s624_s4 + $0x38] sm:$0xff] %vm207_vm1, %v180_v27  ;;  %v284_v36 = vsel %vm207_vm1, %v266_v30, 0.0  ;;  %v270_v42 = vmul.f32 %v180_v27, %v180_v27  ;;  %v237_v47 = vsel %vm207_vm1, %v180_v27, 0.0  ;;  %v277_v21 = vmul.f32 %v201_v31, %v201_v31 }
  0xa3   :  { %222 = vst.msk [vmem:[%s624_s4 + $0x70] sm:$0xff] %vm207_vm1, %v201_v31  ;;  %v232_v37 = vadd.f32 %v231_v34, %v230_v33  ;;  %v285_v38 = vadd.f32 %v284_v36, %v283_v32  ;;  %v298_v11 = vsel %vm207_vm1, %v273_v63, 0.0  ;;  %v251_v26 = vsel %vm207_vm1, %v201_v31, 0.0 }
  0xa4   :  { %v292_v53 = vsel %vm207_vm1, %v270_v42, 0.0  ;;  %v306_v29 = vsel %vm207_vm1, %v277_v21, 0.0 }
  0xa5   :  { %v287_v43 = vadd.f32 %v286_v39, %v285_v38  ;;  %v234_v44 = vadd.f32 %v233_v40, %v232_v37 }
  0xa7   :  { %v236_v49 = vadd.f32 %v235_v46, %v234_v44  ;;  %v289_v50 = vadd.f32 %v288_v45, %v287_v43 }
  0xa8   :  { %v192_v48 = vpop.f32.mrf.mxu2 }
  0xa9   :  { %219 = vst.msk [vmem:[%s624_s4 + $0x58] sm:$0xff] %vm207_vm1, %v192_v48  ;;  %v204_v54 = vpop.f32.mrf.mxu3  ;;  %v291_v55 = vadd.f32 %v290_v52, %v289_v50  ;;  %v238_v56 = vadd.f32 %v237_v47, %v236_v49  ;;  %v274_v0 = vmul.f32 %v192_v48, %v192_v48  ;;  %v245_v3 = vsel %vm207_vm1, %v192_v48, 0.0 }
  0xaa   :  { %223 = vst.msk [vmem:[%s624_s4 + $0x78] sm:$0xff] %vm207_vm1, %v204_v54  ;;  %v278_v22 = vmul.f32 %v204_v54, %v204_v54  ;;  %v253_v8 = vsel %vm207_vm1, %v204_v54, 0.0 }
  0xab   :  { %v240_v59 = vadd.f32 %v239_v57, %v238_v56  ;;  %v293_v60 = vadd.f32 %v292_v53, %v291_v55  ;;  %v300_v12 = vsel %vm207_vm1, %v274_v0, 0.0 }
  0xac   :  { %v308_v30 = vsel %vm207_vm1, %v278_v22, 0.0 }
  0xad   :  { %v295_v1 = vadd.f32 %v294_v61, %v293_v60  ;;  %v242_v2 = vadd.f32 %v241_v62, %v240_v59 }
  0xaf   :  { %v244_v6 = vadd.f32 %v243_v5, %v242_v2  ;;  %v297_v7 = vadd.f32 %v296_v4, %v295_v1 }
  0xb1   :  { %v299_v9 = vadd.f32 %v298_v11, %v297_v7  ;;  %v246_v14 = vadd.f32 %v245_v3, %v244_v6 }
  0xb3   :  { %v248_v17 = vadd.f32 %v247_v15, %v246_v14  ;;  %v301_v18 = vadd.f32 %v300_v12, %v299_v9 }
  0xb5   :  { %v303_v23 = vadd.f32 %v302_v19, %v301_v18  ;;  %v250_v24 = vadd.f32 %v249_v20, %v248_v17 }
  0xb7   :  { %v252_v27 = vadd.f32 %v251_v26, %v250_v24  ;;  %v305_v28 = vadd.f32 %v304_v25, %v303_v23 }
  0xb9   :  { %v307_v32 = vadd.f32 %v306_v29, %v305_v28  ;;  %v254_v33 = vadd.f32 %v253_v8, %v252_v27 }
  0xbb   :  { %v255_v34 = vrot.slane %v254_v33, 4  ;;  %v309_v13 = vadd.f32 %v308_v30, %v307_v32 }
  0xbd   :  { %v256_v35 = vadd.f32 %v255_v34, %v254_v33  ;;  %v310_v36 = vrot.slane %v309_v13, 4 }
  0xbf   :  { %v257_v37 = vrot.slane %v256_v35, 2  ;;  %v311_v38 = vadd.f32 %v310_v36, %v309_v13 }
  0xc1   :  { %v258_v39 = vadd.f32 %v257_v37, %v256_v35  ;;  %v312_v40 = vrot.slane %v311_v38, 2 }
  0xc3   :  { %v259_v41 = vrot.slane %v258_v39, 1  ;;  %v313_v31 = vadd.f32 %v312_v40, %v311_v38 }
  0xc5   :  { %v260_v42 = vadd.f32 %v259_v41, %v258_v39  ;;  %v314_v43 = vrot.slane %v313_v31, 1 }
  0xc7   :  { %262 = vst.msk [vmem:[%s625_s5] sm:$0x1] %vm261_vm2, %v260_v42  ;;  %v315_v44 = vadd.f32 %v314_v43, %v313_v31 }
  0xc9   :  { %316 = vst.msk [vmem:[%s626_s6] sm:$0x1] %vm261_vm2, %v315_v44 }

// kernel: bottleneck_forward.8
= control target key start
LH: loop header
LB: loop body
LE: loop exit
PB: predicated region body
PF: predicated region fallthrough
CT: control target
= control target key end

     0   :  { %s1669_s15 = smov 0   ;;  %s1671_s16 = smov 0   ;;  %s2165_s0 = inlined_call_operand.vmem [shape: f32[4,2,9,9,8], index: 0, kind: input, shape index: {}]   ;;  %s2166_s1 = inlined_call_operand.vmem [shape: f32[9,8,8], index: 1, kind: input, shape index: {}]   ;;  %s2167_s2 = inlined_call_operand.vmem [shape: f32[2,64,8], index: 2, kind: output, shape index: {0}]   ;;  %s2168_s3 = inlined_call_operand.vmem [shape: f32[2,1,8], index: 3, kind: output, shape index: {1}]   ;;  %s2169_s4 = inlined_call_operand.vmem [shape: f32[2,1,8], index: 4, kind: output, shape index: {2}]  }
   0x1   :  { %s1673_s17 = smov 0  }
   0x2 LB: > { %s1443_s18 = sadd.s32 4294967295, %s1642_s17   ;;  %s1686_s19 = sadd.s32 1, %s1642_s17   ;;  %s1642_s17 = sphi %s1673_s17, %s2172_s17   ;;  %s1638_s16 = sphi %s1671_s16, %s2171_s16   ;;  %s1634_s15 = sphi %s1669_s15, %s2170_s15  }
   0x3   : > { %s19_s20 = ssub.s32 %s1642_s17, %s1686_s19  ;;  %s22_s21 = sadd.s32 1, %s1638_s16 }
   0x4   : > { %p20_p0 = scmp.eq.s32.totalorder %s19_s20, 0  ;;  %p29_p1 = scmp.ne.s32.totalorder %s1638_s16, %s1634_s15 }
   0x5   : > { %p30_p2 = scmp.eq.s32.totalorder %s1642_s17, 0  ;;  %p1446_p4 = scmp.ge.s32.totalorder %s1642_s17, 2 }
   0x6   : > { %s1695_s22 = scalar_select %p20_p0, %s1638_s16, %s22_s21  }
   0x7   : > { %p31_p3 = por %p30_p2, %p29_p1  ;;  %157 = sbr.rel (%p1446_p4) target bundleno = 89 (0x59), region = 20 }
   0xc   : > { %160 = sbr.rel (!%p31_p3) target bundleno = 89 (0x59), region = 24  ;;  %s162_s23 = sand.u32 (%p31_p3), 1, %s1638_s16  }
   0xd   : > { %s1594_s24 = smul.u32 (%p31_p3), 144, %s1642_s17 }
   0xe   : > { %s1593_s25 = smul.u32 (%p31_p3), 576, %s162_s23 }
   0xf   : > { %s1703_s28 = scalar_lea.vmem (%p31_p3), %s2165_s0, %s1594_s24 }
  0x10   : > { %v338_v0 = vld [vmem:[%s1703_s28] sm:$0xff] (%p31_p3)  ;;  %v340_v1 = vld [vmem:[%s1703_s28 + $0x8] sm:$0xff] (%p31_p3)  ;;  %v342_v2 = vld [vmem:[%s1703_s28 + $0x10] sm:$0xff] (%p31_p3)  ;;  %s1708_s29 = scalar_lea.vmem (%p31_p3), [#allocation2], %s1593_s25 }
  0x11   : > { %339 = vst [vmem:[%s1708_s29] sm:$0xff] %v338_v0  ;;  %v344_v3 = vld [vmem:[%s1703_s28 + $0x18] sm:$0xff]  ;;  %v346_v4 = vld [vmem:[%s1703_s28 + $0x20] sm:$0xff]  ;;  %v348_v5 = vld [vmem:[%s1703_s28 + $0x28] sm:$0xff] }
  0x12   : > { %341 = vst [vmem:[%s1708_s29 + $0x8] sm:$0xff] %v340_v1  ;;  %v350_v6 = vld [vmem:[%s1703_s28 + $0x30] sm:$0xff]  ;;  %v352_v7 = vld [vmem:[%s1703_s28 + $0x38] sm:$0xff]  ;;  %v354_v8 = vld [vmem:[%s1703_s28 + $0x40] sm:$0xff] }
  0x13   : > { %343 = vst [vmem:[%s1708_s29 + $0x10] sm:$0xff] %v342_v2  ;;  %v356_v9 = vld [vmem:[%s1703_s28 + $0x48] sm:$0xff]  ;;  %v358_v10 = vld [vmem:[%s1703_s28 + $0x50] sm:$0xff]  ;;  %v360_v11 = vld [vmem:[%s1703_s28 + $0x58] sm:$0xff] }
  0x14   : > { %345 = vst [vmem:[%s1708_s29 + $0x18] sm:$0xff] %v344_v3  ;;  %v362_v12 = vld [vmem:[%s1703_s28 + $0x60] sm:$0xff]  ;;  %v364_v13 = vld [vmem:[%s1703_s28 + $0x68] sm:$0xff]  ;;  %v366_v14 = vld [vmem:[%s1703_s28 + $0x70] sm:$0xff] }
  0x15   : > { %347 = vst [vmem:[%s1708_s29 + $0x20] sm:$0xff] %v346_v4  ;;  %v368_v15 = vld [vmem:[%s1703_s28 + $0x78] sm:$0xff]  ;;  %v370_v16 = vld [vmem:[%s1703_s28 + $0x80] sm:$0xff]  ;;  %v372_v17 = vld [vmem:[%s1703_s28 + $0x88] sm:$0xff] }
  0x16   : > { %349 = vst [vmem:[%s1708_s29 + $0x28] sm:$0xff] %v348_v5  ;;  %v374_v18 = vld [vmem:[%s1703_s28 + $0x120] sm:$0xff]  ;;  %v376_v19 = vld [vmem:[%s1703_s28 + $0x128] sm:$0xff]  ;;  %v378_v20 = vld [vmem:[%s1703_s28 + $0x130] sm:$0xff] }
  0x17   : > { %351 = vst [vmem:[%s1708_s29 + $0x30] sm:$0xff] %v350_v6  ;;  %v380_v21 = vld [vmem:[%s1703_s28 + $0x138] sm:$0xff]  ;;  %v382_v22 = vld [vmem:[%s1703_s28 + $0x140] sm:$0xff]  ;;  %v384_v23 = vld [vmem:[%s1703_s28 + $0x148] sm:$0xff] }
  0x18   : > { %353 = vst [vmem:[%s1708_s29 + $0x38] sm:$0xff] %v352_v7  ;;  %v386_v24 = vld [vmem:[%s1703_s28 + $0x150] sm:$0xff]  ;;  %v388_v25 = vld [vmem:[%s1703_s28 + $0x158] sm:$0xff]  ;;  %v390_v26 = vld [vmem:[%s1703_s28 + $0x160] sm:$0xff] }
  0x19   : > { %355 = vst [vmem:[%s1708_s29 + $0x40] sm:$0xff] %v354_v8  ;;  %v392_v27 = vld [vmem:[%s1703_s28 + $0x168] sm:$0xff]  ;;  %v394_v28 = vld [vmem:[%s1703_s28 + $0x170] sm:$0xff]  ;;  %v396_v29 = vld [vmem:[%s1703_s28 + $0x178] sm:$0xff] }
  0x1a   : > { %357 = vst [vmem:[%s1708_s29 + $0x48] sm:$0xff] %v356_v9  ;;  %v398_v30 = vld [vmem:[%s1703_s28 + $0x180] sm:$0xff]  ;;  %v400_v31 = vld [vmem:[%s1703_s28 + $0x188] sm:$0xff]  ;;  %v402_v32 = vld [vmem:[%s1703_s28 + $0x190] sm:$0xff] }
  0x1b   : > { %359 = vst [vmem:[%s1708_s29 + $0x50] sm:$0xff] %v358_v10  ;;  %v404_v33 = vld [vmem:[%s1703_s28 + $0x198] sm:$0xff]  ;;  %v406_v34 = vld [vmem:[%s1703_s28 + $0x1a0] sm:$0xff]  ;;  %v408_v35 = vld [vmem:[%s1703_s28 + $0x1a8] sm:$0xff] }
  0x1c   : > { %361 = vst [vmem:[%s1708_s29 + $0x58] sm:$0xff] %v360_v11  ;;  %v410_v36 = vld [vmem:[%s1703_s28 + $0x240] sm:$0xff]  ;;  %v412_v37 = vld [vmem:[%s1703_s28 + $0x248] sm:$0xff]  ;;  %v414_v38 = vld [vmem:[%s1703_s28 + $0x250] sm:$0xff] }
  0x1d   : > { %363 = vst [vmem:[%s1708_s29 + $0x60] sm:$0xff] %v362_v12  ;;  %v416_v39 = vld [vmem:[%s1703_s28 + $0x258] sm:$0xff]  ;;  %v418_v40 = vld [vmem:[%s1703_s28 + $0x260] sm:$0xff]  ;;  %v420_v41 = vld [vmem:[%s1703_s28 + $0x268] sm:$0xff] }
  0x1e   : > { %365 = vst [vmem:[%s1708_s29 + $0x68] sm:$0xff] %v364_v13  ;;  %v422_v42 = vld [vmem:[%s1703_s28 + $0x270] sm:$0xff]  ;;  %v424_v43 = vld [vmem:[%s1703_s28 + $0x278] sm:$0xff]  ;;  %v426_v44 = vld [vmem:[%s1703_s28 + $0x280] sm:$0xff] }
  0x1f   : > { %367 = vst [vmem:[%s1708_s29 + $0x70] sm:$0xff] %v366_v14  ;;  %v428_v45 = vld [vmem:[%s1703_s28 + $0x288] sm:$0xff]  ;;  %v430_v46 = vld [vmem:[%s1703_s28 + $0x290] sm:$0xff]  ;;  %v432_v47 = vld [vmem:[%s1703_s28 + $0x298] sm:$0xff] }
  0x20   : > { %369 = vst [vmem:[%s1708_s29 + $0x78] sm:$0xff] %v368_v15  ;;  %v434_v48 = vld [vmem:[%s1703_s28 + $0x2a0] sm:$0xff]  ;;  %v436_v49 = vld [vmem:[%s1703_s28 + $0x2a8] sm:$0xff]  ;;  %v438_v50 = vld [vmem:[%s1703_s28 + $0x2b0] sm:$0xff] }
  0x21   : > { %371 = vst [vmem:[%s1708_s29 + $0x80] sm:$0xff] %v370_v16  ;;  %v440_v51 = vld [vmem:[%s1703_s28 + $0x2b8] sm:$0xff]  ;;  %v442_v52 = vld [vmem:[%s1703_s28 + $0x2c0] sm:$0xff]  ;;  %v444_v53 = vld [vmem:[%s1703_s28 + $0x2c8] sm:$0xff] }
  0x22   : > { %373 = vst [vmem:[%s1708_s29 + $0x88] sm:$0xff] %v372_v17  ;;  %v446_v54 = vld [vmem:[%s1703_s28 + $0x360] sm:$0xff]  ;;  %v448_v55 = vld [vmem:[%s1703_s28 + $0x368] sm:$0xff]  ;;  %v450_v56 = vld [vmem:[%s1703_s28 + $0x370] sm:$0xff] }
  0x23   : > { %375 = vst [vmem:[%s1708_s29 + $0x90] sm:$0xff] %v374_v18  ;;  %v452_v57 = vld [vmem:[%s1703_s28 + $0x378] sm:$0xff]  ;;  %v454_v58 = vld [vmem:[%s1703_s28 + $0x380] sm:$0xff]  ;;  %v456_v59 = vld [vmem:[%s1703_s28 + $0x388] sm:$0xff] }
  0x24   : > { %377 = vst [vmem:[%s1708_s29 + $0x98] sm:$0xff] %v376_v19  ;;  %v458_v60 = vld [vmem:[%s1703_s28 + $0x390] sm:$0xff]  ;;  %v460_v61 = vld [vmem:[%s1703_s28 + $0x398] sm:$0xff]  ;;  %v462_v62 = vld [vmem:[%s1703_s28 + $0x3a0] sm:$0xff] }
  0x25   : > { %379 = vst [vmem:[%s1708_s29 + $0xa0] sm:$0xff] %v378_v20  ;;  %v464_v63 = vld [vmem:[%s1703_s28 + $0x3a8] sm:$0xff]  ;;  %v466_v0 = vld [vmem:[%s1703_s28 + $0x3b0] sm:$0xff]  ;;  %v468_v1 = vld [vmem:[%s1703_s28 + $0x3b8] sm:$0xff] }
  0x26   : > { %381 = vst [vmem:[%s1708_s29 + $0xa8] sm:$0xff] %v380_v21  ;;  %v470_v2 = vld [vmem:[%s1703_s28 + $0x3c0] sm:$0xff]  ;;  %v472_v3 = vld [vmem:[%s1703_s28 + $0x3c8] sm:$0xff]  ;;  %v474_v4 = vld [vmem:[%s1703_s28 + $0x3d0] sm:$0xff] }
  0x27   : > { %383 = vst [vmem:[%s1708_s29 + $0xb0] sm:$0xff] %v382_v22  ;;  %v476_v5 = vld [vmem:[%s1703_s28 + $0x3d8] sm:$0xff]  ;;  %v478_v6 = vld [vmem:[%s1703_s28 + $0x3e0] sm:$0xff]  ;;  %v480_v7 = vld [vmem:[%s1703_s28 + $0x3e8] sm:$0xff] }
  0x28   : > { %385 = vst [vmem:[%s1708_s29 + $0xb8] sm:$0xff] %v384_v23 }
  0x29   : > { %387 = vst [vmem:[%s1708_s29 + $0xc0] sm:$0xff] %v386_v24 }
  0x2a   : > { %389 = vst [vmem:[%s1708_s29 + $0xc8] sm:$0xff] %v388_v25 }
  0x2b   : > { %391 = vst [vmem:[%s1708_s29 + $0xd0] sm:$0xff] %v390_v26 }
  0x2c   : > { %393 = vst [vmem:[%s1708_s29 + $0xd8] sm:$0xff] %v392_v27 }
  0x2d   : > { %395 = vst [vmem:[%s1708_s29 + $0xe0] sm:$0xff] %v394_v28 }
  0x2e   : > { %397 = vst [vmem:[%s1708_s29 + $0xe8] sm:$0xff] %v396_v29 }
  0x2f   : > { %399 = vst [vmem:[%s1708_s29 + $0xf0] sm:$0xff] %v398_v30 }
  0x30   : > { %401 = vst [vmem:[%s1708_s29 + $0xf8] sm:$0xff] %v400_v31 }
  0x31   : > { %403 = vst [vmem:[%s1708_s29 + $0x100] sm:$0xff] %v402_v32 }
  0x32   : > { %405 = vst [vmem:[%s1708_s29 + $0x108] sm:$0xff] %v404_v33 }
  0x33   : > { %407 = vst [vmem:[%s1708_s29 + $0x110] sm:$0xff] %v406_v34 }
  0x34   : > { %409 = vst [vmem:[%s1708_s29 + $0x118] sm:$0xff] %v408_v35 }
  0x35   : > { %411 = vst [vmem:[%s1708_s29 + $0x120] sm:$0xff] %v410_v36 }
  0x36   : > { %413 = vst [vmem:[%s1708_s29 + $0x128] sm:$0xff] %v412_v37 }
  0x37   : > { %415 = vst [vmem:[%s1708_s29 + $0x130] sm:$0xff] %v414_v38 }
  0x38   : > { %417 = vst [vmem:[%s1708_s29 + $0x138] sm:$0xff] %v416_v39 }
  0x39   : > { %419 = vst [vmem:[%s1708_s29 + $0x140] sm:$0xff] %v418_v40 }
  0x3a   : > { %421 = vst [vmem:[%s1708_s29 + $0x148] sm:$0xff] %v420_v41 }
  0x3b   : > { %423 = vst [vmem:[%s1708_s29 + $0x150] sm:$0xff] %v422_v42 }
  0x3c   : > { %425 = vst [vmem:[%s1708_s29 + $0x158] sm:$0xff] %v424_v43 }
  0x3d   : > { %427 = vst [vmem:[%s1708_s29 + $0x160] sm:$0xff] %v426_v44 }
  0x3e   : > { %429 = vst [vmem:[%s1708_s29 + $0x168] sm:$0xff] %v428_v45 }
  0x3f   : > { %431 = vst [vmem:[%s1708_s29 + $0x170] sm:$0xff] %v430_v46 }
  0x40   : > { %433 = vst [vmem:[%s1708_s29 + $0x178] sm:$0xff] %v432_v47 }
  0x41   : > { %435 = vst [vmem:[%s1708_s29 + $0x180] sm:$0xff] %v434_v48 }
  0x42   : > { %437 = vst [vmem:[%s1708_s29 + $0x188] sm:$0xff] %v436_v49 }
  0x43   : > { %439 = vst [vmem:[%s1708_s29 + $0x190] sm:$0xff] %v438_v50 }
  0x44   : > { %441 = vst [vmem:[%s1708_s29 + $0x198] sm:$0xff] %v440_v51 }
  0x45   : > { %443 = vst [vmem:[%s1708_s29 + $0x1a0] sm:$0xff] %v442_v52 }
  0x46   : > { %445 = vst [vmem:[%s1708_s29 + $0x1a8] sm:$0xff] %v444_v53 }
  0x47   : > { %447 = vst [vmem:[%s1708_s29 + $0x1b0] sm:$0xff] %v446_v54 }
  0x48   : > { %449 = vst [vmem:[%s1708_s29 + $0x1b8] sm:$0xff] %v448_v55 }
  0x49   : > { %451 = vst [vmem:[%s1708_s29 + $0x1c0] sm:$0xff] %v450_v56 }
  0x4a   : > { %453 = vst [vmem:[%s1708_s29 + $0x1c8] sm:$0xff] %v452_v57 }
  0x4b   : > { %455 = vst [vmem:[%s1708_s29 + $0x1d0] sm:$0xff] %v454_v58 }
  0x4c   : > { %457 = vst [vmem:[%s1708_s29 + $0x1d8] sm:$0xff] %v456_v59 }
  0x4d   : > { %459 = vst [vmem:[%s1708_s29 + $0x1e0] sm:$0xff] %v458_v60 }
  0x4e   : > { %461 = vst [vmem:[%s1708_s29 + $0x1e8] sm:$0xff] %v460_v61 }
  0x4f   : > { %463 = vst [vmem:[%s1708_s29 + $0x1f0] sm:$0xff] %v462_v62 }
  0x50   : > { %465 = vst [vmem:[%s1708_s29 + $0x1f8] sm:$0xff] %v464_v63 }
  0x51   : > { %467 = vst [vmem:[%s1708_s29 + $0x200] sm:$0xff] %v466_v0 }
  0x52   : > { %469 = vst [vmem:[%s1708_s29 + $0x208] sm:$0xff] %v468_v1 }
  0x53   : > { %471 = vst [vmem:[%s1708_s29 + $0x210] sm:$0xff] %v470_v2 }
  0x54   : > { %473 = vst [vmem:[%s1708_s29 + $0x218] sm:$0xff] %v472_v3 }
  0x55   : > { %475 = vst [vmem:[%s1708_s29 + $0x220] sm:$0xff] %v474_v4 }
  0x56   : > { %477 = vst [vmem:[%s1708_s29 + $0x228] sm:$0xff] %v476_v5 }
  0x57   : > { %479 = vst [vmem:[%s1708_s29 + $0x230] sm:$0xff] %v478_v6 }
  0x58   : > { %481 = vst [vmem:[%s1708_s29 + $0x238] sm:$0xff] %v480_v7 }
  0x59 PF: > { %p1448_p5 = scmp.ge.s32.totalorder %s1642_s17, 1  ;;  %p486_p6 = scmp.lt.s32.totalorder %s1642_s17, 3 }
  0x5b   : > { %p487_p7 = pnand %p1448_p5, %p486_p6 }
  0x5c   : > { %s493_s6 = sand.u32 (!%p487_p7), 1, %s1634_s15   ;;  %p524_p8 = scmp.lt.s32.totalorder (!%p487_p7), %s1443_s18, 1 }
  0x5d   : > { %490 = sbr.rel (%p487_p7) target bundleno = 395 (0x18b), region = 62 }
  0x5e   : > { %s1595_s11 = smul.u32 (!%p487_p7), 576, %s493_s6 }
  0x60   : > { %s1872_s23 = scalar_lea.vmem (!%p487_p7), [#allocation2], %s1595_s11 }
  0x62   : > { %v1459_v8 = vld [vmem:[%s2166_s1 + $0x8] sm:$0xff]  ;;  %v1476_v9 = vld [vmem:[%s2166_s1 + $0x10] sm:$0xff]  ;;  %v1493_v10 = vld [vmem:[%s2166_s1 + $0x18] sm:$0xff]  ;;  %vm555_vm0 = vcmask 64512   ;;  %s2174_s18 = smov (!%p524_p8, %s1443_s18), 1  ;;  %vm1300_vm1 = vcmask 57344  }
  0x63   : > { %1590 = vmatpush.msra.mxu1 %v1459_v8  ;;  %1591 = vmatpush.msra.mxu2 %v1459_v8  ;;  %v543_v11 = vld [vmem:[%s2166_s1] sm:$0xff]  ;;  %v1544_v13 = vld [vmem:[%s2166_s1 + $0x30] sm:$0xff]  ;;  %v1561_v18 = vld [vmem:[%s2166_s1 + $0x38] sm:$0xff]  ;;  %s1589_s30 = sshll.u32 %s2174_s18, 6  ;;  %s531_s9 = scalar_lea.vmem %s2168_s3, %s2174_s18 }
  0x64   : > { %1592 = vmatpush.msra.mxu3 %v1459_v8  ;;  %v1510_v12 = vld [vmem:[%s2166_s1 + $0x20] sm:$0xff]  ;;  %v1875_v14 = vld [vmem:[%s1872_s23 + $0xb0] sm:$0xff]  ;;  %595 = vmatpush.msra.mxu0 %v1459_v8  ;;  %v1527_v19 = vld [vmem:[%s2166_s1 + $0x28] sm:$0xff]  ;;  %s2091_s7 = scalar_lea.vmem %s2167_s2, %s1589_s30  ;;  %s534_s12 = scalar_lea.vmem %s2169_s4, %s2174_s18 }
  0x65   : > { %735 = vmatpush.msrb.mxu2 %v1476_v9  ;;  %660 = vmatpush.msrb.mxu1 %v543_v11  ;;  %v1878_v15 = vld [vmem:[%s1872_s23 + $0xd0] sm:$0xff]  ;;  %v1578_v20 = vld [vmem:[%s2166_s1 + $0x40] sm:$0xff] }
  0x66   : > { %819 = vmatpush.msrb.mxu3 %v1493_v10  ;;  %v1881_v16 = vld [vmem:[%s1872_s23 + $0xf0] sm:$0xff]  ;;  %1462 = vmatmul.msk.f32.vlgmr.msra.gmra.mxu1 %vm555_vm0, %v1875_v14  ;;  %v1901_v21 = vld [vmem:[%s1872_s23 + $0xc0] sm:$0xff] }
  0x67   : > { %1464 = vmatmul.msk.f32.vlgmr.msra.gmra.mxu2 %vm555_vm0, %v1878_v15  ;;  %v1451_v17 = vld [vmem:[%s1872_s23 + $0x90] sm:$0xff]  ;;  %1466 = vmatmul.msk.f32.vlgmr.msra.gmra.mxu3 %vm555_vm0, %v1881_v16  ;;  %v1904_v22 = vld [vmem:[%s1872_s23 + $0xe0] sm:$0xff] }
  0x68   : > { %1460 = vmatmul.msk.f32.vlgmr.msra.gmra.mxu0 %vm555_vm0, %v1451_v17  ;;  %1070 = vmatpush.msra.mxu2 %v1544_v13  ;;  %v1907_v23 = vld [vmem:[%s1872_s23 + $0x100] sm:$0xff]  ;;  %v1502_v28 = vld [vmem:[%s1872_s23 + $0x1b0] sm:$0xff] }
  0x69   : > { %903 = vmatpush.msrb.mxu0 %v1510_v12  ;;  %1154 = vmatpush.msra.mxu3 %v1561_v18  ;;  %v1910_v24 = vld [vmem:[%s1872_s23 + $0xa0] sm:$0xff]  ;;  %v536_v29 = vld [vmem:[%s1872_s23 + $0x10] sm:$0xff] }
  0x6a   : > { %986 = vmatpush.msra.mxu1 %v1527_v19  ;;  %v535_v25 = vld [vmem:[%s1872_s23] sm:$0xff]  ;;  %v687_v30 = vld [vmem:[%s1872_s23 + $0x11] sm:$0xff] }
  0x6b   : > { %1237 = vmatpush.msra.mxu0 %v1578_v20  ;;  %v686_v26 = vld [vmem:[%s1872_s23 + $0x1] sm:$0xff]  ;;  %v1486_v31 = vld [vmem:[%s1872_s23 + $0x130] sm:$0xff] }
  0x6c   : > { %v1485_v27 = vld [vmem:[%s1872_s23 + $0x120] sm:$0xff]  ;;  %v1504_v36 = vld [vmem:[%s1872_s23 + $0x1d0] sm:$0xff] }
  0x6d   : > { %v1503_v32 = vld [vmem:[%s1872_s23 + $0x1c0] sm:$0xff]  ;;  %v538_v37 = vld [vmem:[%s1872_s23 + $0x30] sm:$0xff] }
  0x6e   : > { %1463 = vmatmul.msk.f32.gmra.mxu1 %vm555_vm0, %v1901_v21  ;;  %v537_v33 = vld [vmem:[%s1872_s23 + $0x20] sm:$0xff]  ;;  %v689_v38 = vld [vmem:[%s1872_s23 + $0x31] sm:$0xff] }
  0x6f   : > { %1465 = vmatmul.msk.f32.gmra.mxu2 %vm555_vm0, %v1904_v22  ;;  %1467 = vmatmul.msk.f32.gmra.mxu3 %vm555_vm0, %v1907_v23  ;;  %v688_v34 = vld [vmem:[%s1872_s23 + $0x21] sm:$0xff]  ;;  %v1488_v39 = vld [vmem:[%s1872_s23 + $0x150] sm:$0xff] }
  0x70   : > { %1461 = vmatmul.msk.f32.gmra.mxu0 %vm555_vm0, %v1910_v24  ;;  %v1487_v35 = vld [vmem:[%s1872_s23 + $0x140] sm:$0xff]  ;;  %v1506_v44 = vld [vmem:[%s1872_s23 + $0x1f0] sm:$0xff] }
  0x71   : > { %v1505_v40 = vld [vmem:[%s1872_s23 + $0x1e0] sm:$0xff]  ;;  %v540_v45 = vld [vmem:[%s1872_s23 + $0x50] sm:$0xff] }
  0x72   : > { %v539_v41 = vld [vmem:[%s1872_s23 + $0x40] sm:$0xff]  ;;  %v691_v46 = vld [vmem:[%s1872_s23 + $0x51] sm:$0xff] }
  0x73   : > { %v690_v42 = vld [vmem:[%s1872_s23 + $0x41] sm:$0xff]  ;;  %v1490_v47 = vld [vmem:[%s1872_s23 + $0x170] sm:$0xff] }
  0x74   : > { %v1489_v43 = vld [vmem:[%s1872_s23 + $0x160] sm:$0xff]  ;;  %v1508_v52 = vld [vmem:[%s1872_s23 + $0x210] sm:$0xff] }
  0x75   : > { %v1507_v48 = vld [vmem:[%s1872_s23 + $0x200] sm:$0xff]  ;;  %v542_v53 = vld [vmem:[%s1872_s23 + $0x70] sm:$0xff] }
  0x76   : > { %1468 = vmatmul.msk.f32.vlgmr.msrb.gmra.mxu1 %vm555_vm0, %v535_v25  ;;  %v541_v49 = vld [vmem:[%s1872_s23 + $0x60] sm:$0xff]  ;;  %v693_v54 = vld [vmem:[%s1872_s23 + $0x71] sm:$0xff] }
  0x77   : > { %1477 = vmatmul.msk.f32.vlgmr.msrb.gmra.mxu2 %vm555_vm0, %v686_v26  ;;  %1494 = vmatmul.msk.f32.vlgmr.msrb.gmra.mxu3 %vm555_vm0, %v1485_v27  ;;  %v692_v50 = vld [vmem:[%s1872_s23 + $0x61] sm:$0xff]  ;;  %v1492_v55 = vld [vmem:[%s1872_s23 + $0x190] sm:$0xff] }
  0x78   : > { %1511 = vmatmul.msk.f32.vlgmr.msrb.gmra.mxu0 %vm555_vm0, %v1502_v28  ;;  %v1491_v51 = vld [vmem:[%s1872_s23 + $0x180] sm:$0xff]  ;;  %v1520_v58 = vld [vmem:[%s1872_s23 + $0x131] sm:$0xff] }
  0x79   : > { %v1509_v56 = vld [vmem:[%s1872_s23 + $0x220] sm:$0xff]  ;;  %v1522_v60 = vld [vmem:[%s1872_s23 + $0x151] sm:$0xff] }
  0x7a   : > { %v1519_v57 = vld [vmem:[%s1872_s23 + $0x121] sm:$0xff]  ;;  %v1524_v62 = vld [vmem:[%s1872_s23 + $0x171] sm:$0xff] }
  0x7b   : > { %v1521_v59 = vld [vmem:[%s1872_s23 + $0x141] sm:$0xff]  ;;  %v1526_v5 = vld [vmem:[%s1872_s23 + $0x191] sm:$0xff] }
  0x7c   : > { %v1523_v61 = vld [vmem:[%s1872_s23 + $0x161] sm:$0xff]  ;;  %v1560_v7 = vld [vmem:[%s1872_s23 + $0x110] sm:$0xff] }
  0x7d   : > { %v1525_v0 = vld [vmem:[%s1872_s23 + $0x181] sm:$0xff] }
  0x7e   : > { %1469 = vmatmul.msk.f32.gmra.mxu1 %vm555_vm0, %v536_v29  ;;  %v1543_v6 = vld [vmem:[%s1872_s23 + $0x80] sm:$0xff] }
  0x7f   : > { %1478 = vmatmul.msk.f32.gmra.mxu2 %vm555_vm0, %v687_v30  ;;  %1495 = vmatmul.msk.f32.gmra.mxu3 %vm555_vm0, %v1486_v31  ;;  %v1577_v9 = vld [vmem:[%s1872_s23 + $0x81] sm:$0xff] }
  0x80   : > { %1512 = vmatmul.msk.f32.gmra.mxu0 %vm555_vm0, %v1503_v32 }
  0x86   : > { %1470 = vmatmul.msk.f32.gmra.mxu1 %vm555_vm0, %v537_v33 }
  0x87   : > { %1479 = vmatmul.msk.f32.gmra.mxu2 %vm555_vm0, %v688_v34  ;;  %1496 = vmatmul.msk.f32.gmra.mxu3 %vm555_vm0, %v1487_v35 }
  0x88   : > { %1513 = vmatmul.msk.f32.gmra.mxu0 %vm555_vm0, %v1504_v36 }
  0x8e   : > { %1471 = vmatmul.msk.f32.gmra.mxu1 %vm555_vm0, %v538_v37 }
  0x8f   : > { %1480 = vmatmul.msk.f32.gmra.mxu2 %vm555_vm0, %v689_v38  ;;  %1497 = vmatmul.msk.f32.gmra.mxu3 %vm555_vm0, %v1488_v39 }
  0x90   : > { %1514 = vmatmul.msk.f32.gmra.mxu0 %vm555_vm0, %v1505_v40 }
  0x96   : > { %1472 = vmatmul.msk.f32.gmra.mxu1 %vm555_vm0, %v539_v41 }
  0x97   : > { %1481 = vmatmul.msk.f32.gmra.mxu2 %vm555_vm0, %v690_v42  ;;  %1498 = vmatmul.msk.f32.gmra.mxu3 %vm555_vm0, %v1489_v43 }
  0x98   : > { %1515 = vmatmul.msk.f32.gmra.mxu0 %vm555_vm0, %v1506_v44 }
  0x9e   : > { %1473 = vmatmul.msk.f32.gmra.mxu1 %vm555_vm0, %v540_v45 }
  0x9f   : > { %1482 = vmatmul.msk.f32.gmra.mxu2 %vm555_vm0, %v691_v46  ;;  %1499 = vmatmul.msk.f32.gmra.mxu3 %vm555_vm0, %v1490_v47 }
  0xa0   : > { %1516 = vmatmul.msk.f32.gmra.mxu0 %vm555_vm0, %v1507_v48 }
  0xa6   : > { %1474 = vmatmul.msk.f32.gmra.mxu1 %vm555_vm0, %v541_v49 }
  0xa7   : > { %1483 = vmatmul.msk.f32.gmra.mxu2 %vm555_vm0, %v692_v50  ;;  %1500 = vmatmul.msk.f32.gmra.mxu3 %vm555_vm0, %v1491_v51 }
  0xa8   : > { %1517 = vmatmul.msk.f32.gmra.mxu0 %vm555_vm0, %v1508_v52 }
  0xae   : > { %1475 = vmatmul.msk.f32.gmra.mxu1 %vm555_vm0, %v542_v53 }
  0xaf   : > { %1484 = vmatmul.msk.f32.gmra.mxu2 %vm555_vm0, %v693_v54  ;;  %1501 = vmatmul.msk.f32.gmra.mxu3 %vm555_vm0, %v1492_v55 }
  0xb0   : > { %1518 = vmatmul.msk.f32.gmra.mxu0 %vm555_vm0, %v1509_v56 }
  0xb6   : > { %1528 = vmatmul.msk.f32.vlgmr.msra.gmra.mxu1 %vm555_vm0, %v1519_v57 }
  0xb7   : > { %1545 = vmatmul.msk.f32.vlgmr.msra.gmra.mxu2 %vm555_vm0, %v536_v29  ;;  %1562 = vmatmul.msk.f32.vlgmr.msra.gmra.mxu3 %vm555_vm0, %v1910_v24 }
  0xb8   : > { %1579 = vmatmul.msk.f32.vlgmr.msra.gmra.mxu0 %vm555_vm0, %v687_v30 }
  0xbe   : > { %1529 = vmatmul.msk.f32.gmra.mxu1 %vm555_vm0, %v1520_v58 }
  0xbf   : > { %1546 = vmatmul.msk.f32.gmra.mxu2 %vm555_vm0, %v537_v33  ;;  %1563 = vmatmul.msk.f32.gmra.mxu3 %vm555_vm0, %v1875_v14 }
  0xc0   : > { %1580 = vmatmul.msk.f32.gmra.mxu0 %vm555_vm0, %v688_v34 }
  0xc6   : > { %1530 = vmatmul.msk.f32.gmra.mxu1 %vm555_vm0, %v1521_v59 }
  0xc7   : > { %1547 = vmatmul.msk.f32.gmra.mxu2 %vm555_vm0, %v538_v37  ;;  %1564 = vmatmul.msk.f32.gmra.mxu3 %vm555_vm0, %v1901_v21 }
  0xc8   : > { %1581 = vmatmul.msk.f32.gmra.mxu0 %vm555_vm0, %v689_v38 }
  0xce   : > { %1531 = vmatmul.msk.f32.gmra.mxu1 %vm555_vm0, %v1522_v60 }
  0xcf   : > { %1548 = vmatmul.msk.f32.gmra.mxu2 %vm555_vm0, %v539_v41  ;;  %1565 = vmatmul.msk.f32.gmra.mxu3 %vm555_vm0, %v1878_v15 }
  0xd0   : > { %1582 = vmatmul.msk.f32.gmra.mxu0 %vm555_vm0, %v690_v42 }
  0xd6   : > { %1532 = vmatmul.msk.f32.gmra.mxu1 %vm555_vm0, %v1523_v61 }
  0xd7   : > { %1549 = vmatmul.msk.f32.gmra.mxu2 %vm555_vm0, %v540_v45  ;;  %1566 = vmatmul.msk.f32.gmra.mxu3 %vm555_vm0, %v1904_v22 }
  0xd8   : > { %1583 = vmatmul.msk.f32.gmra.mxu0 %vm555_vm0, %v691_v46 }
  0xde   : > { %1533 = vmatmul.msk.f32.gmra.mxu1 %vm555_vm0, %v1524_v62 }
  0xdf   : > { %1550 = vmatmul.msk.f32.gmra.mxu2 %vm555_vm0, %v541_v49  ;;  %1567 = vmatmul.msk.f32.gmra.mxu3 %vm555_vm0, %v1881_v16 }
  0xe0   : > { %1584 = vmatmul.msk.f32.gmra.mxu0 %vm555_vm0, %v692_v50 }
  0xe3   : > { %v2020_v63 = vpop.f32.mrf.mxu1 }
  0xe5   : > { %v597_v1 = vpop.f32.mrf.mxu0 }
  0xe6   : > { %1534 = vmatmul.msk.f32.gmra.mxu1 %vm555_vm0, %v1525_v0 }
  0xe7   : > { %1551 = vmatmul.msk.f32.gmra.mxu2 %vm555_vm0, %v542_v53  ;;  %1568 = vmatmul.msk.f32.gmra.mxu3 %vm555_vm0, %v1907_v23 }
  0xe8   : > { %1585 = vmatmul.msk.f32.gmra.mxu0 %vm555_vm0, %v693_v54 }
  0xea   : > { %v2028_v2 = vpop.f32.mrf.mxu2  ;;  %v2030_v3 = vpop.f32.mrf.mxu3 }
  0xeb   : > { %v2032_v4 = vpop.f32.mrf.mxu1 }
  0xed   : > { %v600_v8 = vpop.f32.mrf.mxu0 }
  0xee   : > { %1535 = vmatmul.msk.f32.gmra.mxu1 %vm555_vm0, %v1526_v5 }
  0xef   : > { %1552 = vmatmul.msk.f32.gmra.mxu2 %vm555_vm0, %v1543_v6  ;;  %1569 = vmatmul.msk.f32.gmra.mxu3 %vm555_vm0, %v1560_v7 }
  0xf0   : > { %1586 = vmatmul.msk.f32.gmra.mxu0 %vm555_vm0, %v1577_v9 }
  0xf2   : > { %v2042_v10 = vpop.f32.mrf.mxu2  ;;  %v2044_v11 = vpop.f32.mrf.mxu3 }
  0xf3   : > { %v662_v12 = vpop.f32.mrf.mxu1 }
  0xf4   : > { %v663_v41 = vadd.f32 %v662_v12, %v597_v1 }
  0xf5   : > { %v905_v13 = vpop.f32.mrf.mxu0 }
  0xfa   : > { %v737_v14 = vpop.f32.mrf.mxu2  ;;  %v821_v15 = vpop.f32.mrf.mxu3 }
  0xfb   : > { %v665_v16 = vpop.f32.mrf.mxu1  ;;  %v761_v43 = vadd.f32 %v737_v14, %v663_v41 }
  0xfc   : > { %v666_v48 = vadd.f32 %v665_v16, %v600_v8 }
  0xfd   : > { %v908_v17 = vpop.f32.mrf.mxu0  ;;  %v845_v45 = vadd.f32 %v821_v15, %v761_v43 }
  0xff   : > { %v929_v50 = vadd.f32 %v905_v13, %v845_v45 }
 0x102   : > { %v740_v18 = vpop.f32.mrf.mxu2  ;;  %v824_v19 = vpop.f32.mrf.mxu3 }
 0x103   : > { %v668_v20 = vpop.f32.mrf.mxu1  ;;  %v762_v51 = vadd.f32 %v740_v18, %v666_v48 }
 0x104   : > { %v669_v58 = vadd.f32 %v668_v20, %v2020_v63 }
 0x105   : > { %v911_v21 = vpop.f32.mrf.mxu0  ;;  %v846_v54 = vadd.f32 %v824_v19, %v762_v51 }
 0x107   : > { %v930_v61 = vadd.f32 %v908_v17, %v846_v54 }
 0x10a   : > { %v743_v22 = vpop.f32.mrf.mxu2  ;;  %v827_v23 = vpop.f32.mrf.mxu3 }
 0x10b   : > { %v671_v24 = vpop.f32.mrf.mxu1  ;;  %v763_v62 = vadd.f32 %v743_v22, %v669_v58 }
 0x10c   : > { %v672_v9 = vadd.f32 %v671_v24, %v2032_v4 }
 0x10d   : > { %v2046_v25 = vpop.f32.mrf.mxu0  ;;  %v847_v6 = vadd.f32 %v827_v23, %v763_v62 }
 0x10f   : > { %v931_v14 = vadd.f32 %v911_v21, %v847_v6 }
 0x112   : > { %v746_v26 = vpop.f32.mrf.mxu2  ;;  %v830_v27 = vpop.f32.mrf.mxu3 }
 0x113   : > { %v2048_v28 = vpop.f32.mrf.mxu1  ;;  %v764_v15 = vadd.f32 %v746_v26, %v672_v9 }
 0x114   : > { %v675_v48 = vadd.f32 %v2048_v28, %v2028_v2 }
 0x115   : > { %v2050_v29 = vpop.f32.mrf.mxu0  ;;  %v848_v43 = vadd.f32 %v830_v27, %v764_v15 }
 0x117   : > { %v932_v51 = vadd.f32 %v2046_v25, %v848_v43 }
 0x11a   : > { %v2052_v30 = vpop.f32.mrf.mxu2  ;;  %v2054_v31 = vpop.f32.mrf.mxu3 }
 0x11b   : > { %v2056_v32 = vpop.f32.mrf.mxu1 }
 0x11d   : > { %v2058_v33 = vpop.f32.mrf.mxu0 }
 0x122   : > { %v2060_v34 = vpop.f32.mrf.mxu2  ;;  %v2062_v35 = vpop.f32.mrf.mxu3 }
 0x123   : > { %v2064_v36 = vpop.f32.mrf.mxu1 }
 0x125   : > { %v2066_v37 = vpop.f32.mrf.mxu0 }
 0x12a   : > { %v2068_v38 = vpop.f32.mrf.mxu2  ;;  %v2070_v39 = vpop.f32.mrf.mxu3 }
 0x12b   : > { %v2072_v40 = vpop.f32.mrf.mxu1 }
 0x12d   : > { %v2074_v42 = vpop.f32.mrf.mxu0 }
 0x132   : > { %v2076_v44 = vpop.f32.mrf.mxu2  ;;  %v2078_v46 = vpop.f32.mrf.mxu3 }
 0x133   : > { %v988_v47 = vpop.f32.mrf.mxu1 }
 0x134   : > { %v1012_v52 = vadd.f32 %v988_v47, %v929_v50 }
 0x135   : > { %v1239_v49 = vpop.f32.mrf.mxu0 }
 0x13a   : > { %v1072_v53 = vpop.f32.mrf.mxu2  ;;  %v1156_v56 = vpop.f32.mrf.mxu3 }
 0x13b   : > { %v1096_v55 = vadd.f32 %v1072_v53, %v1012_v52  ;;  %v991_v57 = vpop.f32.mrf.mxu1  ;;  %v765_v52 = vadd.f32 %v2052_v30, %v675_v48  ;;  %v678_v30 = vadd.f32 %v2056_v32, %v2042_v10 }
 0x13c   : > { %v1013_v1 = vadd.f32 %v991_v57, %v930_v61 }
 0x13d   : > { %v1180_v59 = vadd.f32 %v1156_v56, %v1096_v55  ;;  %v1242_v60 = vpop.f32.mrf.mxu0  ;;  %v849_v58 = vadd.f32 %v2054_v31, %v765_v52 }
 0x13f   : > { %v1263_v0 = vadd.f32 %v1239_v49, %v1180_v59 }
 0x141   : > { %1271 = vst.msk [vmem:[%s2091_s7] sm:$0xff] %vm555_vm0, %v1263_v0  ;;  %v1302_v16 = vmul.f32 %v1263_v0, %v1263_v0  ;;  %v1279_v17 = vsel %vm555_vm0, %v1263_v0, 0.0  ;;  %v933_v0 = vadd.f32 %v2050_v29, %v849_v58 }
 0x142   : > { %v1075_v5 = vpop.f32.mrf.mxu2  ;;  %v1159_v8 = vpop.f32.mrf.mxu3 }
 0x143   : > { %v1097_v7 = vadd.f32 %v1075_v5, %v1013_v1  ;;  %v994_v63 = vpop.f32.mrf.mxu1  ;;  %v1310_v4 = vsel %vm555_vm0, %v1302_v16, 0.0  ;;  %v766_v1 = vadd.f32 %v2060_v34, %v678_v30  ;;  %v681_v34 = vadd.f32 %v2064_v36, %v2030_v3 }
 0x144   : > { %v1014_v19 = vadd.f32 %v994_v63, %v931_v14 }
 0x145   : > { %v1181_v12 = vadd.f32 %v1159_v8, %v1097_v7  ;;  %v1245_v13 = vpop.f32.mrf.mxu0  ;;  %v850_v9 = vadd.f32 %v2062_v35, %v766_v1  ;;  %v767_v16 = vadd.f32 %v2068_v38, %v681_v34  ;;  %v684_v38 = vadd.f32 %v2072_v40, %v2044_v11 }
 0x147   : > { %v1264_v18 = vadd.f32 %v1242_v60, %v1181_v12  ;;  %v934_v15 = vadd.f32 %v2058_v33, %v850_v9 }
 0x149   : > { %1272 = vst.msk [vmem:[%s2091_s7 + $0x8] sm:$0xff] %vm555_vm0, %v1264_v18  ;;  %v1280_v20 = vsel %vm555_vm0, %v1264_v18, 0.0  ;;  %v1303_v22 = vmul.f32 %v1264_v18, %v1264_v18 }
 0x14a   : > { %v1281_v23 = vadd.f32 %v1280_v20, %v1279_v17  ;;  %v1078_v41 = vpop.f32.mrf.mxu2  ;;  %v1162_v26 = vpop.f32.mrf.mxu3 }
 0x14b   : > { %v1311_v24 = vsel %vm555_vm0, %v1303_v22, 0.0  ;;  %v1098_v21 = vadd.f32 %v1078_v41, %v1014_v19  ;;  %v997_v47 = vpop.f32.mrf.mxu1  ;;  %v851_v41 = vadd.f32 %v2070_v39, %v767_v16 }
 0x14c   : > { %v1312_v45 = vadd.f32 %v1311_v24, %v1310_v4  ;;  %v1015_v54 = vadd.f32 %v997_v47, %v932_v51 }
 0x14d   : > { %v1182_v49 = vadd.f32 %v1162_v26, %v1098_v21  ;;  %v1248_v50 = vpop.f32.mrf.mxu0  ;;  %v935_v21 = vadd.f32 %v2066_v37, %v851_v41  ;;  %v768_v26 = vadd.f32 %v2076_v44, %v684_v38 }
 0x14f   : > { %v1265_v53 = vadd.f32 %v1245_v13, %v1182_v49  ;;  %v852_v52 = vadd.f32 %v2078_v46, %v768_v26 }
 0x151   : > { %1273 = vst.msk [vmem:[%s2091_s7 + $0x10] sm:$0xff] %vm555_vm0, %v1265_v53  ;;  %v1282_v27 = vsel %vm555_vm0, %v1265_v53, 0.0  ;;  %v1304_v55 = vmul.f32 %v1265_v53, %v1265_v53 }
 0x152   : > { %v1283_v56 = vadd.f32 %v1282_v27, %v1281_v23  ;;  %v1081_v57 = vpop.f32.mrf.mxu2  ;;  %v1165_v59 = vpop.f32.mrf.mxu3  ;;  %v936_v27 = vadd.f32 %v2074_v42, %v852_v52 }
 0x153   : > { %v1313_v2 = vsel %vm555_vm0, %v1304_v55, 0.0  ;;  %v1099_v28 = vadd.f32 %v1081_v57, %v1015_v54  ;;  %v1000_v25 = vpop.f32.mrf.mxu1 }
 0x154   : > { %v1314_v60 = vadd.f32 %v1313_v2, %v1312_v45  ;;  %v1016_v6 = vadd.f32 %v1000_v25, %v933_v0 }
 0x155   : > { %v1183_v61 = vadd.f32 %v1165_v59, %v1099_v28  ;;  %v1251_v62 = vpop.f32.mrf.mxu0 }
 0x157   : > { %v1266_v5 = vadd.f32 %v1248_v50, %v1183_v61 }
 0x159   : > { %1274 = vst.msk [vmem:[%s2091_s7 + $0x18] sm:$0xff] %vm555_vm0, %v1266_v5  ;;  %v1284_v31 = vsel %vm555_vm0, %v1266_v5, 0.0  ;;  %v1305_v7 = vmul.f32 %v1266_v5, %v1266_v5 }
 0x15a   : > { %v1285_v8 = vadd.f32 %v1284_v31, %v1283_v56  ;;  %v1084_v63 = vpop.f32.mrf.mxu2  ;;  %v1168_v12 = vpop.f32.mrf.mxu3 }
 0x15b   : > { %v1315_v10 = vsel %vm555_vm0, %v1305_v7, 0.0  ;;  %v1100_v32 = vadd.f32 %v1084_v63, %v1016_v6  ;;  %v1003_v29 = vpop.f32.mrf.mxu1 }
 0x15c   : > { %v1316_v13 = vadd.f32 %v1315_v10, %v1314_v60  ;;  %v1017_v19 = vadd.f32 %v1003_v29, %v934_v15 }
 0x15d   : > { %v1184_v14 = vadd.f32 %v1168_v12, %v1100_v32  ;;  %v1254_v17 = vpop.f32.mrf.mxu0 }
 0x15f   : > { %v1267_v18 = vadd.f32 %v1251_v62, %v1184_v14 }
 0x161   : > { %1275 = vst.msk [vmem:[%s2091_s7 + $0x20] sm:$0xff] %vm555_vm0, %v1267_v18  ;;  %v1286_v35 = vsel %vm555_vm0, %v1267_v18, 0.0  ;;  %v1306_v20 = vmul.f32 %v1267_v18, %v1267_v18 }
 0x162   : > { %v1287_v22 = vadd.f32 %v1286_v35, %v1285_v8  ;;  %v1087_v23 = vpop.f32.mrf.mxu2  ;;  %v1171_v43 = vpop.f32.mrf.mxu3 }
 0x163   : > { %v1317_v3 = vsel %vm555_vm0, %v1306_v20, 0.0  ;;  %v1101_v36 = vadd.f32 %v1087_v23, %v1017_v19  ;;  %v1006_v4 = vpop.f32.mrf.mxu1 }
 0x164   : > { %v1318_v33 = vadd.f32 %v1317_v3, %v1316_v13  ;;  %v1018_v47 = vadd.f32 %v1006_v4, %v935_v21 }
 0x165   : > { %v1185_v24 = vadd.f32 %v1171_v43, %v1101_v36  ;;  %v1257_v51 = vpop.f32.mrf.mxu0 }
 0x167   : > { %v1268_v45 = vadd.f32 %v1254_v17, %v1185_v24 }
 0x169   : > { %1276 = vst.msk [vmem:[%s2091_s7 + $0x28] sm:$0xff] %vm555_vm0, %v1268_v45  ;;  %v1288_v39 = vsel %vm555_vm0, %v1268_v45, 0.0  ;;  %v1307_v48 = vmul.f32 %v1268_v45, %v1268_v45 }
 0x16a   : > { %v1289_v49 = vadd.f32 %v1288_v39, %v1287_v22  ;;  %v1090_v50 = vpop.f32.mrf.mxu2  ;;  %v1174_v53 = vpop.f32.mrf.mxu3 }
 0x16b   : > { %v1319_v11 = vsel %vm555_vm0, %v1307_v48, 0.0  ;;  %v1102_v40 = vadd.f32 %v1090_v50, %v1018_v47  ;;  %v1009_v44 = vpop.f32.mrf.mxu1 }
 0x16c   : > { %v1320_v37 = vadd.f32 %v1319_v11, %v1318_v33  ;;  %v1019_v56 = vadd.f32 %v1009_v44, %v936_v27 }
 0x16d   : > { %v1186_v54 = vadd.f32 %v1174_v53, %v1102_v40  ;;  %v1260_v30 = vpop.f32.mrf.mxu0 }
 0x16f   : > { %v1269_v55 = vadd.f32 %v1257_v51, %v1186_v54 }
 0x171   : > { %1277 = vst.msk [vmem:[%s2091_s7 + $0x30] sm:$0xff] %vm555_vm0, %v1269_v55  ;;  %v1290_v57 = vsel %vm555_vm0, %v1269_v55, 0.0  ;;  %v1308_v58 = vmul.f32 %v1269_v55, %v1269_v55 }
 0x172   : > { %v1291_v2 = vadd.f32 %v1290_v57, %v1289_v49  ;;  %v1093_v28 = vpop.f32.mrf.mxu2  ;;  %v1177_v60 = vpop.f32.mrf.mxu3 }
 0x173   : > { %v1321_v46 = vsel %vm555_vm0, %v1308_v58, 0.0  ;;  %v1103_v59 = vadd.f32 %v1093_v28, %v1019_v56 }
 0x174   : > { %v1322_v25 = vadd.f32 %v1321_v46, %v1320_v37 }
 0x175   : > { %v1187_v61 = vadd.f32 %v1177_v60, %v1103_v59 }
 0x177   : > { %v1270_v62 = vadd.f32 %v1260_v30, %v1187_v61 }
 0x179   : > { %1278 = vst.msk [vmem:[%s2091_s7 + $0x38] sm:$0xff] %vm555_vm0, %v1270_v62  ;;  %v1292_v42 = vsel %vm555_vm0, %v1270_v62, 0.0  ;;  %v1309_v0 = vmul.f32 %v1270_v62, %v1270_v62 }
 0x17a   : > { %v1293_v1 = vadd.f32 %v1292_v42, %v1291_v2 }
 0x17b   : > { %v1323_v5 = vsel %vm555_vm0, %v1309_v0, 0.0 }
 0x17c   : > { %v1294_v6 = vrot.slane %v1293_v1, 4  ;;  %v1324_v31 = vadd.f32 %v1323_v5, %v1322_v25 }
 0x17e   : > { %v1295_v7 = vadd.f32 %v1294_v6, %v1293_v1  ;;  %v1325_v8 = vrot.slane %v1324_v31, 4 }
 0x180   : > { %v1296_v63 = vrot.slane %v1295_v7, 2  ;;  %v1326_v9 = vadd.f32 %v1325_v8, %v1324_v31 }
 0x182   : > { %v1297_v10 = vadd.f32 %v1296_v63, %v1295_v7  ;;  %v1327_v32 = vrot.slane %v1326_v9, 2 }
 0x184   : > { %v1298_v12 = vrot.slane %v1297_v10, 1  ;;  %v1328_v13 = vadd.f32 %v1327_v32, %v1326_v9 }
 0x186   : > { %v1299_v29 = vadd.f32 %v1298_v12, %v1297_v10  ;;  %v1329_v34 = vrot.slane %v1328_v13, 1 }
 0x188   : > { %1301 = vst.msk [vmem:[%s531_s9] sm:$0x1] %vm1300_vm1, %v1299_v29  ;;  %v1330_v14 = vadd.f32 %v1329_v34, %v1328_v13 }
 0x18a   : > { %1331 = vst.msk [vmem:[%s534_s12] sm:$0x1] %vm1300_vm1, %v1330_v14 }
 0x18b PF: > { %p12_p9 = scmp.ge.s32.totalorder %s1686_s19, 4   ;;  %s2170_s15 = smov %s1638_s16 }
 0x18c   : > { %s2171_s16 = smov %s1695_s22  ;;  %s2172_s17 = smov %s1686_s19 }
 0x18d   :  { %14 = sbr.rel (!%p12_p9) target bundleno = 2 (0x2), region = 138 }

// kernel: bottleneck_forward.10
= control target key start
LH: loop header
LB: loop body
LE: loop exit
PB: predicated region body
PF: predicated region fallthrough
CT: control target
= control target key end

     0   :  { %vm78_vm0 = vcmask 130048   ;;  %vm192_vm1 = vcmask 261120   ;;  %vm246_vm2 = vcmask 253952   ;;  %s611_s3 = inlined_call_operand.vmem [shape: f32[16,32], index: 3, kind: input, shape index: {}]   ;;  %s612_s0 = inlined_call_operand.vmem [shape: f32[128,16], index: 0, kind: input, shape index: {}]   ;;  %s613_s1 = inlined_call_operand.vmem [shape: f32[1,16], index: 1, kind: input, shape index: {}]   ;;  %s614_s2 = inlined_call_operand.vmem [shape: f32[1,16], index: 2, kind: input, shape index: {}]   ;;  %s615_s4 = inlined_call_operand.vmem [shape: f32[128,32], index: 4, kind: output, shape index: {0}]   ;;  %s616_s5 = inlined_call_operand.vmem [shape: f32[1,1,32], index: 5, kind: output, shape index: {1}]   ;;  %s617_s6 = inlined_call_operand.vmem [shape: f32[1,1,32], index: 6, kind: output, shape index: {2}]  }
   0x1   :  { %v77_v0 = vld [vmem:[%s611_s3 + $0x8] sm:$0xff]  ;;  %v76_v1 = vld [vmem:[%s611_s3] sm:$0xff]  ;;  %v22_v26 = vld [vmem:[%s612_s0 + $0x10] sm:$0xff] }
   0x2   :  { %v20_v2 = vld [vmem:[%s612_s0] sm:$0xff]  ;;  %141 = vmatpush.msra.mxu0 %v77_v0  ;;  %330 = vmatpush.msra.mxu1 %v77_v0  ;;  %v21_v9 = vld [vmem:[%s612_s0 + $0x8] sm:$0xff]  ;;  %v26_v28 = vld [vmem:[%s612_s0 + $0x30] sm:$0xff] }
   0x3   :  { %v385_v3 = vld [vmem:[%s613_s1] ss:$0 sm:$0xff]  ;;  %331 = vmatpush.msra.mxu2 %v77_v0  ;;  %332 = vmatpush.msra.mxu3 %v77_v0  ;;  %v25_v11 = vld [vmem:[%s612_s0 + $0x28] sm:$0xff]  ;;  %v30_v29 = vld [vmem:[%s612_s0 + $0x50] sm:$0xff] }
   0x4   :  { %v390_v4 = vld [vmem:[%s614_s2] ss:$0 sm:$0xff]  ;;  %142 = vmatpush.msra.mxu0 %v76_v1  ;;  %v40_v6 = vmul.f32 %v385_v3, %v20_v2  ;;  %333 = vmatpush.msra.mxu1 %v76_v1  ;;  %v29_v15 = vld [vmem:[%s612_s0 + $0x48] sm:$0xff]  ;;  %v41_v18 = vmul.f32 %v385_v3, %v21_v9  ;;  %v45_v19 = vmul.f32 %v385_v3, %v25_v11  ;;  %v34_v33 = vld [vmem:[%s612_s0 + $0x70] sm:$0xff] }
   0x5   :  { %v24_v5 = vld [vmem:[%s612_s0 + $0x20] sm:$0xff]  ;;  %334 = vmatpush.msra.mxu2 %v76_v1  ;;  %335 = vmatpush.msra.mxu3 %v76_v1  ;;  %v33_v20 = vld [vmem:[%s612_s0 + $0x68] sm:$0xff]  ;;  %v49_v21 = vmul.f32 %v385_v3, %v29_v15  ;;  %v42_v31 = vmul.f32 %v385_v3, %v22_v26  ;;  %v46_v32 = vmul.f32 %v385_v3, %v26_v28  ;;  %v23_v38 = vld [vmem:[%s612_s0 + $0x18] sm:$0xff] }
   0x6   :  { %v44_v7 = vmul.f32 %v385_v3, %v24_v5  ;;  %v28_v8 = vld [vmem:[%s612_s0 + $0x40] sm:$0xff]  ;;  %v60_v13 = vadd.f32 %v390_v4, %v40_v6  ;;  %v53_v23 = vmul.f32 %v385_v3, %v33_v20  ;;  %v61_v24 = vadd.f32 %v390_v4, %v41_v18  ;;  %v27_v40 = vld [vmem:[%s612_s0 + $0x38] sm:$0xff] }
   0x7   :  { %v48_v10 = vmul.f32 %v385_v3, %v28_v8  ;;  %v32_v12 = vld [vmem:[%s612_s0 + $0x60] sm:$0xff]  ;;  %v65_v25 = vadd.f32 %v390_v4, %v45_v19  ;;  %v69_v27 = vadd.f32 %v390_v4, %v49_v21  ;;  %v50_v34 = vmul.f32 %v385_v3, %v30_v29  ;;  %v31_v41 = vld [vmem:[%s612_s0 + $0x58] sm:$0xff] }
   0x8   :  { %v64_v14 = vadd.f32 %v390_v4, %v44_v7  ;;  %v52_v17 = vmul.f32 %v385_v3, %v32_v12  ;;  %314 = vmatmul.msk.f32.vlgmr.msra.gmra.mxu0 %vm78_vm0, %v60_v13  ;;  %v73_v30 = vadd.f32 %v390_v4, %v53_v23  ;;  %v54_v35 = vmul.f32 %v385_v3, %v34_v33  ;;  %v35_v45 = vld [vmem:[%s612_s0 + $0x78] sm:$0xff] }
   0x9   :  { %v68_v16 = vadd.f32 %v390_v4, %v48_v10  ;;  %v62_v36 = vadd.f32 %v390_v4, %v42_v31  ;;  %v66_v37 = vadd.f32 %v390_v4, %v46_v32  ;;  %v70_v39 = vadd.f32 %v390_v4, %v50_v34 }
   0xa   :  { %318 = vmatmul.msk.f32.vlgmr.msra.gmra.mxu1 %vm78_vm0, %v64_v14  ;;  %v72_v22 = vadd.f32 %v390_v4, %v52_v17  ;;  %v74_v42 = vadd.f32 %v390_v4, %v54_v35  ;;  %v43_v43 = vmul.f32 %v385_v3, %v23_v38  ;;  %v47_v44 = vmul.f32 %v385_v3, %v27_v40 }
   0xb   :  { %322 = vmatmul.msk.f32.vlgmr.msra.gmra.mxu2 %vm78_vm0, %v68_v16  ;;  %v51_v46 = vmul.f32 %v385_v3, %v31_v41  ;;  %v55_v47 = vmul.f32 %v385_v3, %v35_v45 }
   0xc   :  { %326 = vmatmul.msk.f32.vlgmr.msra.gmra.mxu3 %vm78_vm0, %v72_v22  ;;  %v63_v48 = vadd.f32 %v390_v4, %v43_v43  ;;  %v67_v49 = vadd.f32 %v390_v4, %v47_v44 }
   0xd   :  { %v71_v50 = vadd.f32 %v390_v4, %v51_v46  ;;  %v75_v51 = vadd.f32 %v390_v4, %v55_v47 }
  0x10   :  { %315 = vmatmul.msk.f32.gmra.mxu0 %vm78_vm0, %v61_v24 }
  0x12   :  { %319 = vmatmul.msk.f32.gmra.mxu1 %vm78_vm0, %v65_v25 }
  0x13   :  { %323 = vmatmul.msk.f32.gmra.mxu2 %vm78_vm0, %v69_v27 }
  0x14   :  { %327 = vmatmul.msk.f32.gmra.mxu3 %vm78_vm0, %v73_v30 }
  0x18   :  { %316 = vmatmul.msk.f32.gmra.mxu0 %vm78_vm0, %v62_v36 }
  0x1a   :  { %320 = vmatmul.msk.f32.gmra.mxu1 %vm78_vm0, %v66_v37 }
  0x1b   :  { %324 = vmatmul.msk.f32.gmra.mxu2 %vm78_vm0, %v70_v39 }
  0x1c   :  { %328 = vmatmul.msk.f32.gmra.mxu3 %vm78_vm0, %v74_v42 }
  0x20   :  { %317 = vmatmul.msk.f32.gmra.mxu0 %vm78_vm0, %v63_v48 }
  0x22   :  { %321 = vmatmul.msk.f32.gmra.mxu1 %vm78_vm0, %v67_v49 }
  0x23   :  { %325 = vmatmul.msk.f32.gmra.mxu2 %vm78_vm0, %v71_v50 }
  0x24   :  { %329 = vmatmul.msk.f32.gmra.mxu3 %vm78_vm0, %v75_v51 }
  0x85   :  { %v144_v52 = vpop.f32.mrf.mxu0 }
  0x86   :  { %193 = vst.msk [vmem:[%s615_s4] sm:$0xff] %vm192_vm1, %v144_v52  ;;  %v248_v63 = vmul.f32 %v144_v52, %v144_v52  ;;  %v209_v2 = vsel %vm192_vm1, %v144_v52, 0.0 }
  0x87   :  { %v156_v53 = vpop.f32.mrf.mxu1 }
  0x88   :  { %197 = vst.msk [vmem:[%s615_s4 + $0x20] sm:$0xff] %vm192_vm1, %v156_v53  ;;  %v264_v6 = vsel %vm192_vm1, %v248_v63, 0.0  ;;  %v252_v13 = vmul.f32 %v156_v53, %v156_v53  ;;  %v216_v19 = vsel %vm192_vm1, %v156_v53, 0.0 }
  0x8a   :  { %v271_v24 = vsel %vm192_vm1, %v252_v13, 0.0 }
  0x8d   :  { %v147_v55 = vpop.f32.mrf.mxu0 }
  0x8e   :  { %v493_v54 = vpop.f32.mrf.mxu2  ;;  %194 = vst.msk [vmem:[%s615_s4 + $0x8] sm:$0xff] %vm192_vm1, %v147_v55  ;;  %v249_v61 = vmul.f32 %v147_v55, %v147_v55  ;;  %v210_v0 = vsel %vm192_vm1, %v147_v55, 0.0 }
  0x8f   :  { %v159_v56 = vpop.f32.mrf.mxu1  ;;  %201 = vst.msk [vmem:[%s615_s4 + $0x40] sm:$0xff] %vm192_vm1, %v493_v54  ;;  %v504_v57 = vpop.f32.mrf.mxu3  ;;  %v211_v5 = vadd.f32 %v210_v0, %v209_v2  ;;  %v256_v36 = vmul.f32 %v493_v54, %v493_v54  ;;  %v224_v42 = vsel %vm192_vm1, %v493_v54, 0.0 }
  0x90   :  { %198 = vst.msk [vmem:[%s615_s4 + $0x28] sm:$0xff] %vm192_vm1, %v159_v56  ;;  %v265_v3 = vsel %vm192_vm1, %v249_v61, 0.0  ;;  %v253_v20 = vmul.f32 %v159_v56, %v159_v56  ;;  %v218_v25 = vsel %vm192_vm1, %v159_v56, 0.0  ;;  %v232_v0 = vsel %vm192_vm1, %v504_v57, 0.0 }
  0x91   :  { %205 = vst.msk [vmem:[%s615_s4 + $0x60] sm:$0xff] %vm192_vm1, %v504_v57  ;;  %v266_v9 = vadd.f32 %v265_v3, %v264_v6  ;;  %v279_v46 = vsel %vm192_vm1, %v256_v36, 0.0 }
  0x92   :  { %v273_v30 = vsel %vm192_vm1, %v253_v20, 0.0 }
  0x95   :  { %v150_v59 = vpop.f32.mrf.mxu0 }
  0x96   :  { %v515_v58 = vpop.f32.mrf.mxu2  ;;  %195 = vst.msk [vmem:[%s615_s4 + $0x10] sm:$0xff] %vm192_vm1, %v150_v59  ;;  %v250_v1 = vmul.f32 %v150_v59, %v150_v59  ;;  %v212_v4 = vsel %vm192_vm1, %v150_v59, 0.0  ;;  %v260_v59 = vmul.f32 %v504_v57, %v504_v57 }
  0x97   :  { %v162_v60 = vpop.f32.mrf.mxu1  ;;  %202 = vst.msk [vmem:[%s615_s4 + $0x48] sm:$0xff] %vm192_vm1, %v515_v58  ;;  %v526_v62 = vpop.f32.mrf.mxu3  ;;  %v213_v10 = vadd.f32 %v212_v4, %v211_v5  ;;  %v257_v43 = vmul.f32 %v515_v58, %v515_v58  ;;  %v226_v47 = vsel %vm192_vm1, %v515_v58, 0.0 }
  0x98   :  { %199 = vst.msk [vmem:[%s615_s4 + $0x30] sm:$0xff] %vm192_vm1, %v162_v60  ;;  %v267_v7 = vsel %vm192_vm1, %v250_v1, 0.0  ;;  %v254_v26 = vmul.f32 %v162_v60, %v162_v60  ;;  %v220_v31 = vsel %vm192_vm1, %v162_v60, 0.0  ;;  %v261_v1 = vmul.f32 %v526_v62, %v526_v62 }
  0x99   :  { %206 = vst.msk [vmem:[%s615_s4 + $0x68] sm:$0xff] %vm192_vm1, %v526_v62  ;;  %v268_v17 = vadd.f32 %v267_v7, %v266_v9  ;;  %v281_v52 = vsel %vm192_vm1, %v257_v43, 0.0  ;;  %v287_v4 = vsel %vm192_vm1, %v260_v59, 0.0  ;;  %v234_v5 = vsel %vm192_vm1, %v526_v62, 0.0 }
  0x9a   :  { %v275_v37 = vsel %vm192_vm1, %v254_v26, 0.0 }
  0x9d   :  { %v153_v11 = vpop.f32.mrf.mxu0 }
  0x9e   :  { %v174_v8 = vpop.f32.mrf.mxu2  ;;  %196 = vst.msk [vmem:[%s615_s4 + $0x18] sm:$0xff] %vm192_vm1, %v153_v11  ;;  %v214_v14 = vsel %vm192_vm1, %v153_v11, 0.0  ;;  %v251_v15 = vmul.f32 %v153_v11, %v153_v11 }
  0x9f   :  { %v165_v12 = vpop.f32.mrf.mxu1  ;;  %203 = vst.msk [vmem:[%s615_s4 + $0x50] sm:$0xff] %vm192_vm1, %v174_v8  ;;  %v186_v16 = vpop.f32.mrf.mxu3  ;;  %v215_v18 = vadd.f32 %v214_v14, %v213_v10  ;;  %v258_v48 = vmul.f32 %v174_v8, %v174_v8  ;;  %v228_v53 = vsel %vm192_vm1, %v174_v8, 0.0  ;;  %v289_v10 = vsel %vm192_vm1, %v261_v1, 0.0 }
  0xa0   :  { %200 = vst.msk [vmem:[%s615_s4 + $0x38] sm:$0xff] %vm192_vm1, %v165_v12  ;;  %v269_v21 = vsel %vm192_vm1, %v251_v15, 0.0  ;;  %v255_v27 = vmul.f32 %v165_v12, %v165_v12  ;;  %v222_v32 = vsel %vm192_vm1, %v165_v12, 0.0  ;;  %v262_v6 = vmul.f32 %v186_v16, %v186_v16 }
  0xa1   :  { %207 = vst.msk [vmem:[%s615_s4 + $0x70] sm:$0xff] %vm192_vm1, %v186_v16  ;;  %v217_v22 = vadd.f32 %v216_v19, %v215_v18  ;;  %v270_v23 = vadd.f32 %v269_v21, %v268_v17  ;;  %v283_v60 = vsel %vm192_vm1, %v258_v48, 0.0  ;;  %v236_v11 = vsel %vm192_vm1, %v186_v16, 0.0 }
  0xa2   :  { %v277_v38 = vsel %vm192_vm1, %v255_v27, 0.0  ;;  %v291_v14 = vsel %vm192_vm1, %v262_v6, 0.0 }
  0xa3   :  { %v272_v28 = vadd.f32 %v271_v24, %v270_v23  ;;  %v219_v29 = vadd.f32 %v218_v25, %v217_v22 }
  0xa5   :  { %v221_v34 = vadd.f32 %v220_v31, %v219_v29  ;;  %v274_v35 = vadd.f32 %v273_v30, %v272_v28 }
  0xa6   :  { %v177_v33 = vpop.f32.mrf.mxu2 }
  0xa7   :  { %204 = vst.msk [vmem:[%s615_s4 + $0x58] sm:$0xff] %vm192_vm1, %v177_v33  ;;  %v189_v39 = vpop.f32.mrf.mxu3  ;;  %v276_v40 = vadd.f32 %v275_v37, %v274_v35  ;;  %v223_v41 = vadd.f32 %v222_v32, %v221_v34  ;;  %v259_v49 = vmul.f32 %v177_v33, %v177_v33  ;;  %v230_v54 = vsel %vm192_vm1, %v177_v33, 0.0 }
  0xa8   :  { %208 = vst.msk [vmem:[%s615_s4 + $0x78] sm:$0xff] %vm192_vm1, %v189_v39  ;;  %v263_v7 = vmul.f32 %v189_v39, %v189_v39  ;;  %v238_v57 = vsel %vm192_vm1, %v189_v39, 0.0 }
  0xa9   :  { %v225_v44 = vadd.f32 %v224_v42, %v223_v41  ;;  %v278_v45 = vadd.f32 %v277_v38, %v276_v40  ;;  %v285_v61 = vsel %vm192_vm1, %v259_v49, 0.0 }
  0xaa   :  { %v293_v15 = vsel %vm192_vm1, %v263_v7, 0.0 }
  0xab   :  { %v280_v50 = vadd.f32 %v279_v46, %v278_v45  ;;  %v227_v51 = vadd.f32 %v226_v47, %v225_v44 }
  0xad   :  { %v229_v55 = vadd.f32 %v228_v53, %v227_v51  ;;  %v282_v56 = vadd.f32 %v281_v52, %v280_v50 }
  0xaf   :  { %v284_v58 = vadd.f32 %v283_v60, %v282_v56  ;;  %v231_v63 = vadd.f32 %v230_v54, %v229_v55 }
  0xb1   :  { %v233_v2 = vadd.f32 %v232_v0, %v231_v63  ;;  %v286_v3 = vadd.f32 %v285_v61, %v284_v58 }
  0xb3   :  { %v288_v8 = vadd.f32 %v287_v4, %v286_v3  ;;  %v235_v9 = vadd.f32 %v234_v5, %v233_v2 }
  0xb5   :  { %v237_v12 = vadd.f32 %v236_v11, %v235_v9  ;;  %v290_v13 = vadd.f32 %v289_v10, %v288_v8 }
  0xb7   :  { %v292_v17 = vadd.f32 %v291_v14, %v290_v13  ;;  %v239_v18 = vadd.f32 %v238_v57, %v237_v12 }
  0xb9   :  { %v240_v19 = vrot.slane %v239_v18, 4  ;;  %v294_v62 = vadd.f32 %v293_v15, %v292_v17 }
  0xbb   :  { %v241_v20 = vadd.f32 %v240_v19, %v239_v18  ;;  %v295_v21 = vrot.slane %v294_v62, 4 }
  0xbd   :  { %v242_v22 = vrot.slane %v241_v20, 2  ;;  %v296_v23 = vadd.f32 %v295_v21, %v294_v62 }
  0xbf   :  { %v243_v24 = vadd.f32 %v242_v22, %v241_v20  ;;  %v297_v25 = vrot.slane %v296_v23, 2 }
  0xc1   :  { %v244_v26 = vrot.slane %v243_v24, 1  ;;  %v298_v16 = vadd.f32 %v297_v25, %v296_v23 }
  0xc3   :  { %v245_v27 = vadd.f32 %v244_v26, %v243_v24  ;;  %v299_v28 = vrot.slane %v298_v16, 1 }
  0xc5   :  { %247 = vst.msk [vmem:[%s616_s5] sm:$0x1] %vm246_vm2, %v245_v27  ;;  %v300_v29 = vadd.f32 %v299_v28, %v298_v16 }
  0xc7   :  { %301 = vst.msk [vmem:[%s617_s6] sm:$0x1] %vm246_vm2, %v300_v29 }

// kernel: bottleneck_forward.11
= control target key start
LH: loop header
LB: loop body
LE: loop exit
PB: predicated region body
PF: predicated region fallthrough
CT: control target
= control target key end

     0   :  { %vm168_vm0 = vcmask 261120   ;;  %s473_s0 = inlined_call_operand.vmem [shape: f32[128,32], index: 0, kind: input, shape index: {}]   ;;  %s474_s1 = inlined_call_operand.vmem [shape: f32[1,32], index: 1, kind: input, shape index: {}]   ;;  %s475_s2 = inlined_call_operand.vmem [shape: f32[1,32], index: 2, kind: input, shape index: {}]   ;;  %s476_s3 = inlined_call_operand.vmem [shape: f32[128,32], index: 3, kind: input, shape index: {}]   ;;  %s477_s4 = inlined_call_operand.vmem [shape: f32[1,32], index: 4, kind: input, shape index: {}]   ;;  %s478_s5 = inlined_call_operand.vmem [shape: f32[1,32], index: 5, kind: input, shape index: {}]   ;;  %s479_s6 = inlined_call_operand.hbm [shape: f32[128,32], index: 6, kind: output, shape index: {}]  }
   0x1   :  { %v24_v0 = vld [vmem:[%s473_s0] sm:$0xff]  ;;  %v25_v7 = vld [vmem:[%s473_s0 + $0x8] sm:$0xff]  ;;  %v26_v13 = vld [vmem:[%s473_s0 + $0x10] sm:$0xff] }
   0x2   :  { %v280_v1 = vld [vmem:[%s474_s1] ss:$0 sm:$0xff]  ;;  %v81_v8 = vld [vmem:[%s476_s3 + $0x8] sm:$0xff]  ;;  %v82_v14 = vld [vmem:[%s476_s3 + $0x10] sm:$0xff] }
   0x3   :  { %v285_v2 = vld [vmem:[%s475_s2] ss:$0 sm:$0xff]  ;;  %v44_v4 = vmul.f32 %v280_v1, %v24_v0  ;;  %v45_v11 = vmul.f32 %v280_v1, %v25_v7  ;;  %v27_v15 = vld [vmem:[%s473_s0 + $0x18] sm:$0xff]  ;;  %v46_v16 = vmul.f32 %v280_v1, %v26_v13  ;;  %v29_v26 = vld [vmem:[%s473_s0 + $0x28] sm:$0xff] }
   0x4   :  { %v80_v3 = vld [vmem:[%s476_s3] sm:$0xff]  ;;  %v47_v18 = vmul.f32 %v280_v1, %v27_v15  ;;  %v83_v19 = vld [vmem:[%s476_s3 + $0x18] sm:$0xff]  ;;  %v85_v27 = vld [vmem:[%s476_s3 + $0x28] sm:$0xff]  ;;  %v49_v32 = vmul.f32 %v280_v1, %v29_v26 }
   0x5   :  { %v294_v5 = vld [vmem:[%s477_s4] ss:$0 sm:$0xff]  ;;  %v64_v9 = vadd.f32 %v285_v2, %v44_v4  ;;  %v65_v23 = vadd.f32 %v285_v2, %v45_v11  ;;  %v30_v28 = vld [vmem:[%s473_s0 + $0x30] sm:$0xff]  ;;  %v66_v29 = vadd.f32 %v285_v2, %v46_v16  ;;  %v31_v42 = vld [vmem:[%s473_s0 + $0x38] sm:$0xff] }
   0x6   :  { %v299_v6 = vld [vmem:[%s478_s5] ss:$0 sm:$0xff]  ;;  %v100_v10 = vmul.f32 %v294_v5, %v80_v3  ;;  %v101_v12 = vmul.f32 %v294_v5, %v81_v8  ;;  %v102_v17 = vmul.f32 %v294_v5, %v82_v14  ;;  %v103_v24 = vmul.f32 %v294_v5, %v83_v19  ;;  %v86_v33 = vld [vmem:[%s476_s3 + $0x30] sm:$0xff]  ;;  %v87_v43 = vld [vmem:[%s476_s3 + $0x38] sm:$0xff] }
   0x7   :  { %v28_v20 = vld [vmem:[%s473_s0 + $0x20] sm:$0xff]  ;;  %v67_v30 = vadd.f32 %v285_v2, %v47_v18  ;;  %v105_v37 = vmul.f32 %v294_v5, %v85_v27  ;;  %v69_v40 = vadd.f32 %v285_v2, %v49_v32  ;;  %v50_v41 = vmul.f32 %v280_v1, %v30_v28  ;;  %v33_v58 = vld [vmem:[%s473_s0 + $0x48] sm:$0xff]  ;;  %v34_v0 = vld [vmem:[%s473_s0 + $0x50] sm:$0xff] }
   0x8   :  { %v84_v21 = vld [vmem:[%s476_s3 + $0x20] sm:$0xff]  ;;  %v116_v22 = vadd.f32 %v100_v10, %v64_v9  ;;  %v48_v25 = vmul.f32 %v280_v1, %v28_v20  ;;  %v117_v35 = vadd.f32 %v101_v12, %v65_v23  ;;  %v118_v38 = vadd.f32 %v102_v17, %v66_v29  ;;  %v89_v59 = vld [vmem:[%s476_s3 + $0x48] sm:$0xff]  ;;  %v90_v3 = vld [vmem:[%s476_s3 + $0x50] sm:$0xff] }
   0x9   :  { %v104_v31 = vmul.f32 %v294_v5, %v84_v21  ;;  %v119_v39 = vadd.f32 %v103_v24, %v67_v30  ;;  %v106_v47 = vmul.f32 %v294_v5, %v86_v33  ;;  %v121_v50 = vadd.f32 %v105_v37, %v69_v40  ;;  %v32_v52 = vld [vmem:[%s473_s0 + $0x40] sm:$0xff] }
   0xa   :  { %v136_v34 = vadd.f32 %v299_v6, %v116_v22  ;;  %v68_v36 = vadd.f32 %v285_v2, %v48_v25  ;;  %v137_v45 = vadd.f32 %v299_v6, %v117_v35  ;;  %v138_v48 = vadd.f32 %v299_v6, %v118_v38  ;;  %v88_v53 = vld [vmem:[%s476_s3 + $0x40] sm:$0xff] }
   0xb   :  { %v139_v49 = vadd.f32 %v299_v6, %v119_v39  ;;  %v70_v51 = vadd.f32 %v285_v2, %v50_v41  ;;  %v51_v56 = vmul.f32 %v280_v1, %v31_v42  ;;  %v107_v57 = vmul.f32 %v294_v5, %v87_v43 }
   0xc   :  { %v152_v44 = vmax.f32 %v136_v34, 0.0  ;;  %v120_v46 = vadd.f32 %v104_v31, %v68_v36  ;;  %v153_v54 = vmax.f32 %v137_v45, 0.0  ;;  %v154_v60 = vmax.f32 %v138_v48, 0.0 }
   0xd   :  { %v155_v61 = vmax.f32 %v139_v49, 0.0  ;;  %v141_v62 = vadd.f32 %v299_v6, %v121_v50  ;;  %v122_v63 = vadd.f32 %v106_v47, %v70_v51 }
   0xe   :  { %169 = vst.msk [vmem:[#allocation2] sm:$0xff] %vm168_vm0, %v152_v44  ;;  %v140_v55 = vadd.f32 %v299_v6, %v120_v46 }
   0xf   :  { %11 = vsyncpa [#allocation3], 0  ;;  %170 = vst.msk [vmem:[#allocation2 + $0x8] sm:$0xff] %vm168_vm0, %v153_v54  ;;  %v71_v7 = vadd.f32 %v285_v2, %v51_v56  ;;  %v52_v8 = vmul.f32 %v280_v1, %v32_v52  ;;  %v108_v9 = vmul.f32 %v294_v5, %v88_v53  ;;  %v35_v10 = vld [vmem:[%s473_s0 + $0x58] sm:$0xff]  ;;  %v157_v12 = vmax.f32 %v141_v62, 0.0  ;;  %v36_v16 = vld [vmem:[%s473_s0 + $0x60] sm:$0xff] }
  0x10   :  { %v156_v4 = vmax.f32 %v140_v55, 0.0  ;;  %v91_v11 = vld [vmem:[%s476_s3 + $0x58] sm:$0xff]  ;;  %171 = vst.msk [vmem:[#allocation2 + $0x10] sm:$0xff] %vm168_vm0, %v154_v60  ;;  %v142_v13 = vadd.f32 %v299_v6, %v122_v63  ;;  %v53_v14 = vmul.f32 %v280_v1, %v33_v58  ;;  %v109_v15 = vmul.f32 %v294_v5, %v89_v59  ;;  %v92_v21 = vld [vmem:[%s476_s3 + $0x60] sm:$0xff]  ;;  %v37_v22 = vld [vmem:[%s473_s0 + $0x68] sm:$0xff]  ;;  %s191_s5 = sshll.u32 %s479_s6, 4  ;;  %s192_s5 = int_to_ptr.hbm [resolvable:$true] %s191_s5 }
  0x11   :  { %172 = vst.msk [vmem:[#allocation2 + $0x18] sm:$0xff] %vm168_vm0, %v155_v61  ;;  %v123_v17 = vadd.f32 %v107_v57, %v71_v7  ;;  %v72_v18 = vadd.f32 %v285_v2, %v52_v8  ;;  %v54_v19 = vmul.f32 %v280_v1, %v34_v0  ;;  %v110_v20 = vmul.f32 %v294_v5, %v90_v3  ;;  %v93_v31 = vld [vmem:[%s476_s3 + $0x68] sm:$0xff]  ;;  %v38_v36 = vld [vmem:[%s473_s0 + $0x70] sm:$0xff]  ;;  %v39_v46 = vld [vmem:[%s473_s0 + $0x78] sm:$0xff]  ;;  %s236_s0 = smov [#allocation2]   ;;  %s237_s12 = smov 128  }
  0x12   :  { %173 = vst.msk [vmem:[#allocation2 + $0x20] sm:$0xff] %vm168_vm0, %v156_v4  ;;  %v158_v23 = vmax.f32 %v142_v13, 0.0  ;;  %v73_v24 = vadd.f32 %v285_v2, %v53_v14  ;;  %v55_v25 = vmul.f32 %v280_v1, %v35_v10  ;;  %v111_v26 = vmul.f32 %v294_v5, %v91_v11  ;;  %v94_v41 = vld [vmem:[%s476_s3 + $0x70] sm:$0xff]  ;;  %v95_v51 = vld [vmem:[%s476_s3 + $0x78] sm:$0xff]  ;;  %s189_s3 = sshll.u32 %s236_s0, 4  ;;  %s238_s13 = smov 8   ;;  %s190_s3 = int_to_ptr.vmem [resolvable:$true] %s189_s3 }
  0x13   :  { %174 = vst.msk [vmem:[#allocation2 + $0x28] sm:$0xff] %vm168_vm0, %v157_v12  ;;  %v143_v27 = vadd.f32 %v299_v6, %v123_v17  ;;  %v124_v28 = vadd.f32 %v108_v9, %v72_v18  ;;  %v74_v29 = vadd.f32 %v285_v2, %v54_v19  ;;  %v56_v30 = vmul.f32 %v280_v1, %v36_v16 }
  0x14   :  { %175 = vst.msk [vmem:[#allocation2 + $0x30] sm:$0xff] %vm168_vm0, %v158_v23  ;;  %v125_v32 = vadd.f32 %v109_v15, %v73_v24  ;;  %v75_v33 = vadd.f32 %v285_v2, %v55_v25  ;;  %v112_v34 = vmul.f32 %v294_v5, %v92_v21  ;;  %v57_v35 = vmul.f32 %v280_v1, %v37_v22 }
  0x15   :  { %v159_v37 = vmax.f32 %v143_v27, 0.0  ;;  %v144_v38 = vadd.f32 %v299_v6, %v124_v28  ;;  %v126_v39 = vadd.f32 %v110_v20, %v74_v29  ;;  %v76_v40 = vadd.f32 %v285_v2, %v56_v30 }
  0x16   :  { %v145_v42 = vadd.f32 %v299_v6, %v125_v32  ;;  %v127_v43 = vadd.f32 %v111_v26, %v75_v33  ;;  %v77_v44 = vadd.f32 %v285_v2, %v57_v35  ;;  %v113_v45 = vmul.f32 %v294_v5, %v93_v31 }
  0x17   :  { %176 = vst.msk [vmem:[#allocation2 + $0x38] sm:$0xff] %vm168_vm0, %v159_v37  ;;  %v160_v47 = vmax.f32 %v144_v38, 0.0  ;;  %v146_v48 = vadd.f32 %v299_v6, %v126_v39  ;;  %v128_v49 = vadd.f32 %v112_v34, %v76_v40  ;;  %v58_v50 = vmul.f32 %v280_v1, %v38_v36 }
  0x18   :  { %v161_v52 = vmax.f32 %v145_v42, 0.0  ;;  %v147_v53 = vadd.f32 %v299_v6, %v127_v43  ;;  %v129_v54 = vadd.f32 %v113_v45, %v77_v44  ;;  %v114_v55 = vmul.f32 %v294_v5, %v94_v41 }
  0x19   :  { %177 = vst.msk [vmem:[#allocation2 + $0x40] sm:$0xff] %vm168_vm0, %v160_v47  ;;  %v162_v56 = vmax.f32 %v146_v48, 0.0  ;;  %v148_v57 = vadd.f32 %v299_v6, %v128_v49  ;;  %v78_v58 = vadd.f32 %v285_v2, %v58_v50  ;;  %v59_v59 = vmul.f32 %v280_v1, %v39_v46 }
  0x1a   :  { %178 = vst.msk [vmem:[#allocation2 + $0x48] sm:$0xff] %vm168_vm0, %v161_v52  ;;  %v163_v60 = vmax.f32 %v147_v53, 0.0  ;;  %v149_v61 = vadd.f32 %v299_v6, %v129_v54  ;;  %v115_v62 = vmul.f32 %v294_v5, %v95_v51 }
  0x1b   :  { %179 = vst.msk [vmem:[#allocation2 + $0x50] sm:$0xff] %vm168_vm0, %v162_v56  ;;  %v164_v63 = vmax.f32 %v148_v57, 0.0  ;;  %v130_v0 = vadd.f32 %v114_v55, %v78_v58  ;;  %v79_v3 = vadd.f32 %v285_v2, %v59_v59 }
  0x1c   :  { %180 = vst.msk [vmem:[#allocation2 + $0x58] sm:$0xff] %vm168_vm0, %v163_v60  ;;  %v165_v4 = vmax.f32 %v149_v61, 0.0 }
  0x1d   :  { %181 = vst.msk [vmem:[#allocation2 + $0x60] sm:$0xff] %vm168_vm0, %v164_v63  ;;  %v150_v1 = vadd.f32 %v299_v6, %v130_v0  ;;  %v131_v7 = vadd.f32 %v115_v62, %v79_v3 }
  0x1e   :  { %182 = vst.msk [vmem:[#allocation2 + $0x68] sm:$0xff] %vm168_vm0, %v165_v4 }
  0x1f   :  { %v166_v5 = vmax.f32 %v150_v1, 0.0  ;;  %v151_v8 = vadd.f32 %v299_v6, %v131_v7 }
  0x21   :  { %183 = vst.msk [vmem:[#allocation2 + $0x70] sm:$0xff] %vm168_vm0, %v166_v5  ;;  %v167_v2 = vmax.f32 %v151_v8, 0.0 }
  0x23   :  { %184 = vst.msk [vmem:[#allocation2 + $0x78] sm:$0xff] %vm168_vm0, %v167_v2 }
  0x24   :  { %197 = dma.vmem_to_hbm [thread:$0]  %s190_s3, 2048, %s192_s5, [#allocation3], %s237_s12, %s237_s12, %s238_s13  }
  0x25   :  { %234 = dma.done.wait [#allocation3], 2048  }
  0x26   :  { %235 = vsyncadd [#allocation3], 4294965248 }
  0x27   :  { %202 = vsyncpa [#allocation3], 1 }

</bundles_post_ra>
